<compile_context>
chip_gen: v5e
topology: v5e:2x2
jax: 0.10.0
libtpu: 0.0.40
codegen_flags: <defaults>
</compile_context>

<pallas_src>
import functools

import jax
import jax.numpy as jnp
from jax.experimental import pallas as pl
from jax.experimental.pallas import tpu as pltpu


# ----------------------------------------------------------------------------
# helpers
# ----------------------------------------------------------------------------

_VMEM_CAP_CACHE = [None]


def _vmem_cap():
    """~80% of physical VMEM; conservative fallback if the query fails."""
    if _VMEM_CAP_CACHE[0] is None:
        try:
            cap = int(pltpu.get_tpu_info().vmem_capacity_bytes)
        except Exception:  # pragma: no cover - robustness only
            cap = 64 * 1024 * 1024
        _VMEM_CAP_CACHE[0] = max(int(0.8 * cap), 16 * 1024 * 1024)
    return _VMEM_CAP_CACHE[0]


def _cparams(vmem_bytes, semantics):
    """Per-kernel VMEM budget (double-buffered blocks + intermediates) + semantics."""
    limit = int(min(max(int(vmem_bytes), 16 * 1024 * 1024), _vmem_cap()))
    return pltpu.CompilerParams(dimension_semantics=semantics,
                                vmem_limit_bytes=limit)


def _fma_t(wT, x):
    """(N, K) @ (K, M) -> (N, M) f32 via K unrolled broadcast-FMAs on the VPU.

    Used for tiny contractions (K <= 16) where the MXU would be <6% utilized.
    """
    xf = x.astype(jnp.float32)
    acc = jnp.zeros((wT.shape[0], x.shape[1]), jnp.float32)
    for k in range(wT.shape[1]):
        acc = acc + wT[:, k:k + 1].astype(jnp.float32) * xf[k:k + 1, :]
    return acc


# ----------------------------------------------------------------------------
# Pallas kernels
# ----------------------------------------------------------------------------

def _dense_kernel(x_ref, w_ref, b_ref, o_ref, *, relu, use_mxu):
    # x: (1, C, TQ) activations, pixels on lanes.  w: (N, C).  b: (N, 1).
    x = x_ref[0]
    wT = w_ref[...]
    bias = b_ref[...].astype(jnp.float32)
    if use_mxu:
        y = jnp.dot(wT.astype(jnp.bfloat16), x.astype(jnp.bfloat16),
                    preferred_element_type=jnp.float32)
    else:
        y = _fma_t(wT, x)                     # cin=3 first conv: VPU, not MXU
    y = y + bias
    if relu:
        y = jnp.maximum(y, 0.0)
    o_ref[0] = y.astype(o_ref.dtype)          # lane-dense (N, TQ) store


def dense_pallas(x3, wT, b, relu, tile_q=2048, out_dtype=jnp.bfloat16):
    """x3: [B, C, HW], wT: [N, C], b: [N, 1] -> [B, N, HW] (M on lanes)."""
    B, C, HW = x3.shape
    N = wT.shape[0]
    tq = HW if HW <= tile_q else tile_q
    use_mxu = C > 8
    xb = jnp.dtype(x3.dtype).itemsize
    ob = jnp.dtype(out_dtype).itemsize
    vmem_bytes = (2 * (C * tq * xb + N * C * 2 + N * 4 + N * tq * ob)
                  + N * tq * 4 + C * tq * 2)
    return pl.pallas_call(
        functools.partial(_dense_kernel, relu=relu, use_mxu=use_mxu),
        out_shape=jax.ShapeDtypeStruct((B, N, HW), out_dtype),
        grid=(B, pl.cdiv(HW, tq)),
        in_specs=[
            pl.BlockSpec((1, C, tq), lambda bi, t: (bi, 0, t)),
            pl.BlockSpec((N, C), lambda bi, t: (0, 0)),
            pl.BlockSpec((N, 1), lambda bi, t: (0, 0)),
        ],
        out_specs=pl.BlockSpec((1, N, tq), lambda bi, t: (bi, 0, t)),
        compiler_params=_cparams(vmem_bytes, ("parallel", "parallel")),
    )(x3, wT, b)


def _hpn_head_kernel(x_ref, w1_ref, b1_ref, w2_ref, b2_ref, o_ref):
    # Fused 2-layer per-pixel MLP, pixels on lanes; tiny contractions on VPU.
    x = x_ref[0]                                                # (L, TQ)
    h = jnp.maximum(_fma_t(w1_ref[...], x) + b1_ref[...], 0.0)  # (Hid, TQ)
    o = _fma_t(w2_ref[...], h) + b2_ref[...]                    # (2, TQ)
    o_ref[0] = o.astype(o_ref.dtype)


def hpn_head_pallas(x3, w1T, b1, w2T, b2, tile_q=2048):
    """x3: [B, L, HW] -> [B, 2, HW] through the fused relu-MLP head."""
    B, L, HW = x3.shape
    Hid = w1T.shape[0]
    N = w2T.shape[0]
    tq = HW if HW <= tile_q else tile_q
    vmem_bytes = (2 * (L * tq * 4 + Hid * L * 4 + Hid * 4 + N * Hid * 4 + N * 4
                       + N * tq * 4) + (Hid + N + L) * tq * 4)
    return pl.pallas_call(
        _hpn_head_kernel,
        out_shape=jax.ShapeDtypeStruct((B, N, HW), jnp.float32),
        grid=(B, pl.cdiv(HW, tq)),
        in_specs=[
            pl.BlockSpec((1, L, tq), lambda bi, t: (bi, 0, t)),
            pl.BlockSpec((Hid, L), lambda bi, t: (0, 0)),
            pl.BlockSpec((Hid, 1), lambda bi, t: (0, 0)),
            pl.BlockSpec((N, Hid), lambda bi, t: (0, 0)),
            pl.BlockSpec((N, 1), lambda bi, t: (0, 0)),
        ],
        out_specs=pl.BlockSpec((1, N, tq), lambda bi, t: (bi, 0, t)),
        compiler_params=_cparams(vmem_bytes, ("parallel", "parallel")),
    )(x3, w1T, b1, w2T, b2)


def _corr_fused_kernel(q_ref, s_ref, m_ref, o_ref, *, inv_hws):
    # q: (1, C, TQ)  bf16 query features (query pixels on lanes)
    # s: (1, C, HWs) bf16 support features, NATIVE layout (no wrapper transpose)
    # m: (1, 1, HWs) f32 resized support mask
    # o: (1, 1, TQ)  f32 mean-over-support relu(cosine correlation), lane dense
    q = q_ref[0]
    s = s_ref[0]
    m = m_ref[0]
    s_m = s.astype(jnp.float32) * m                               # masked support (C, HWs)
    inv_s = pl.reciprocal(
        jnp.sqrt(jnp.sum(s_m * s_m, axis=0, keepdims=True)) + 1e-5,
        approx=True)                                              # (1, HWs)
    s_n = (s_m * inv_s).astype(jnp.bfloat16)                      # norm folded pre-cast
    q_f = q.astype(jnp.float32)
    inv_q = pl.reciprocal(
        jnp.sqrt(jnp.sum(q_f * q_f, axis=0, keepdims=True)) + 1e-5,
        approx=True)                                              # (1, TQ)
    c = jax.lax.dot_general(s_n, q, (((0,), (0,)), ((), ())),
                            preferred_element_type=jnp.float32)   # (HWs, TQ) on MXU
    red = jnp.sum(jnp.maximum(c, 0.0), axis=0, keepdims=True)     # (1, TQ)
    # relu(c*inv_s*inv_q) == inv_q*relu(c*inv_s): apply hoisted rank-1 scale once.
    o_ref[0] = red * (inv_q * inv_hws)


def correlation_fused_pallas(q3, s3, m3, tile_q=512):
    """q3: [B, C, HWq], s3: [B, C, HWs], m3: [B, 1, HWs] -> [B, 1, HWq]."""
    B, C, HWq = q3.shape
    HWs = s3.shape[2]
    tq = HWq if HWq <= tile_q else tile_q
    vmem_bytes = (2 * (C * tq * 2 + C * HWs * 2 + HWs * 4 + tq * 4)
                  + 3 * C * HWs * 4 + HWs * tq * 4 + C * tq * 4 + (HWs + tq) * 8)
    # TODO(synk): for very deep backbone levels (C>~1024) or very large HWs,
    # add grid axes over C / HWs with an accumulator; not needed at these sizes.
    return pl.pallas_call(
        functools.partial(_corr_fused_kernel, inv_hws=1.0 / HWs),
        out_shape=jax.ShapeDtypeStruct((B, 1, HWq), jnp.float32),
        grid=(B, pl.cdiv(HWq, tq)),
        in_specs=[
            pl.BlockSpec((1, C, tq), lambda bi, t: (bi, 0, t)),
            pl.BlockSpec((1, C, HWs), lambda bi, t: (bi, 0, 0)),
            pl.BlockSpec((1, 1, HWs), lambda bi, t: (bi, 0, 0)),
        ],
        out_specs=pl.BlockSpec((1, 1, tq), lambda bi, t: (bi, 0, t)),
        compiler_params=_cparams(vmem_bytes, ("parallel", "parallel")),
    )(q3, s3, m3)


def _overlap_kernel(q_ref, s_ref, sm_ref, mm_ref, o_ref):
    q = q_ref[0]
    s = s_ref[0]
    sm = sm_ref[0]
    mm = mm_ref[0]
    # TODO(synk): like the PyTorch reference, the compositing tests value
    # products against zero, so zero-valued pixels inside a mask pass through.
    support_target = sm * s
    ov = jnp.where(support_target != 0.0, 0.0, q) + support_target
    qmt = mm * q
    o_ref[0] = (jnp.where(qmt != 0.0, 0.0, ov) + qmt).astype(o_ref.dtype)


def overlap_compose_pallas(query_img, support_img, support_mask, mask_multi,
                           tile_q=2048):
    """NCHW compositing of the overlap image — tiled over (B, HW chunks)."""
    B, C, H, W = query_img.shape
    HW = H * W
    q3 = query_img.reshape(B, C, HW)
    s3 = support_img.reshape(B, C, HW)
    sm3 = support_mask.reshape(B, 1, HW)
    mm3 = mask_multi.reshape(B, 1, HW)
    tq = HW if HW <= tile_q else tile_q
    vmem_bytes = 2 * (2 * C * tq * 4 + 2 * tq * 4 + C * tq * 4) + 2 * C * tq * 4
    out = pl.pallas_call(
        _overlap_kernel,
        out_shape=jax.ShapeDtypeStruct((B, C, HW), query_img.dtype),
        grid=(B, pl.cdiv(HW, tq)),
        in_specs=[
            pl.BlockSpec((1, C, tq), lambda bi, t: (bi, 0, t)),
            pl.BlockSpec((1, C, tq), lambda bi, t: (bi, 0, t)),
            pl.BlockSpec((1, 1, tq), lambda bi, t: (bi, 0, t)),
            pl.BlockSpec((1, 1, tq), lambda bi, t: (bi, 0, t)),
        ],
        out_specs=pl.BlockSpec((1, C, tq), lambda bi, t: (bi, 0, t)),
        compiler_params=_cparams(vmem_bytes, ("parallel", "parallel")),
    )(q3, s3, sm3, mm3)
    return out.reshape(B, C, H, W)


def _ce_pair_kernel(la_ref, lb_ref, g_ref, loss_ref, *, inv_denom, hw):
    bi = pl.program_id(0)
    t = pl.program_id(1)

    @pl.when(jnp.logical_and(bi == 0, t == 0))
    def _():
        loss_ref[...] = jnp.zeros_like(loss_ref)

    la = la_ref[0].astype(jnp.float32)        # (2, TQ)
    lb = lb_ref[0].astype(jnp.float32)        # (2, TQ)
    g = g_ref[0] > 0.5                        # (1, TQ)
    tq = la.shape[-1]

    def ce(l):
        # 2-class CE in softplus form: softplus(where(g, l0-l1, l1-l0)).
        d = jnp.where(g, l[0:1, :] - l[1:2, :], l[1:2, :] - l[0:1, :])
        return jnp.maximum(d, 0.0) + jnp.log(1.0 + jnp.exp(-jnp.abs(d)))

    tot = ce(la) + ce(lb)                     # (1, TQ)
    col = t * tq + jax.lax.broadcasted_iota(jnp.int32, (1, tq), 1)
    tot = jnp.where(col < hw, tot, 0.0)       # mask padded lanes of ragged tile
    loss_ref[...] += jnp.sum(tot, axis=(0, 1), keepdims=True) * inv_denom


def cross_entropy_pair_pallas(logits_a, logits_b, gt_mask, tile_q=2048):
    """Sum of the two per-call mean cross-entropies; scalar accumulated in-kernel."""
    B, _, H, W = logits_a.shape
    HW = H * W
    la = logits_a.reshape(B, 2, HW).astype(jnp.float32)
    lb = logits_b.reshape(B, 2, HW).astype(jnp.float32)
    g = gt_mask.reshape(B, 1, HW).astype(jnp.float32)
    tq = HW if HW <= tile_q else tile_q
    vmem_bytes = 2 * (5 * tq * 4 + 8) + 8 * tq * 4
    out = pl.pallas_call(
        functools.partial(_ce_pair_kernel, inv_denom=1.0 / (B * HW), hw=HW),
        out_shape=jax.ShapeDtypeStruct((1, 1), jnp.float32),
        grid=(B, pl.cdiv(HW, tq)),
        in_specs=[
            pl.BlockSpec((1, 2, tq), lambda bi, t: (bi, 0, t)),
            pl.BlockSpec((1, 2, tq), lambda bi, t: (bi, 0, t)),
            pl.BlockSpec((1, 1, tq), lambda bi, t: (bi, 0, t)),
        ],
        out_specs=pl.BlockSpec((1, 1), lambda bi, t: (0, 0)),
        compiler_params=_cparams(vmem_bytes, ("arbitrary", "arbitrary")),
    )(la, lb, g)
    return out[0, 0]


# ----------------------------------------------------------------------------
# Glue (plain JAX): pooling, bilinear resize, model assembly
# ----------------------------------------------------------------------------

def avg_pool2(x):
    B, C, H, W = x.shape
    return x.reshape(B, C, H // 2, 2, W // 2, 2).mean(axis=(3, 5))


def bilinear_align_corners(x, out_h, out_w):
    """F.interpolate(..., mode='bilinear', align_corners=True) for NCHW."""
    B, C, H, W = x.shape
    ys = jnp.zeros((out_h,)) if H == 1 else jnp.linspace(0.0, H - 1.0, out_h)
    xs = jnp.zeros((out_w,)) if W == 1 else jnp.linspace(0.0, W - 1.0, out_w)
    y0 = jnp.floor(ys).astype(jnp.int32)
    x0 = jnp.floor(xs).astype(jnp.int32)
    y1 = jnp.minimum(y0 + 1, H - 1)
    x1 = jnp.minimum(x0 + 1, W - 1)
    wy = (ys - y0)[None, None, :, None]
    wx = (xs - x0)[None, None, None, :]
    xa = x[:, :, y0, :][:, :, :, x0]
    xb = x[:, :, y0, :][:, :, :, x1]
    xc = x[:, :, y1, :][:, :, :, x0]
    xd = x[:, :, y1, :][:, :, :, x1]
    return (xa * (1 - wy) * (1 - wx) + xb * (1 - wy) * wx +
            xc * wy * (1 - wx) + xd * wy * wx)


def extract_feats(img, params):
    """Synthetic 3-level feature pyramid (stand-in for the frozen backbone).

    Each level: 2x2 avg-pool (glue) + 1x1 conv (Pallas, lane-dense, bf16 out) + ReLU.
    No layout transposes: features stay NCHW / [B, C, HW] throughout.
    """
    # TODO(synk): pretrained resnet50/vgg16 backbone replaced by a deterministic
    # synthetic pyramid; the per-level conv matmuls are the Pallas hot path.
    feats = []
    x = img
    for wT, b in params["backbone"]:
        x = avg_pool2(x)
        B, C, H, W = x.shape
        y3 = dense_pallas(x.reshape(B, C, H * W), wT, b, relu=True)
        x = y3.reshape(B, wT.shape[0], H, W)
        feats.append(x)
    return feats


def multilayer_correlation(query_feats, support_feats, support_mask):
    """mask_feature + Correlation.multilayer_correlation + support-mean, fused.

    Per level: resize the support mask (glue), then one Pallas kernel does
    masking, channel-normalised correlation (bf16 MXU, f32 acc), ReLU and the
    mean over the support spatial dim -> [B, 1, HWq]. No feature transposes.
    """
    # TODO(synk): real code stacks several bottleneck features per pyramid level
    # (stack_ids); the synthetic backbone has one feature per level.
    m4 = support_mask[:, None].astype(jnp.float32)
    outs = []
    for qf, sf in zip(query_feats, support_feats):
        B, C, Hq, Wq = qf.shape
        _, _, Hs, Ws = sf.shape
        mi = bilinear_align_corners(m4, Hs, Ws)                 # (B,1,Hs,Ws)
        q3 = qf.reshape(B, C, Hq * Wq)
        s3 = sf.reshape(B, C, Hs * Ws)
        m3 = mi.reshape(B, 1, Hs * Ws)
        outs.append(correlation_fused_pallas(q3, s3, m3))
    return outs


def hpn_lite(params, corr_reduced, query_feats):
    """HPNLearner stand-in: upsampled reduced correlations -> fused per-pixel MLP."""
    # TODO(synk): HPNLearner's 4D center-pivot convolutions have no compact Pallas
    # equivalent here; approximated by the support-mean maps + per-pixel MLP.
    B = corr_reduced[0].shape[0]
    h0, w0 = query_feats[0].shape[2:]
    maps = []
    for red, qf in zip(corr_reduced, query_feats):
        hq, wq = qf.shape[2:]
        maps.append(bilinear_align_corners(red.reshape(B, 1, hq, wq), h0, w0))
    x = jnp.concatenate(maps, axis=1).astype(jnp.float32)       # [B, L, h0, w0]
    x3 = x.reshape(B, x.shape[1], h0 * w0)
    o3 = hpn_head_pallas(x3, params["hpn_w1t"], params["hpn_b1"],
                         params["hpn_w2t"], params["hpn_b2"])   # [B, 2, h0*w0]
    return o3.reshape(B, 2, h0, w0)


def pcas_forward(params, query_img, support_img, support_mask, query_mask):
    """Mirrors PCAS.forward with training=False, epoch=0 (inference path)."""
    B, _, H, W = query_img.shape

    # ---- stage 1 (torch.no_grad) ----
    query_feats = extract_feats(query_img, params)
    support_feats1 = extract_feats(support_img, params)
    corr1 = multilayer_correlation(query_feats, support_feats1, support_mask)

    logit_mask1 = hpn_lite(params, corr1, query_feats)
    logit_mask1_up = bilinear_align_corners(logit_mask1, H, W)
    pesudo_mask1 = jnp.argmax(logit_mask1_up, axis=1).astype(jnp.float32)  # [B, H, W]

    # TODO(synk): the epoch>=1 median / np.where / torch.roll support-shifting
    # branch is host-side data-dependent control flow with variable-length index
    # sets; skipped (equivalent to training=False, epoch=0).
    # TODO(synk): original code reads `support_feats2` before it is assigned
    # (overlap_img_feature_aux); that training-only path is not reproduced.

    mask_multi = support_mask * pesudo_mask1
    pesudo_mask1_bin = jnp.where(support_mask + pesudo_mask1 != 0, 1.0, 0.0)

    # ---- stage 2 (torch.no_grad): overlap image composition + second corr ----
    overlap_img = overlap_compose_pallas(query_img, support_img, support_mask,
                                         mask_multi)
    support_feats2 = extract_feats(overlap_img, params)
    corr3 = multilayer_correlation(query_feats, support_feats2, pesudo_mask1_bin)

    logit_mask2 = hpn_lite(params, corr3, query_feats)
    logit_mask2_up = bilinear_align_corners(logit_mask2, H, W)

    loss = cross_entropy_pair_pallas(logit_mask1_up, logit_mask2_up, query_mask)
    return loss, logit_mask2_up, logit_mask1_up


# ----------------------------------------------------------------------------
# Parameter init + demo
# ----------------------------------------------------------------------------

def init_params(key, hidden=16):
    keys = jax.random.split(key, 8)
    chans = [(3, 32), (32, 64), (64, 64)]
    backbone = []
    for i, (cin, cout) in enumerate(chans):
        w = 0.1 * jax.random.normal(keys[i], (cin, cout), jnp.float32)
        b = 0.01 * jax.random.normal(keys[i + 3], (1, cout), jnp.float32)
        # stored transposed ([N, K]) and bf16 for the lane-dense kernels
        backbone.append((jnp.transpose(w).astype(jnp.bfloat16),
                         jnp.transpose(b).astype(jnp.float32)))
    hpn_w1 = 0.5 * jax.random.normal(keys[6], (3, hidden), jnp.float32)
    hpn_w2 = 0.5 * jax.random.normal(keys[7], (hidden, 2), jnp.float32)
    params = {
        "backbone": backbone,
        "hpn_w1t": jnp.transpose(hpn_w1),                 # [hidden, 3]
        "hpn_b1": jnp.zeros((hidden, 1), jnp.float32),
        "hpn_w2t": jnp.transpose(hpn_w2),                 # [2, hidden]
        "hpn_b2": jnp.zeros((2, 1), jnp.float32),
    }
    return params


if __name__ == "__main__":
    key = jax.random.PRNGKey(0)
    k_p, k_q, k_s, k_qm, k_sm = jax.random.split(key, 5)

    B, C, H, W = 2, 3, 16, 16
    params = init_params(k_p)

    query_img = jax.random.normal(k_q, (B, C, H, W), jnp.float32)
    support_img = jax.random.normal(k_s, (B, C, H, W), jnp.float32)
    query_mask = (jax.random.uniform(k_qm, (B, H, W)) > 0.5).astype(jnp.float32)
    support_mask = (jax.random.uniform(k_sm, (B, H, W)) > 0.5).astype(jnp.float32)

    forward = jax.jit(pcas_forward)
    loss, logit_mask2, logit_mask1 = forward(
        params, query_img, support_img, support_mask, query_mask)

    jax.block_until_ready((loss, logit_mask2, logit_mask1))
    assert logit_mask1.shape == (B, 2, H, W)
    assert logit_mask2.shape == (B, 2, H, W)
    assert jnp.isfinite(loss)
    print("KERNEL_OK")
</pallas_src>

<mosaic_0001>
module attributes {stable_mosaic.version = 11 : i64} {
  func.func @_dense_kernel(%arg0: i32, %arg1: i32, %arg2: memref<1x3x64xf32, #tpu.memory_space<vmem>>, %arg3: memref<32x3xbf16, #tpu.memory_space<vmem>>, %arg4: memref<32x1xf32, #tpu.memory_space<vmem>>, %arg5: memref<1x32x64xbf16, #tpu.memory_space<vmem>>) attributes {dimension_semantics = [#tpu.dimension_semantics<parallel>, #tpu.dimension_semantics<parallel>], iteration_bounds = array<i64: 2, 1>, scalar_prefetch = 0 : i64, scratch_operands = 0 : i64, tpu.core_type = #tpu.core_type<tc>, window_params = [{transform_indices = @transform_0, window_bounds = array<i64: 1, 3, 64>}, {pipeline_mode = #tpu.pipeline_mode<synchronous>, transform_indices = @transform_1, window_bounds = array<i64: 32, 3>}, {pipeline_mode = #tpu.pipeline_mode<synchronous>, transform_indices = @transform_2, window_bounds = array<i64: 32, 1>}, {transform_indices = @transform_3, window_bounds = array<i64: 1, 32, 64>}]} {
    %c0 = arith.constant 0 : index
    %c0_0 = arith.constant 0 : index
    %c0_1 = arith.constant 0 : index
    %0 = vector.load %arg2[%c0, %c0_0, %c0_1] : memref<1x3x64xf32, #tpu.memory_space<vmem>>, vector<1x3x64xf32>
    %1 = vector.shape_cast %0 : vector<1x3x64xf32> to vector<3x64xf32>
    %c0_2 = arith.constant 0 : index
    %c0_3 = arith.constant 0 : index
    %2 = vector.load %arg3[%c0_2, %c0_3] : memref<32x3xbf16, #tpu.memory_space<vmem>>, vector<32x3xbf16>
    %c0_4 = arith.constant 0 : index
    %c0_5 = arith.constant 0 : index
    %3 = vector.load %arg4[%c0_4, %c0_5] : memref<32x1xf32, #tpu.memory_space<vmem>>, vector<32x1xf32>
    %cst = arith.constant 0.000000e+00 : f32
    %4 = vector.broadcast %cst : f32 to vector<32x64xf32>
    %5 = vector.extract_strided_slice %2 {offsets = [0, 0], sizes = [32, 1], strides = [1, 1]} : vector<32x3xbf16> to vector<32x1xbf16>
    %6 = arith.extf %5 : vector<32x1xbf16> to vector<32x1xf32>
    %7 = vector.extract_strided_slice %1 {offsets = [0, 0], sizes = [1, 64], strides = [1, 1]} : vector<3x64xf32> to vector<1x64xf32>
    %8 = vector.broadcast %6 : vector<32x1xf32> to vector<32x64xf32>
    %9 = vector.broadcast %7 : vector<1x64xf32> to vector<32x64xf32>
    %10 = arith.mulf %8, %9 : vector<32x64xf32>
    %11 = arith.addf %4, %10 : vector<32x64xf32>
    %12 = vector.extract_strided_slice %2 {offsets = [0, 1], sizes = [32, 1], strides = [1, 1]} : vector<32x3xbf16> to vector<32x1xbf16>
    %13 = arith.extf %12 : vector<32x1xbf16> to vector<32x1xf32>
    %14 = vector.extract_strided_slice %1 {offsets = [1, 0], sizes = [1, 64], strides = [1, 1]} : vector<3x64xf32> to vector<1x64xf32>
    %15 = vector.broadcast %13 : vector<32x1xf32> to vector<32x64xf32>
    %16 = vector.broadcast %14 : vector<1x64xf32> to vector<32x64xf32>
    %17 = arith.mulf %15, %16 : vector<32x64xf32>
    %18 = arith.addf %11, %17 : vector<32x64xf32>
    %19 = vector.extract_strided_slice %2 {offsets = [0, 2], sizes = [32, 1], strides = [1, 1]} : vector<32x3xbf16> to vector<32x1xbf16>
    %20 = arith.extf %19 : vector<32x1xbf16> to vector<32x1xf32>
    %21 = vector.extract_strided_slice %1 {offsets = [2, 0], sizes = [1, 64], strides = [1, 1]} : vector<3x64xf32> to vector<1x64xf32>
    %22 = vector.broadcast %20 : vector<32x1xf32> to vector<32x64xf32>
    %23 = vector.broadcast %21 : vector<1x64xf32> to vector<32x64xf32>
    %24 = arith.mulf %22, %23 : vector<32x64xf32>
    %25 = arith.addf %18, %24 : vector<32x64xf32>
    %26 = vector.broadcast %3 : vector<32x1xf32> to vector<32x64xf32>
    %27 = arith.addf %25, %26 : vector<32x64xf32>
    %cst_6 = arith.constant 0.000000e+00 : f32
    %28 = vector.broadcast %cst_6 : f32 to vector<32x64xf32>
    %29 = arith.maximumf %27, %28 : vector<32x64xf32>
    %30 = arith.truncf %29 : vector<32x64xf32> to vector<32x64xbf16>
    %c0_7 = arith.constant 0 : index
    %c0_8 = arith.constant 0 : index
    %c0_9 = arith.constant 0 : index
    %31 = vector.load %arg5[%c0_7, %c0_8, %c0_9] : memref<1x32x64xbf16, #tpu.memory_space<vmem>>, vector<1x32x64xbf16>
    %32 = vector.shape_cast %31 : vector<1x32x64xbf16> to vector<32x64xbf16>
    %33 = vector.shape_cast %30 : vector<32x64xbf16> to vector<1x32x64xbf16>
    tpu.vector_store %arg5[%c0_7, %c0_8, %c0_9], %33 {strides = array<i32>} : memref<1x32x64xbf16, #tpu.memory_space<vmem>>, vector<1x32x64xbf16>,
    return
  }
  func.func @transform_0(%arg0: i32, %arg1: i32) -> (i32, i32, i32) {
    %c0_i32 = arith.constant 0 : i32
    %c0_i32_0 = arith.constant 0 : i32
    return %arg0, %c0_i32, %arg1 : i32, i32, i32
  }
  func.func @transform_1(%arg0: i32, %arg1: i32) -> (i32, i32) {
    %c0_i32 = arith.constant 0 : i32
    %c0_i32_0 = arith.constant 0 : i32
    %c0_i32_1 = arith.constant 0 : i32
    return %c0_i32, %c0_i32_0 : i32, i32
  }
  func.func @transform_2(%arg0: i32, %arg1: i32) -> (i32, i32) {
    %c0_i32 = arith.constant 0 : i32
    %c0_i32_0 = arith.constant 0 : i32
    %c0_i32_1 = arith.constant 0 : i32
    return %c0_i32, %c0_i32_0 : i32, i32
  }
  func.func @transform_3(%arg0: i32, %arg1: i32) -> (i32, i32, i32) {
    %c0_i32 = arith.constant 0 : i32
    %c0_i32_0 = arith.constant 0 : i32
    return %arg0, %c0_i32, %arg1 : i32, i32, i32
  }
}

module attributes {stable_mosaic.version = 11 : i64} {
  func.func @_dense_kernel(%arg0: i32, %arg1: i32, %arg2: memref<1x32x16xbf16, #tpu.memory_space<vmem>>, %arg3: memref<64x32xbf16, #tpu.memory_space<vmem>>, %arg4: memref<64x1xf32, #tpu.memory_space<vmem>>, %arg5: memref<1x64x16xbf16, #tpu.memory_space<vmem>>) attributes {dimension_semantics = [#tpu.dimension_semantics<parallel>, #tpu.dimension_semantics<parallel>], iteration_bounds = array<i64: 2, 1>, scalar_prefetch = 0 : i64, scratch_operands = 0 : i64, tpu.core_type = #tpu.core_type<tc>, window_params = [{transform_indices = @transform_0, window_bounds = array<i64: 1, 32, 16>}, {pipeline_mode = #tpu.pipeline_mode<synchronous>, transform_indices = @transform_1, window_bounds = array<i64: 64, 32>}, {pipeline_mode = #tpu.pipeline_mode<synchronous>, transform_indices = @transform_2, window_bounds = array<i64: 64, 1>}, {transform_indices = @transform_3, window_bounds = array<i64: 1, 64, 16>}]} {
    %c0 = arith.constant 0 : index
    %c0_0 = arith.constant 0 : index
    %c0_1 = arith.constant 0 : index
    %0 = vector.load %arg2[%c0, %c0_0, %c0_1] : memref<1x32x16xbf16, #tpu.memory_space<vmem>>, vector<1x32x16xbf16>
    %1 = vector.shape_cast %0 : vector<1x32x16xbf16> to vector<32x16xbf16>
    %c0_2 = arith.constant 0 : index
    %c0_3 = arith.constant 0 : index
    %2 = vector.load %arg3[%c0_2, %c0_3] : memref<64x32xbf16, #tpu.memory_space<vmem>>, vector<64x32xbf16>
    %c0_4 = arith.constant 0 : index
    %c0_5 = arith.constant 0 : index
    %3 = vector.load %arg4[%c0_4, %c0_5] : memref<64x1xf32, #tpu.memory_space<vmem>>, vector<64x1xf32>
    %cst = arith.constant dense<0.000000e+00> : vector<64x16xf32>
    %4 = tpu.matmul %2, %1, %cst {dimension_numbers = #tpu.dot_dimension_numbers<[1], [0], [0], [1], [0, 0, 1, 1], [], []>} : vector<64x32xbf16>, vector<32x16xbf16>, vector<64x16xf32> -> vector<64x16xf32>
    %5 = vector.broadcast %3 : vector<64x1xf32> to vector<64x16xf32>
    %6 = arith.addf %4, %5 : vector<64x16xf32>
    %cst_6 = arith.constant 0.000000e+00 : f32
    %7 = vector.broadcast %cst_6 : f32 to vector<64x16xf32>
    %8 = arith.maximumf %6, %7 : vector<64x16xf32>
    %9 = arith.truncf %8 : vector<64x16xf32> to vector<64x16xbf16>
    %c0_7 = arith.constant 0 : index
    %c0_8 = arith.constant 0 : index
    %c0_9 = arith.constant 0 : index
    %10 = vector.load %arg5[%c0_7, %c0_8, %c0_9] : memref<1x64x16xbf16, #tpu.memory_space<vmem>>, vector<1x64x16xbf16>
    %11 = vector.shape_cast %10 : vector<1x64x16xbf16> to vector<64x16xbf16>
    %12 = vector.shape_cast %9 : vector<64x16xbf16> to vector<1x64x16xbf16>
    tpu.vector_store %arg5[%c0_7, %c0_8, %c0_9], %12 {strides = array<i32>} : memref<1x64x16xbf16, #tpu.memory_space<vmem>>, vector<1x64x16xbf16>,
    return
  }
  func.func @transform_0(%arg0: i32, %arg1: i32) -> (i32, i32, i32) {
    %c0_i32 = arith.constant 0 : i32
    %c0_i32_0 = arith.constant 0 : i32
    return %arg0, %c0_i32, %arg1 : i32, i32, i32
  }
  func.func @transform_1(%arg0: i32, %arg1: i32) -> (i32, i32) {
    %c0_i32 = arith.constant 0 : i32
    %c0_i32_0 = arith.constant 0 : i32
    %c0_i32_1 = arith.constant 0 : i32
    return %c0_i32, %c0_i32_0 : i32, i32
  }
  func.func @transform_2(%arg0: i32, %arg1: i32) -> (i32, i32) {
    %c0_i32 = arith.constant 0 : i32
    %c0_i32_0 = arith.constant 0 : i32
    %c0_i32_1 = arith.constant 0 : i32
    return %c0_i32, %c0_i32_0 : i32, i32
  }
  func.func @transform_3(%arg0: i32, %arg1: i32) -> (i32, i32, i32) {
    %c0_i32 = arith.constant 0 : i32
    %c0_i32_0 = arith.constant 0 : i32
    return %arg0, %c0_i32, %arg1 : i32, i32, i32
  }
}

module attributes {stable_mosaic.version = 11 : i64} {
  func.func @_corr_fused_kernel(%arg0: i32, %arg1: i32, %arg2: memref<1x32x64xbf16, #tpu.memory_space<vmem>>, %arg3: memref<1x32x64xbf16, #tpu.memory_space<vmem>>, %arg4: memref<1x1x64xf32, #tpu.memory_space<vmem>>, %arg5: memref<1x1x64xf32, #tpu.memory_space<vmem>>) attributes {dimension_semantics = [#tpu.dimension_semantics<parallel>, #tpu.dimension_semantics<parallel>], iteration_bounds = array<i64: 2, 1>, scalar_prefetch = 0 : i64, scratch_operands = 0 : i64, tpu.core_type = #tpu.core_type<tc>, window_params = [{transform_indices = @transform_0, window_bounds = array<i64: 1, 32, 64>}, {transform_indices = @transform_1, window_bounds = array<i64: 1, 32, 64>}, {transform_indices = @transform_2, window_bounds = array<i64: 1, 1, 64>}, {transform_indices = @transform_3, window_bounds = array<i64: 1, 1, 64>}]} {
    %c0 = arith.constant 0 : index
    %c0_0 = arith.constant 0 : index
    %c0_1 = arith.constant 0 : index
    %0 = vector.load %arg2[%c0, %c0_0, %c0_1] : memref<1x32x64xbf16, #tpu.memory_space<vmem>>, vector<1x32x64xbf16>
    %1 = vector.shape_cast %0 : vector<1x32x64xbf16> to vector<32x64xbf16>
    %c0_2 = arith.constant 0 : index
    %c0_3 = arith.constant 0 : index
    %c0_4 = arith.constant 0 : index
    %2 = vector.load %arg3[%c0_2, %c0_3, %c0_4] : memref<1x32x64xbf16, #tpu.memory_space<vmem>>, vector<1x32x64xbf16>
    %3 = vector.shape_cast %2 : vector<1x32x64xbf16> to vector<32x64xbf16>
    %c0_5 = arith.constant 0 : index
    %c0_6 = arith.constant 0 : index
    %c0_7 = arith.constant 0 : index
    %4 = vector.load %arg4[%c0_5, %c0_6, %c0_7] : memref<1x1x64xf32, #tpu.memory_space<vmem>>, vector<1x1x64xf32>
    %5 = vector.shape_cast %4 : vector<1x1x64xf32> to vector<1x64xf32>
    %6 = arith.extf %3 : vector<32x64xbf16> to vector<32x64xf32>
    %7 = vector.broadcast %5 : vector<1x64xf32> to vector<32x64xf32>
    %8 = arith.mulf %6, %7 : vector<32x64xf32>
    %9 = arith.mulf %8, %8 : vector<32x64xf32>
    %cst = arith.constant dense<0.000000e+00> : vector<64xf32>
    %10 = vector.multi_reduction <add>, %9, %cst [0] : vector<32x64xf32> to vector<64xf32>
    %11 = vector.shape_cast %10 : vector<64xf32> to vector<1x64xf32>
    %12 = math.sqrt %11 : vector<1x64xf32>
    %cst_8 = arith.constant 9.99999974E-6 : f32
    %13 = vector.broadcast %cst_8 : f32 to vector<1x64xf32>
    %14 = arith.addf %12, %13 : vector<1x64xf32>
    %15 = tpu.reciprocal %14 {approx = true} : vector<1x64xf32> -> vector<1x64xf32>
    %16 = vector.broadcast %15 : vector<1x64xf32> to vector<32x64xf32>
    %17 = arith.mulf %8, %16 : vector<32x64xf32>
    %18 = arith.truncf %17 : vector<32x64xf32> to vector<32x64xbf16>
    %19 = arith.extf %1 : vector<32x64xbf16> to vector<32x64xf32>
    %20 = arith.mulf %19, %19 : vector<32x64xf32>
    %cst_9 = arith.constant dense<0.000000e+00> : vector<64xf32>
    %21 = vector.multi_reduction <add>, %20, %cst_9 [0] : vector<32x64xf32> to vector<64xf32>
    %22 = vector.shape_cast %21 : vector<64xf32> to vector<1x64xf32>
    %23 = math.sqrt %22 : vector<1x64xf32>
    %cst_10 = arith.constant 9.99999974E-6 : f32
    %24 = vector.broadcast %cst_10 : f32 to vector<1x64xf32>
    %25 = arith.addf %23, %24 : vector<1x64xf32>
    %26 = tpu.reciprocal %25 {approx = true} : vector<1x64xf32> -> vector<1x64xf32>
    %cst_11 = arith.constant dense<0.000000e+00> : vector<64x64xf32>
    %27 = tpu.matmul %18, %1, %cst_11 {dimension_numbers = #tpu.dot_dimension_numbers<[0], [0], [1], [1], [0, 1, 1, 1], [], []>} : vector<32x64xbf16>, vector<32x64xbf16>, vector<64x64xf32> -> vector<64x64xf32>
    %cst_12 = arith.constant 0.000000e+00 : f32
    %28 = vector.broadcast %cst_12 : f32 to vector<64x64xf32>
    %29 = arith.maximumf %27, %28 : vector<64x64xf32>
    %cst_13 = arith.constant dense<0.000000e+00> : vector<64xf32>
    %30 = vector.multi_reduction <add>, %29, %cst_13 [0] : vector<64x64xf32> to vector<64xf32>
    %31 = vector.shape_cast %30 : vector<64xf32> to vector<1x64xf32>
    %cst_14 = arith.constant 1.562500e-02 : f32
    %32 = vector.broadcast %cst_14 : f32 to vector<1x64xf32>
    %33 = arith.mulf %26, %32 : vector<1x64xf32>
    %34 = arith.mulf %31, %33 : vector<1x64xf32>
    %c0_15 = arith.constant 0 : index
    %c0_16 = arith.constant 0 : index
    %c0_17 = arith.constant 0 : index
    %35 = vector.load %arg5[%c0_15, %c0_16, %c0_17] : memref<1x1x64xf32, #tpu.memory_space<vmem>>, vector<1x1x64xf32>
    %36 = vector.shape_cast %35 : vector<1x1x64xf32> to vector<1x64xf32>
    %37 = vector.shape_cast %34 : vector<1x64xf32> to vector<1x1x64xf32>
    tpu.vector_store %arg5[%c0_15, %c0_16, %c0_17], %37 {strides = array<i32>} : memref<1x1x64xf32, #tpu.memory_space<vmem>>, vector<1x1x64xf32>,
    return
  }
  func.func @transform_0(%arg0: i32, %arg1: i32) -> (i32, i32, i32) {
    %c0_i32 = arith.constant 0 : i32
    %c0_i32_0 = arith.constant 0 : i32
    return %arg0, %c0_i32, %arg1 : i32, i32, i32
  }
  func.func @transform_1(%arg0: i32, %arg1: i32) -> (i32, i32, i32) {
    %c0_i32 = arith.constant 0 : i32
    %c0_i32_0 = arith.constant 0 : i32
    %c0_i32_1 = arith.constant 0 : i32
    return %arg0, %c0_i32, %c0_i32_0 : i32, i32, i32
  }
  func.func @transform_2(%arg0: i32, %arg1: i32) -> (i32, i32, i32) {
    %c0_i32 = arith.constant 0 : i32
    %c0_i32_0 = arith.constant 0 : i32
    %c0_i32_1 = arith.constant 0 : i32
    return %arg0, %c0_i32, %c0_i32_0 : i32, i32, i32
  }
  func.func @transform_3(%arg0: i32, %arg1: i32) -> (i32, i32, i32) {
    %c0_i32 = arith.constant 0 : i32
    %c0_i32_0 = arith.constant 0 : i32
    return %arg0, %c0_i32, %arg1 : i32, i32, i32
  }
}

module attributes {stable_mosaic.version = 11 : i64} {
  func.func @_dense_kernel(%arg0: i32, %arg1: i32, %arg2: memref<1x64x4xbf16, #tpu.memory_space<vmem>>, %arg3: memref<64x64xbf16, #tpu.memory_space<vmem>>, %arg4: memref<64x1xf32, #tpu.memory_space<vmem>>, %arg5: memref<1x64x4xbf16, #tpu.memory_space<vmem>>) attributes {dimension_semantics = [#tpu.dimension_semantics<parallel>, #tpu.dimension_semantics<parallel>], iteration_bounds = array<i64: 2, 1>, scalar_prefetch = 0 : i64, scratch_operands = 0 : i64, tpu.core_type = #tpu.core_type<tc>, window_params = [{transform_indices = @transform_0, window_bounds = array<i64: 1, 64, 4>}, {pipeline_mode = #tpu.pipeline_mode<synchronous>, transform_indices = @transform_1, window_bounds = array<i64: 64, 64>}, {pipeline_mode = #tpu.pipeline_mode<synchronous>, transform_indices = @transform_2, window_bounds = array<i64: 64, 1>}, {transform_indices = @transform_3, window_bounds = array<i64: 1, 64, 4>}]} {
    %c0 = arith.constant 0 : index
    %c0_0 = arith.constant 0 : index
    %c0_1 = arith.constant 0 : index
    %0 = vector.load %arg2[%c0, %c0_0, %c0_1] : memref<1x64x4xbf16, #tpu.memory_space<vmem>>, vector<1x64x4xbf16>
    %1 = vector.shape_cast %0 : vector<1x64x4xbf16> to vector<64x4xbf16>
    %c0_2 = arith.constant 0 : index
    %c0_3 = arith.constant 0 : index
    %2 = vector.load %arg3[%c0_2, %c0_3] : memref<64x64xbf16, #tpu.memory_space<vmem>>, vector<64x64xbf16>
    %c0_4 = arith.constant 0 : index
    %c0_5 = arith.constant 0 : index
    %3 = vector.load %arg4[%c0_4, %c0_5] : memref<64x1xf32, #tpu.memory_space<vmem>>, vector<64x1xf32>
    %cst = arith.constant dense<0.000000e+00> : vector<64x4xf32>
    %4 = tpu.matmul %2, %1, %cst {dimension_numbers = #tpu.dot_dimension_numbers<[1], [0], [0], [1], [0, 0, 1, 1], [], []>} : vector<64x64xbf16>, vector<64x4xbf16>, vector<64x4xf32> -> vector<64x4xf32>
    %5 = vector.broadcast %3 : vector<64x1xf32> to vector<64x4xf32>
    %6 = arith.addf %4, %5 : vector<64x4xf32>
    %cst_6 = arith.constant 0.000000e+00 : f32
    %7 = vector.broadcast %cst_6 : f32 to vector<64x4xf32>
    %8 = arith.maximumf %6, %7 : vector<64x4xf32>
    %9 = arith.truncf %8 : vector<64x4xf32> to vector<64x4xbf16>
    %c0_7 = arith.constant 0 : index
    %c0_8 = arith.constant 0 : index
    %c0_9 = arith.constant 0 : index
    %10 = vector.load %arg5[%c0_7, %c0_8, %c0_9] : memref<1x64x4xbf16, #tpu.memory_space<vmem>>, vector<1x64x4xbf16>
    %11 = vector.shape_cast %10 : vector<1x64x4xbf16> to vector<64x4xbf16>
    %12 = vector.shape_cast %9 : vector<64x4xbf16> to vector<1x64x4xbf16>
    tpu.vector_store %arg5[%c0_7, %c0_8, %c0_9], %12 {strides = array<i32>} : memref<1x64x4xbf16, #tpu.memory_space<vmem>>, vector<1x64x4xbf16>,
    return
  }
  func.func @transform_0(%arg0: i32, %arg1: i32) -> (i32, i32, i32) {
    %c0_i32 = arith.constant 0 : i32
    %c0_i32_0 = arith.constant 0 : i32
    return %arg0, %c0_i32, %arg1 : i32, i32, i32
  }
  func.func @transform_1(%arg0: i32, %arg1: i32) -> (i32, i32) {
    %c0_i32 = arith.constant 0 : i32
    %c0_i32_0 = arith.constant 0 : i32
    %c0_i32_1 = arith.constant 0 : i32
    return %c0_i32, %c0_i32_0 : i32, i32
  }
  func.func @transform_2(%arg0: i32, %arg1: i32) -> (i32, i32) {
    %c0_i32 = arith.constant 0 : i32
    %c0_i32_0 = arith.constant 0 : i32
    %c0_i32_1 = arith.constant 0 : i32
    return %c0_i32, %c0_i32_0 : i32, i32
  }
  func.func @transform_3(%arg0: i32, %arg1: i32) -> (i32, i32, i32) {
    %c0_i32 = arith.constant 0 : i32
    %c0_i32_0 = arith.constant 0 : i32
    return %arg0, %c0_i32, %arg1 : i32, i32, i32
  }
}

module attributes {stable_mosaic.version = 11 : i64} {
  func.func @_corr_fused_kernel(%arg0: i32, %arg1: i32, %arg2: memref<1x64x16xbf16, #tpu.memory_space<vmem>>, %arg3: memref<1x64x16xbf16, #tpu.memory_space<vmem>>, %arg4: memref<1x1x16xf32, #tpu.memory_space<vmem>>, %arg5: memref<1x1x16xf32, #tpu.memory_space<vmem>>) attributes {dimension_semantics = [#tpu.dimension_semantics<parallel>, #tpu.dimension_semantics<parallel>], iteration_bounds = array<i64: 2, 1>, scalar_prefetch = 0 : i64, scratch_operands = 0 : i64, tpu.core_type = #tpu.core_type<tc>, window_params = [{transform_indices = @transform_0, window_bounds = array<i64: 1, 64, 16>}, {transform_indices = @transform_1, window_bounds = array<i64: 1, 64, 16>}, {transform_indices = @transform_2, window_bounds = array<i64: 1, 1, 16>}, {transform_indices = @transform_3, window_bounds = array<i64: 1, 1, 16>}]} {
    %c0 = arith.constant 0 : index
    %c0_0 = arith.constant 0 : index
    %c0_1 = arith.constant 0 : index
    %0 = vector.load %arg2[%c0, %c0_0, %c0_1] : memref<1x64x16xbf16, #tpu.memory_space<vmem>>, vector<1x64x16xbf16>
    %1 = vector.shape_cast %0 : vector<1x64x16xbf16> to vector<64x16xbf16>
    %c0_2 = arith.constant 0 : index
    %c0_3 = arith.constant 0 : index
    %c0_4 = arith.constant 0 : index
    %2 = vector.load %arg3[%c0_2, %c0_3, %c0_4] : memref<1x64x16xbf16, #tpu.memory_space<vmem>>, vector<1x64x16xbf16>
    %3 = vector.shape_cast %2 : vector<1x64x16xbf16> to vector<64x16xbf16>
    %c0_5 = arith.constant 0 : index
    %c0_6 = arith.constant 0 : index
    %c0_7 = arith.constant 0 : index
    %4 = vector.load %arg4[%c0_5, %c0_6, %c0_7] : memref<1x1x16xf32, #tpu.memory_space<vmem>>, vector<1x1x16xf32>
    %5 = vector.shape_cast %4 : vector<1x1x16xf32> to vector<1x16xf32>
    %6 = arith.extf %3 : vector<64x16xbf16> to vector<64x16xf32>
    %7 = vector.broadcast %5 : vector<1x16xf32> to vector<64x16xf32>
    %8 = arith.mulf %6, %7 : vector<64x16xf32>
    %9 = arith.mulf %8, %8 : vector<64x16xf32>
    %cst = arith.constant dense<0.000000e+00> : vector<16xf32>
    %10 = vector.multi_reduction <add>, %9, %cst [0] : vector<64x16xf32> to vector<16xf32>
    %11 = vector.shape_cast %10 : vector<16xf32> to vector<1x16xf32>
    %12 = math.sqrt %11 : vector<1x16xf32>
    %cst_8 = arith.constant 9.99999974E-6 : f32
    %13 = vector.broadcast %cst_8 : f32 to vector<1x16xf32>
    %14 = arith.addf %12, %13 : vector<1x16xf32>
    %15 = tpu.reciprocal %14 {approx = true} : vector<1x16xf32> -> vector<1x16xf32>
    %16 = vector.broadcast %15 : vector<1x16xf32> to vector<64x16xf32>
    %17 = arith.mulf %8, %16 : vector<64x16xf32>
    %18 = arith.truncf %17 : vector<64x16xf32> to vector<64x16xbf16>
    %19 = arith.extf %1 : vector<64x16xbf16> to vector<64x16xf32>
    %20 = arith.mulf %19, %19 : vector<64x16xf32>
    %cst_9 = arith.constant dense<0.000000e+00> : vector<16xf32>
    %21 = vector.multi_reduction <add>, %20, %cst_9 [0] : vector<64x16xf32> to vector<16xf32>
    %22 = vector.shape_cast %21 : vector<16xf32> to vector<1x16xf32>
    %23 = math.sqrt %22 : vector<1x16xf32>
    %cst_10 = arith.constant 9.99999974E-6 : f32
    %24 = vector.broadcast %cst_10 : f32 to vector<1x16xf32>
    %25 = arith.addf %23, %24 : vector<1x16xf32>
    %26 = tpu.reciprocal %25 {approx = true} : vector<1x16xf32> -> vector<1x16xf32>
    %cst_11 = arith.constant dense<0.000000e+00> : vector<16x16xf32>
    %27 = tpu.matmul %18, %1, %cst_11 {dimension_numbers = #tpu.dot_dimension_numbers<[0], [0], [1], [1], [0, 1, 1, 1], [], []>} : vector<64x16xbf16>, vector<64x16xbf16>, vector<16x16xf32> -> vector<16x16xf32>
    %cst_12 = arith.constant 0.000000e+00 : f32
    %28 = vector.broadcast %cst_12 : f32 to vector<16x16xf32>
    %29 = arith.maximumf %27, %28 : vector<16x16xf32>
    %cst_13 = arith.constant dense<0.000000e+00> : vector<16xf32>
    %30 = vector.multi_reduction <add>, %29, %cst_13 [0] : vector<16x16xf32> to vector<16xf32>
    %31 = vector.shape_cast %30 : vector<16xf32> to vector<1x16xf32>
    %cst_14 = arith.constant 6.250000e-02 : f32
    %32 = vector.broadcast %cst_14 : f32 to vector<1x16xf32>
    %33 = arith.mulf %26, %32 : vector<1x16xf32>
    %34 = arith.mulf %31, %33 : vector<1x16xf32>
    %c0_15 = arith.constant 0 : index
    %c0_16 = arith.constant 0 : index
    %c0_17 = arith.constant 0 : index
    %35 = vector.load %arg5[%c0_15, %c0_16, %c0_17] : memref<1x1x16xf32, #tpu.memory_space<vmem>>, vector<1x1x16xf32>
    %36 = vector.shape_cast %35 : vector<1x1x16xf32> to vector<1x16xf32>
    %37 = vector.shape_cast %34 : vector<1x16xf32> to vector<1x1x16xf32>
    tpu.vector_store %arg5[%c0_15, %c0_16, %c0_17], %37 {strides = array<i32>} : memref<1x1x16xf32, #tpu.memory_space<vmem>>, vector<1x1x16xf32>,
    return
  }
  func.func @transform_0(%arg0: i32, %arg1: i32) -> (i32, i32, i32) {
    %c0_i32 = arith.constant 0 : i32
    %c0_i32_0 = arith.constant 0 : i32
    return %arg0, %c0_i32, %arg1 : i32, i32, i32
  }
  func.func @transform_1(%arg0: i32, %arg1: i32) -> (i32, i32, i32) {
    %c0_i32 = arith.constant 0 : i32
    %c0_i32_0 = arith.constant 0 : i32
    %c0_i32_1 = arith.constant 0 : i32
    return %arg0, %c0_i32, %c0_i32_0 : i32, i32, i32
  }
  func.func @transform_2(%arg0: i32, %arg1: i32) -> (i32, i32, i32) {
    %c0_i32 = arith.constant 0 : i32
    %c0_i32_0 = arith.constant 0 : i32
    %c0_i32_1 = arith.constant 0 : i32
    return %arg0, %c0_i32, %c0_i32_0 : i32, i32, i32
  }
  func.func @transform_3(%arg0: i32, %arg1: i32) -> (i32, i32, i32) {
    %c0_i32 = arith.constant 0 : i32
    %c0_i32_0 = arith.constant 0 : i32
    return %arg0, %c0_i32, %arg1 : i32, i32, i32
  }
}

module attributes {stable_mosaic.version = 11 : i64} {
  func.func @_corr_fused_kernel(%arg0: i32, %arg1: i32, %arg2: memref<1x64x4xbf16, #tpu.memory_space<vmem>>, %arg3: memref<1x64x4xbf16, #tpu.memory_space<vmem>>, %arg4: memref<1x1x4xf32, #tpu.memory_space<vmem>>, %arg5: memref<1x1x4xf32, #tpu.memory_space<vmem>>) attributes {dimension_semantics = [#tpu.dimension_semantics<parallel>, #tpu.dimension_semantics<parallel>], iteration_bounds = array<i64: 2, 1>, scalar_prefetch = 0 : i64, scratch_operands = 0 : i64, tpu.core_type = #tpu.core_type<tc>, window_params = [{transform_indices = @transform_0, window_bounds = array<i64: 1, 64, 4>}, {transform_indices = @transform_1, window_bounds = array<i64: 1, 64, 4>}, {transform_indices = @transform_2, window_bounds = array<i64: 1, 1, 4>}, {transform_indices = @transform_3, window_bounds = array<i64: 1, 1, 4>}]} {
    %c0 = arith.constant 0 : index
    %c0_0 = arith.constant 0 : index
    %c0_1 = arith.constant 0 : index
    %0 = vector.load %arg2[%c0, %c0_0, %c0_1] : memref<1x64x4xbf16, #tpu.memory_space<vmem>>, vector<1x64x4xbf16>
    %1 = vector.shape_cast %0 : vector<1x64x4xbf16> to vector<64x4xbf16>
    %c0_2 = arith.constant 0 : index
    %c0_3 = arith.constant 0 : index
    %c0_4 = arith.constant 0 : index
    %2 = vector.load %arg3[%c0_2, %c0_3, %c0_4] : memref<1x64x4xbf16, #tpu.memory_space<vmem>>, vector<1x64x4xbf16>
    %3 = vector.shape_cast %2 : vector<1x64x4xbf16> to vector<64x4xbf16>
    %c0_5 = arith.constant 0 : index
    %c0_6 = arith.constant 0 : index
    %c0_7 = arith.constant 0 : index
    %4 = vector.load %arg4[%c0_5, %c0_6, %c0_7] : memref<1x1x4xf32, #tpu.memory_space<vmem>>, vector<1x1x4xf32>
    %5 = vector.shape_cast %4 : vector<1x1x4xf32> to vector<1x4xf32>
    %6 = arith.extf %3 : vector<64x4xbf16> to vector<64x4xf32>
    %7 = vector.broadcast %5 : vector<1x4xf32> to vector<64x4xf32>
    %8 = arith.mulf %6, %7 : vector<64x4xf32>
    %9 = arith.mulf %8, %8 : vector<64x4xf32>
    %cst = arith.constant dense<0.000000e+00> : vector<4xf32>
    %10 = vector.multi_reduction <add>, %9, %cst [0] : vector<64x4xf32> to vector<4xf32>
    %11 = vector.shape_cast %10 : vector<4xf32> to vector<1x4xf32>
    %12 = math.sqrt %11 : vector<1x4xf32>
    %cst_8 = arith.constant 9.99999974E-6 : f32
    %13 = vector.broadcast %cst_8 : f32 to vector<1x4xf32>
    %14 = arith.addf %12, %13 : vector<1x4xf32>
    %15 = tpu.reciprocal %14 {approx = true} : vector<1x4xf32> -> vector<1x4xf32>
    %16 = vector.broadcast %15 : vector<1x4xf32> to vector<64x4xf32>
    %17 = arith.mulf %8, %16 : vector<64x4xf32>
    %18 = arith.truncf %17 : vector<64x4xf32> to vector<64x4xbf16>
    %19 = arith.extf %1 : vector<64x4xbf16> to vector<64x4xf32>
    %20 = arith.mulf %19, %19 : vector<64x4xf32>
    %cst_9 = arith.constant dense<0.000000e+00> : vector<4xf32>
    %21 = vector.multi_reduction <add>, %20, %cst_9 [0] : vector<64x4xf32> to vector<4xf32>
    %22 = vector.shape_cast %21 : vector<4xf32> to vector<1x4xf32>
    %23 = math.sqrt %22 : vector<1x4xf32>
    %cst_10 = arith.constant 9.99999974E-6 : f32
    %24 = vector.broadcast %cst_10 : f32 to vector<1x4xf32>
    %25 = arith.addf %23, %24 : vector<1x4xf32>
    %26 = tpu.reciprocal %25 {approx = true} : vector<1x4xf32> -> vector<1x4xf32>
    %cst_11 = arith.constant dense<0.000000e+00> : vector<4x4xf32>
    %27 = tpu.matmul %18, %1, %cst_11 {dimension_numbers = #tpu.dot_dimension_numbers<[0], [0], [1], [1], [0, 1, 1, 1], [], []>} : vector<64x4xbf16>, vector<64x4xbf16>, vector<4x4xf32> -> vector<4x4xf32>
    %cst_12 = arith.constant 0.000000e+00 : f32
    %28 = vector.broadcast %cst_12 : f32 to vector<4x4xf32>
    %29 = arith.maximumf %27, %28 : vector<4x4xf32>
    %cst_13 = arith.constant dense<0.000000e+00> : vector<4xf32>
    %30 = vector.multi_reduction <add>, %29, %cst_13 [0] : vector<4x4xf32> to vector<4xf32>
    %31 = vector.shape_cast %30 : vector<4xf32> to vector<1x4xf32>
    %cst_14 = arith.constant 2.500000e-01 : f32
    %32 = vector.broadcast %cst_14 : f32 to vector<1x4xf32>
    %33 = arith.mulf %26, %32 : vector<1x4xf32>
    %34 = arith.mulf %31, %33 : vector<1x4xf32>
    %c0_15 = arith.constant 0 : index
    %c0_16 = arith.constant 0 : index
    %c0_17 = arith.constant 0 : index
    %35 = vector.load %arg5[%c0_15, %c0_16, %c0_17] : memref<1x1x4xf32, #tpu.memory_space<vmem>>, vector<1x1x4xf32>
    %36 = vector.shape_cast %35 : vector<1x1x4xf32> to vector<1x4xf32>
    %37 = vector.shape_cast %34 : vector<1x4xf32> to vector<1x1x4xf32>
    tpu.vector_store %arg5[%c0_15, %c0_16, %c0_17], %37 {strides = array<i32>} : memref<1x1x4xf32, #tpu.memory_space<vmem>>, vector<1x1x4xf32>,
    return
  }
  func.func @transform_0(%arg0: i32, %arg1: i32) -> (i32, i32, i32) {
    %c0_i32 = arith.constant 0 : i32
    %c0_i32_0 = arith.constant 0 : i32
    return %arg0, %c0_i32, %arg1 : i32, i32, i32
  }
  func.func @transform_1(%arg0: i32, %arg1: i32) -> (i32, i32, i32) {
    %c0_i32 = arith.constant 0 : i32
    %c0_i32_0 = arith.constant 0 : i32
    %c0_i32_1 = arith.constant 0 : i32
    return %arg0, %c0_i32, %c0_i32_0 : i32, i32, i32
  }
  func.func @transform_2(%arg0: i32, %arg1: i32) -> (i32, i32, i32) {
    %c0_i32 = arith.constant 0 : i32
    %c0_i32_0 = arith.constant 0 : i32
    %c0_i32_1 = arith.constant 0 : i32
    return %arg0, %c0_i32, %c0_i32_0 : i32, i32, i32
  }
  func.func @transform_3(%arg0: i32, %arg1: i32) -> (i32, i32, i32) {
    %c0_i32 = arith.constant 0 : i32
    %c0_i32_0 = arith.constant 0 : i32
    return %arg0, %c0_i32, %arg1 : i32, i32, i32
  }
}

module attributes {stable_mosaic.version = 11 : i64} {
  func.func @_hpn_head_kernel(%arg0: i32, %arg1: i32, %arg2: memref<1x3x64xf32, #tpu.memory_space<vmem>>, %arg3: memref<16x3xf32, #tpu.memory_space<vmem>>, %arg4: memref<16x1xf32, #tpu.memory_space<vmem>>, %arg5: memref<2x16xf32, #tpu.memory_space<vmem>>, %arg6: memref<2x1xf32, #tpu.memory_space<vmem>>, %arg7: memref<1x2x64xf32, #tpu.memory_space<vmem>>) attributes {dimension_semantics = [#tpu.dimension_semantics<parallel>, #tpu.dimension_semantics<parallel>], iteration_bounds = array<i64: 2, 1>, scalar_prefetch = 0 : i64, scratch_operands = 0 : i64, tpu.core_type = #tpu.core_type<tc>, window_params = [{transform_indices = @transform_0, window_bounds = array<i64: 1, 3, 64>}, {pipeline_mode = #tpu.pipeline_mode<synchronous>, transform_indices = @transform_1, window_bounds = array<i64: 16, 3>}, {pipeline_mode = #tpu.pipeline_mode<synchronous>, transform_indices = @transform_2, window_bounds = array<i64: 16, 1>}, {pipeline_mode = #tpu.pipeline_mode<synchronous>, transform_indices = @transform_3, window_bounds = array<i64: 2, 16>}, {pipeline_mode = #tpu.pipeline_mode<synchronous>, transform_indices = @transform_4, window_bounds = array<i64: 2, 1>}, {transform_indices = @transform_5, window_bounds = array<i64: 1, 2, 64>}]} {
    %c0 = arith.constant 0 : index
    %c0_0 = arith.constant 0 : index
    %c0_1 = arith.constant 0 : index
    %0 = vector.load %arg2[%c0, %c0_0, %c0_1] : memref<1x3x64xf32, #tpu.memory_space<vmem>>, vector<1x3x64xf32>
    %1 = vector.shape_cast %0 : vector<1x3x64xf32> to vector<3x64xf32>
    %c0_2 = arith.constant 0 : index
    %c0_3 = arith.constant 0 : index
    %2 = vector.load %arg3[%c0_2, %c0_3] : memref<16x3xf32, #tpu.memory_space<vmem>>, vector<16x3xf32>
    %cst = arith.constant 0.000000e+00 : f32
    %3 = vector.broadcast %cst : f32 to vector<16x64xf32>
    %4 = vector.extract_strided_slice %2 {offsets = [0, 0], sizes = [16, 1], strides = [1, 1]} : vector<16x3xf32> to vector<16x1xf32>
    %5 = vector.extract_strided_slice %1 {offsets = [0, 0], sizes = [1, 64], strides = [1, 1]} : vector<3x64xf32> to vector<1x64xf32>
    %6 = vector.broadcast %4 : vector<16x1xf32> to vector<16x64xf32>
    %7 = vector.broadcast %5 : vector<1x64xf32> to vector<16x64xf32>
    %8 = arith.mulf %6, %7 : vector<16x64xf32>
    %9 = arith.addf %3, %8 : vector<16x64xf32>
    %10 = vector.extract_strided_slice %2 {offsets = [0, 1], sizes = [16, 1], strides = [1, 1]} : vector<16x3xf32> to vector<16x1xf32>
    %11 = vector.extract_strided_slice %1 {offsets = [1, 0], sizes = [1, 64], strides = [1, 1]} : vector<3x64xf32> to vector<1x64xf32>
    %12 = vector.broadcast %10 : vector<16x1xf32> to vector<16x64xf32>
    %13 = vector.broadcast %11 : vector<1x64xf32> to vector<16x64xf32>
    %14 = arith.mulf %12, %13 : vector<16x64xf32>
    %15 = arith.addf %9, %14 : vector<16x64xf32>
    %16 = vector.extract_strided_slice %2 {offsets = [0, 2], sizes = [16, 1], strides = [1, 1]} : vector<16x3xf32> to vector<16x1xf32>
    %17 = vector.extract_strided_slice %1 {offsets = [2, 0], sizes = [1, 64], strides = [1, 1]} : vector<3x64xf32> to vector<1x64xf32>
    %18 = vector.broadcast %16 : vector<16x1xf32> to vector<16x64xf32>
    %19 = vector.broadcast %17 : vector<1x64xf32> to vector<16x64xf32>
    %20 = arith.mulf %18, %19 : vector<16x64xf32>
    %21 = arith.addf %15, %20 : vector<16x64xf32>
    %c0_4 = arith.constant 0 : index
    %c0_5 = arith.constant 0 : index
    %22 = vector.load %arg4[%c0_4, %c0_5] : memref<16x1xf32, #tpu.memory_space<vmem>>, vector<16x1xf32>
    %23 = vector.broadcast %22 : vector<16x1xf32> to vector<16x64xf32>
    %24 = arith.addf %21, %23 : vector<16x64xf32>
    %cst_6 = arith.constant 0.000000e+00 : f32
    %25 = vector.broadcast %cst_6 : f32 to vector<16x64xf32>
    %26 = arith.maximumf %24, %25 : vector<16x64xf32>
    %c0_7 = arith.constant 0 : index
    %c0_8 = arith.constant 0 : index
    %27 = vector.load %arg5[%c0_7, %c0_8] : memref<2x16xf32, #tpu.memory_space<vmem>>, vector<2x16xf32>
    %cst_9 = arith.constant 0.000000e+00 : f32
    %28 = vector.broadcast %cst_9 : f32 to vector<2x64xf32>
    %29 = vector.extract_strided_slice %27 {offsets = [0, 0], sizes = [2, 1], strides = [1, 1]} : vector<2x16xf32> to vector<2x1xf32>
    %30 = vector.extract_strided_slice %26 {offsets = [0, 0], sizes = [1, 64], strides = [1, 1]} : vector<16x64xf32> to vector<1x64xf32>
    %31 = vector.broadcast %29 : vector<2x1xf32> to vector<2x64xf32>
    %32 = vector.broadcast %30 : vector<1x64xf32> to vector<2x64xf32>
    %33 = arith.mulf %31, %32 : vector<2x64xf32>
    %34 = arith.addf %28, %33 : vector<2x64xf32>
    %35 = vector.extract_strided_slice %27 {offsets = [0, 1], sizes = [2, 1], strides = [1, 1]} : vector<2x16xf32> to vector<2x1xf32>
    %36 = vector.extract_strided_slice %26 {offsets = [1, 0], sizes = [1, 64], strides = [1, 1]} : vector<16x64xf32> to vector<1x64xf32>
    %37 = vector.broadcast %35 : vector<2x1xf32> to vector<2x64xf32>
    %38 = vector.broadcast %36 : vector<1x64xf32> to vector<2x64xf32>
    %39 = arith.mulf %37, %38 : vector<2x64xf32>
    %40 = arith.addf %34, %39 : vector<2x64xf32>
    %41 = vector.extract_strided_slice %27 {offsets = [0, 2], sizes = [2, 1], strides = [1, 1]} : vector<2x16xf32> to vector<2x1xf32>
    %42 = vector.extract_strided_slice %26 {offsets = [2, 0], sizes = [1, 64], strides = [1, 1]} : vector<16x64xf32> to vector<1x64xf32>
    %43 = vector.broadcast %41 : vector<2x1xf32> to vector<2x64xf32>
    %44 = vector.broadcast %42 : vector<1x64xf32> to vector<2x64xf32>
    %45 = arith.mulf %43, %44 : vector<2x64xf32>
    %46 = arith.addf %40, %45 : vector<2x64xf32>
    %47 = vector.extract_strided_slice %27 {offsets = [0, 3], sizes = [2, 1], strides = [1, 1]} : vector<2x16xf32> to vector<2x1xf32>
    %48 = vector.extract_strided_slice %26 {offsets = [3, 0], sizes = [1, 64], strides = [1, 1]} : vector<16x64xf32> to vector<1x64xf32>
    %49 = vector.broadcast %47 : vector<2x1xf32> to vector<2x64xf32>
    %50 = vector.broadcast %48 : vector<1x64xf32> to vector<2x64xf32>
    %51 = arith.mulf %49, %50 : vector<2x64xf32>
    %52 = arith.addf %46, %51 : vector<2x64xf32>
    %53 = vector.extract_strided_slice %27 {offsets = [0, 4], sizes = [2, 1], strides = [1, 1]} : vector<2x16xf32> to vector<2x1xf32>
    %54 = vector.extract_strided_slice %26 {offsets = [4, 0], sizes = [1, 64], strides = [1, 1]} : vector<16x64xf32> to vector<1x64xf32>
    %55 = vector.broadcast %53 : vector<2x1xf32> to vector<2x64xf32>
    %56 = vector.broadcast %54 : vector<1x64xf32> to vector<2x64xf32>
    %57 = arith.mulf %55, %56 : vector<2x64xf32>
    %58 = arith.addf %52, %57 : vector<2x64xf32>
    %59 = vector.extract_strided_slice %27 {offsets = [0, 5], sizes = [2, 1], strides = [1, 1]} : vector<2x16xf32> to vector<2x1xf32>
    %60 = vector.extract_strided_slice %26 {offsets = [5, 0], sizes = [1, 64], strides = [1, 1]} : vector<16x64xf32> to vector<1x64xf32>
    %61 = vector.broadcast %59 : vector<2x1xf32> to vector<2x64xf32>
    %62 = vector.broadcast %60 : vector<1x64xf32> to vector<2x64xf32>
    %63 = arith.mulf %61, %62 : vector<2x64xf32>
    %64 = arith.addf %58, %63 : vector<2x64xf32>
    %65 = vector.extract_strided_slice %27 {offsets = [0, 6], sizes = [2, 1], strides = [1, 1]} : vector<2x16xf32> to vector<2x1xf32>
    %66 = vector.extract_strided_slice %26 {offsets = [6, 0], sizes = [1, 64], strides = [1, 1]} : vector<16x64xf32> to vector<1x64xf32>
    %67 = vector.broadcast %65 : vector<2x1xf32> to vector<2x64xf32>
    %68 = vector.broadcast %66 : vector<1x64xf32> to vector<2x64xf32>
    %69 = arith.mulf %67, %68 : vector<2x64xf32>
    %70 = arith.addf %64, %69 : vector<2x64xf32>
    %71 = vector.extract_strided_slice %27 {offsets = [0, 7], sizes = [2, 1], strides = [1, 1]} : vector<2x16xf32> to vector<2x1xf32>
    %72 = vector.extract_strided_slice %26 {offsets = [7, 0], sizes = [1, 64], strides = [1, 1]} : vector<16x64xf32> to vector<1x64xf32>
    %73 = vector.broadcast %71 : vector<2x1xf32> to vector<2x64xf32>
    %74 = vector.broadcast %72 : vector<1x64xf32> to vector<2x64xf32>
    %75 = arith.mulf %73, %74 : vector<2x64xf32>
    %76 = arith.addf %70, %75 : vector<2x64xf32>
    %77 = vector.extract_strided_slice %27 {offsets = [0, 8], sizes = [2, 1], strides = [1, 1]} : vector<2x16xf32> to vector<2x1xf32>
    %78 = vector.extract_strided_slice %26 {offsets = [8, 0], sizes = [1, 64], strides = [1, 1]} : vector<16x64xf32> to vector<1x64xf32>
    %79 = vector.broadcast %77 : vector<2x1xf32> to vector<2x64xf32>
    %80 = vector.broadcast %78 : vector<1x64xf32> to vector<2x64xf32>
    %81 = arith.mulf %79, %80 : vector<2x64xf32>
    %82 = arith.addf %76, %81 : vector<2x64xf32>
    %83 = vector.extract_strided_slice %27 {offsets = [0, 9], sizes = [2, 1], strides = [1, 1]} : vector<2x16xf32> to vector<2x1xf32>
    %84 = vector.extract_strided_slice %26 {offsets = [9, 0], sizes = [1, 64], strides = [1, 1]} : vector<16x64xf32> to vector<1x64xf32>
    %85 = vector.broadcast %83 : vector<2x1xf32> to vector<2x64xf32>
    %86 = vector.broadcast %84 : vector<1x64xf32> to vector<2x64xf32>
    %87 = arith.mulf %85, %86 : vector<2x64xf32>
    %88 = arith.addf %82, %87 : vector<2x64xf32>
    %89 = vector.extract_strided_slice %27 {offsets = [0, 10], sizes = [2, 1], strides = [1, 1]} : vector<2x16xf32> to vector<2x1xf32>
    %90 = vector.extract_strided_slice %26 {offsets = [10, 0], sizes = [1, 64], strides = [1, 1]} : vector<16x64xf32> to vector<1x64xf32>
    %91 = vector.broadcast %89 : vector<2x1xf32> to vector<2x64xf32>
    %92 = vector.broadcast %90 : vector<1x64xf32> to vector<2x64xf32>
    %93 = arith.mulf %91, %92 : vector<2x64xf32>
    %94 = arith.addf %88, %93 : vector<2x64xf32>
    %95 = vector.extract_strided_slice %27 {offsets = [0, 11], sizes = [2, 1], strides = [1, 1]} : vector<2x16xf32> to vector<2x1xf32>
    %96 = vector.extract_strided_slice %26 {offsets = [11, 0], sizes = [1, 64], strides = [1, 1]} : vector<16x64xf32> to vector<1x64xf32>
    %97 = vector.broadcast %95 : vector<2x1xf32> to vector<2x64xf32>
    %98 = vector.broadcast %96 : vector<1x64xf32> to vector<2x64xf32>
    %99 = arith.mulf %97, %98 : vector<2x64xf32>
    %100 = arith.addf %94, %99 : vector<2x64xf32>
    %101 = vector.extract_strided_slice %27 {offsets = [0, 12], sizes = [2, 1], strides = [1, 1]} : vector<2x16xf32> to vector<2x1xf32>
    %102 = vector.extract_strided_slice %26 {offsets = [12, 0], sizes = [1, 64], strides = [1, 1]} : vector<16x64xf32> to vector<1x64xf32>
    %103 = vector.broadcast %101 : vector<2x1xf32> to vector<2x64xf32>
    %104 = vector.broadcast %102 : vector<1x64xf32> to vector<2x64xf32>
    %105 = arith.mulf %103, %104 : vector<2x64xf32>
    %106 = arith.addf %100, %105 : vector<2x64xf32>
    %107 = vector.extract_strided_slice %27 {offsets = [0, 13], sizes = [2, 1], strides = [1, 1]} : vector<2x16xf32> to vector<2x1xf32>
    %108 = vector.extract_strided_slice %26 {offsets = [13, 0], sizes = [1, 64], strides = [1, 1]} : vector<16x64xf32> to vector<1x64xf32>
    %109 = vector.broadcast %107 : vector<2x1xf32> to vector<2x64xf32>
    %110 = vector.broadcast %108 : vector<1x64xf32> to vector<2x64xf32>
    %111 = arith.mulf %109, %110 : vector<2x64xf32>
    %112 = arith.addf %106, %111 : vector<2x64xf32>
    %113 = vector.extract_strided_slice %27 {offsets = [0, 14], sizes = [2, 1], strides = [1, 1]} : vector<2x16xf32> to vector<2x1xf32>
    %114 = vector.extract_strided_slice %26 {offsets = [14, 0], sizes = [1, 64], strides = [1, 1]} : vector<16x64xf32> to vector<1x64xf32>
    %115 = vector.broadcast %113 : vector<2x1xf32> to vector<2x64xf32>
    %116 = vector.broadcast %114 : vector<1x64xf32> to vector<2x64xf32>
    %117 = arith.mulf %115, %116 : vector<2x64xf32>
    %118 = arith.addf %112, %117 : vector<2x64xf32>
    %119 = vector.extract_strided_slice %27 {offsets = [0, 15], sizes = [2, 1], strides = [1, 1]} : vector<2x16xf32> to vector<2x1xf32>
    %120 = vector.extract_strided_slice %26 {offsets = [15, 0], sizes = [1, 64], strides = [1, 1]} : vector<16x64xf32> to vector<1x64xf32>
    %121 = vector.broadcast %119 : vector<2x1xf32> to vector<2x64xf32>
    %122 = vector.broadcast %120 : vector<1x64xf32> to vector<2x64xf32>
    %123 = arith.mulf %121, %122 : vector<2x64xf32>
    %124 = arith.addf %118, %123 : vector<2x64xf32>
    %c0_10 = arith.constant 0 : index
    %c0_11 = arith.constant 0 : index
    %125 = vector.load %arg6[%c0_10, %c0_11] : memref<2x1xf32, #tpu.memory_space<vmem>>, vector<2x1xf32>
    %126 = vector.broadcast %125 : vector<2x1xf32> to vector<2x64xf32>
    %127 = arith.addf %124, %126 : vector<2x64xf32>
    %c0_12 = arith.constant 0 : index
    %c0_13 = arith.constant 0 : index
    %c0_14 = arith.constant 0 : index
    %128 = vector.load %arg7[%c0_12, %c0_13, %c0_14] : memref<1x2x64xf32, #tpu.memory_space<vmem>>, vector<1x2x64xf32>
    %129 = vector.shape_cast %128 : vector<1x2x64xf32> to vector<2x64xf32>
    %130 = vector.shape_cast %127 : vector<2x64xf32> to vector<1x2x64xf32>
    tpu.vector_store %arg7[%c0_12, %c0_13, %c0_14], %130 {strides = array<i32>} : memref<1x2x64xf32, #tpu.memory_space<vmem>>, vector<1x2x64xf32>,
    return
  }
  func.func @transform_0(%arg0: i32, %arg1: i32) -> (i32, i32, i32) {
    %c0_i32 = arith.constant 0 : i32
    %c0_i32_0 = arith.constant 0 : i32
    return %arg0, %c0_i32, %arg1 : i32, i32, i32
  }
  func.func @transform_1(%arg0: i32, %arg1: i32) -> (i32, i32) {
    %c0_i32 = arith.constant 0 : i32
    %c0_i32_0 = arith.constant 0 : i32
    %c0_i32_1 = arith.constant 0 : i32
    return %c0_i32, %c0_i32_0 : i32, i32
  }
  func.func @transform_2(%arg0: i32, %arg1: i32) -> (i32, i32) {
    %c0_i32 = arith.constant 0 : i32
    %c0_i32_0 = arith.constant 0 : i32
    %c0_i32_1 = arith.constant 0 : i32
    return %c0_i32, %c0_i32_0 : i32, i32
  }
  func.func @transform_3(%arg0: i32, %arg1: i32) -> (i32, i32) {
    %c0_i32 = arith.constant 0 : i32
    %c0_i32_0 = arith.constant 0 : i32
    %c0_i32_1 = arith.constant 0 : i32
    return %c0_i32, %c0_i32_0 : i32, i32
  }
  func.func @transform_4(%arg0: i32, %arg1: i32) -> (i32, i32) {
    %c0_i32 = arith.constant 0 : i32
    %c0_i32_0 = arith.constant 0 : i32
    %c0_i32_1 = arith.constant 0 : i32
    return %c0_i32, %c0_i32_0 : i32, i32
  }
  func.func @transform_5(%arg0: i32, %arg1: i32) -> (i32, i32, i32) {
    %c0_i32 = arith.constant 0 : i32
    %c0_i32_0 = arith.constant 0 : i32
    return %arg0, %c0_i32, %arg1 : i32, i32, i32
  }
}

module attributes {stable_mosaic.version = 11 : i64} {
  func.func @_overlap_kernel(%arg0: i32, %arg1: i32, %arg2: memref<1x3x256xf32, #tpu.memory_space<vmem>>, %arg3: memref<1x3x256xf32, #tpu.memory_space<vmem>>, %arg4: memref<1x1x256xf32, #tpu.memory_space<vmem>>, %arg5: memref<1x1x256xf32, #tpu.memory_space<vmem>>, %arg6: memref<1x3x256xf32, #tpu.memory_space<vmem>>) attributes {dimension_semantics = [#tpu.dimension_semantics<parallel>, #tpu.dimension_semantics<parallel>], iteration_bounds = array<i64: 2, 1>, scalar_prefetch = 0 : i64, scratch_operands = 0 : i64, tpu.core_type = #tpu.core_type<tc>, window_params = [{transform_indices = @transform_0, window_bounds = array<i64: 1, 3, 256>}, {transform_indices = @transform_1, window_bounds = array<i64: 1, 3, 256>}, {transform_indices = @transform_2, window_bounds = array<i64: 1, 1, 256>}, {transform_indices = @transform_3, window_bounds = array<i64: 1, 1, 256>}, {transform_indices = @transform_4, window_bounds = array<i64: 1, 3, 256>}]} {
    %c0 = arith.constant 0 : index
    %c0_0 = arith.constant 0 : index
    %c0_1 = arith.constant 0 : index
    %0 = vector.load %arg2[%c0, %c0_0, %c0_1] : memref<1x3x256xf32, #tpu.memory_space<vmem>>, vector<1x3x256xf32>
    %1 = vector.shape_cast %0 : vector<1x3x256xf32> to vector<3x256xf32>
    %c0_2 = arith.constant 0 : index
    %c0_3 = arith.constant 0 : index
    %c0_4 = arith.constant 0 : index
    %2 = vector.load %arg3[%c0_2, %c0_3, %c0_4] : memref<1x3x256xf32, #tpu.memory_space<vmem>>, vector<1x3x256xf32>
    %3 = vector.shape_cast %2 : vector<1x3x256xf32> to vector<3x256xf32>
    %c0_5 = arith.constant 0 : index
    %c0_6 = arith.constant 0 : index
    %c0_7 = arith.constant 0 : index
    %4 = vector.load %arg4[%c0_5, %c0_6, %c0_7] : memref<1x1x256xf32, #tpu.memory_space<vmem>>, vector<1x1x256xf32>
    %5 = vector.shape_cast %4 : vector<1x1x256xf32> to vector<1x256xf32>
    %c0_8 = arith.constant 0 : index
    %c0_9 = arith.constant 0 : index
    %c0_10 = arith.constant 0 : index
    %6 = vector.load %arg5[%c0_8, %c0_9, %c0_10] : memref<1x1x256xf32, #tpu.memory_space<vmem>>, vector<1x1x256xf32>
    %7 = vector.shape_cast %6 : vector<1x1x256xf32> to vector<1x256xf32>
    %8 = vector.broadcast %5 : vector<1x256xf32> to vector<3x256xf32>
    %9 = arith.mulf %8, %3 : vector<3x256xf32>
    %cst = arith.constant 0.000000e+00 : f32
    %10 = vector.broadcast %cst : f32 to vector<3x256xf32>
    %11 = arith.cmpf one, %9, %10 : vector<3x256xf32>
    %cst_11 = arith.constant 0.000000e+00 : f32
    %12 = vector.broadcast %cst_11 : f32 to vector<3x256xf32>
    %13 = arith.select %11, %12, %1 : vector<3x256xi1>, vector<3x256xf32>
    %14 = arith.addf %13, %9 : vector<3x256xf32>
    %15 = vector.broadcast %7 : vector<1x256xf32> to vector<3x256xf32>
    %16 = arith.mulf %15, %1 : vector<3x256xf32>
    %cst_12 = arith.constant 0.000000e+00 : f32
    %17 = vector.broadcast %cst_12 : f32 to vector<3x256xf32>
    %18 = arith.cmpf one, %16, %17 : vector<3x256xf32>
    %cst_13 = arith.constant 0.000000e+00 : f32
    %19 = vector.broadcast %cst_13 : f32 to vector<3x256xf32>
    %20 = arith.select %18, %19, %14 : vector<3x256xi1>, vector<3x256xf32>
    %21 = arith.addf %20, %16 : vector<3x256xf32>
    %c0_14 = arith.constant 0 : index
    %c0_15 = arith.constant 0 : index
    %c0_16 = arith.constant 0 : index
    %22 = vector.load %arg6[%c0_14, %c0_15, %c0_16] : memref<1x3x256xf32, #tpu.memory_space<vmem>>, vector<1x3x256xf32>
    %23 = vector.shape_cast %22 : vector<1x3x256xf32> to vector<3x256xf32>
    %24 = vector.shape_cast %21 : vector<3x256xf32> to vector<1x3x256xf32>
    tpu.vector_store %arg6[%c0_14, %c0_15, %c0_16], %24 {strides = array<i32>} : memref<1x3x256xf32, #tpu.memory_space<vmem>>, vector<1x3x256xf32>,
    return
  }
  func.func @transform_0(%arg0: i32, %arg1: i32) -> (i32, i32, i32) {
    %c0_i32 = arith.constant 0 : i32
    %c0_i32_0 = arith.constant 0 : i32
    return %arg0, %c0_i32, %arg1 : i32, i32, i32
  }
  func.func @transform_1(%arg0: i32, %arg1: i32) -> (i32, i32, i32) {
    %c0_i32 = arith.constant 0 : i32
    %c0_i32_0 = arith.constant 0 : i32
    return %arg0, %c0_i32, %arg1 : i32, i32, i32
  }
  func.func @transform_2(%arg0: i32, %arg1: i32) -> (i32, i32, i32) {
    %c0_i32 = arith.constant 0 : i32
    %c0_i32_0 = arith.constant 0 : i32
    return %arg0, %c0_i32, %arg1 : i32, i32, i32
  }
  func.func @transform_3(%arg0: i32, %arg1: i32) -> (i32, i32, i32) {
    %c0_i32 = arith.constant 0 : i32
    %c0_i32_0 = arith.constant 0 : i32
    return %arg0, %c0_i32, %arg1 : i32, i32, i32
  }
  func.func @transform_4(%arg0: i32, %arg1: i32) -> (i32, i32, i32) {
    %c0_i32 = arith.constant 0 : i32
    %c0_i32_0 = arith.constant 0 : i32
    return %arg0, %c0_i32, %arg1 : i32, i32, i32
  }
}

module attributes {stable_mosaic.version = 11 : i64} {
  func.func @_ce_pair_kernel(%arg0: i32, %arg1: i32, %arg2: memref<1x2x256xf32, #tpu.memory_space<vmem>>, %arg3: memref<1x2x256xf32, #tpu.memory_space<vmem>>, %arg4: memref<1x1x256xf32, #tpu.memory_space<vmem>>, %arg5: memref<1x1xf32, #tpu.memory_space<vmem>>) attributes {dimension_semantics = [#tpu.dimension_semantics<arbitrary>, #tpu.dimension_semantics<arbitrary>], iteration_bounds = array<i64: 2, 1>, scalar_prefetch = 0 : i64, scratch_operands = 0 : i64, tpu.core_type = #tpu.core_type<tc>, window_params = [{transform_indices = @transform_0, window_bounds = array<i64: 1, 2, 256>}, {transform_indices = @transform_1, window_bounds = array<i64: 1, 2, 256>}, {transform_indices = @transform_2, window_bounds = array<i64: 1, 1, 256>}, {pipeline_mode = #tpu.pipeline_mode<synchronous>, transform_indices = @transform_3, window_bounds = array<i64: 1, 1>}]} {
    %c0_i32 = arith.constant 0 : i32
    %0 = arith.cmpi eq, %arg0, %c0_i32 : i32
    %c0_i32_0 = arith.constant 0 : i32
    %1 = arith.cmpi eq, %arg1, %c0_i32_0 : i32
    %2 = arith.andi %0, %1 : i1
    %3 = arith.extui %2 : i1 to i32
    %c0_i32_1 = arith.constant 0 : i32
    %4 = arith.cmpi ne, %3, %c0_i32_1 : i32
    scf.if %4 {
      %cst_24 = arith.constant 0.000000e+00 : f32
      %66 = vector.broadcast %cst_24 : f32 to vector<1x1xf32>
      %c0_25 = arith.constant 0 : index
      %c0_26 = arith.constant 0 : index
      %67 = vector.load %arg5[%c0_25, %c0_26] : memref<1x1xf32, #tpu.memory_space<vmem>>, vector<1x1xf32>
      tpu.vector_store %arg5[%c0_25, %c0_26], %66 {strides = array<i32>} : memref<1x1xf32, #tpu.memory_space<vmem>>, vector<1x1xf32>,
    } else {
    }
    %c0 = arith.constant 0 : index
    %c0_2 = arith.constant 0 : index
    %c0_3 = arith.constant 0 : index
    %5 = vector.load %arg2[%c0, %c0_2, %c0_3] : memref<1x2x256xf32, #tpu.memory_space<vmem>>, vector<1x2x256xf32>
    %6 = vector.shape_cast %5 : vector<1x2x256xf32> to vector<2x256xf32>
    %c0_4 = arith.constant 0 : index
    %c0_5 = arith.constant 0 : index
    %c0_6 = arith.constant 0 : index
    %7 = vector.load %arg3[%c0_4, %c0_5, %c0_6] : memref<1x2x256xf32, #tpu.memory_space<vmem>>, vector<1x2x256xf32>
    %8 = vector.shape_cast %7 : vector<1x2x256xf32> to vector<2x256xf32>
    %c0_7 = arith.constant 0 : index
    %c0_8 = arith.constant 0 : index
    %c0_9 = arith.constant 0 : index
    %9 = vector.load %arg4[%c0_7, %c0_8, %c0_9] : memref<1x1x256xf32, #tpu.memory_space<vmem>>, vector<1x1x256xf32>
    %10 = vector.shape_cast %9 : vector<1x1x256xf32> to vector<1x256xf32>
    %cst = arith.constant 5.000000e-01 : f32
    %11 = vector.broadcast %cst : f32 to vector<1x256xf32>
    %12 = arith.cmpf ogt, %10, %11 : vector<1x256xf32>
    %13 = vector.extract_strided_slice %6 {offsets = [0, 0], sizes = [1, 256], strides = [1, 1]} : vector<2x256xf32> to vector<1x256xf32>
    %14 = vector.extract_strided_slice %6 {offsets = [1, 0], sizes = [1, 256], strides = [1, 1]} : vector<2x256xf32> to vector<1x256xf32>
    %15 = arith.subf %13, %14 : vector<1x256xf32>
    %16 = vector.extract_strided_slice %6 {offsets = [1, 0], sizes = [1, 256], strides = [1, 1]} : vector<2x256xf32> to vector<1x256xf32>
    %17 = vector.extract_strided_slice %6 {offsets = [0, 0], sizes = [1, 256], strides = [1, 1]} : vector<2x256xf32> to vector<1x256xf32>
    %18 = arith.subf %16, %17 : vector<1x256xf32>
    %19 = arith.select %12, %15, %18 : vector<1x256xi1>, vector<1x256xf32>
    %cst_10 = arith.constant 0.000000e+00 : f32
    %20 = vector.broadcast %cst_10 : f32 to vector<1x256xf32>
    %21 = arith.maximumf %19, %20 : vector<1x256xf32>
    %22 = math.absf %19 : vector<1x256xf32>
    %cst_11 = arith.constant 0.000000e+00 : f32
    %23 = vector.broadcast %cst_11 : f32 to vector<1x256xf32>
    %24 = arith.subf %23, %22 : vector<1x256xf32>
    %25 = math.exp %24 : vector<1x256xf32>
    %cst_12 = arith.constant 1.000000e+00 : f32
    %26 = vector.broadcast %cst_12 : f32 to vector<1x256xf32>
    %27 = arith.addf %26, %25 : vector<1x256xf32>
    %28 = math.log %27 : vector<1x256xf32>
    %29 = arith.addf %21, %28 : vector<1x256xf32>
    %30 = vector.extract_strided_slice %8 {offsets = [0, 0], sizes = [1, 256], strides = [1, 1]} : vector<2x256xf32> to vector<1x256xf32>
    %31 = vector.extract_strided_slice %8 {offsets = [1, 0], sizes = [1, 256], strides = [1, 1]} : vector<2x256xf32> to vector<1x256xf32>
    %32 = arith.subf %30, %31 : vector<1x256xf32>
    %33 = vector.extract_strided_slice %8 {offsets = [1, 0], sizes = [1, 256], strides = [1, 1]} : vector<2x256xf32> to vector<1x256xf32>
    %34 = vector.extract_strided_slice %8 {offsets = [0, 0], sizes = [1, 256], strides = [1, 1]} : vector<2x256xf32> to vector<1x256xf32>
    %35 = arith.subf %33, %34 : vector<1x256xf32>
    %36 = arith.select %12, %32, %35 : vector<1x256xi1>, vector<1x256xf32>
    %cst_13 = arith.constant 0.000000e+00 : f32
    %37 = vector.broadcast %cst_13 : f32 to vector<1x256xf32>
    %38 = arith.maximumf %36, %37 : vector<1x256xf32>
    %39 = math.absf %36 : vector<1x256xf32>
    %cst_14 = arith.constant 0.000000e+00 : f32
    %40 = vector.broadcast %cst_14 : f32 to vector<1x256xf32>
    %41 = arith.subf %40, %39 : vector<1x256xf32>
    %42 = math.exp %41 : vector<1x256xf32>
    %cst_15 = arith.constant 1.000000e+00 : f32
    %43 = vector.broadcast %cst_15 : f32 to vector<1x256xf32>
    %44 = arith.addf %43, %42 : vector<1x256xf32>
    %45 = math.log %44 : vector<1x256xf32>
    %46 = arith.addf %38, %45 : vector<1x256xf32>
    %47 = arith.addf %29, %46 : vector<1x256xf32>
    %c256_i32 = arith.constant 256 : i32
    %48 = arith.muli %arg1, %c256_i32 : i32
    %49 = tpu.iota {dimensions = array<i32: 1>} : vector<1x256xi32>
    %50 = vector.broadcast %48 : i32 to vector<1x256xi32>
    %51 = arith.addi %50, %49 : vector<1x256xi32>
    %c256_i32_16 = arith.constant 256 : i32
    %52 = vector.broadcast %c256_i32_16 : i32 to vector<1x256xi32>
    %53 = arith.cmpi slt, %51, %52 : vector<1x256xi32>
    %cst_17 = arith.constant 0.000000e+00 : f32
    %54 = vector.broadcast %cst_17 : f32 to vector<1x256xf32>
    %55 = arith.select %53, %47, %54 : vector<1x256xi1>, vector<1x256xf32>
    %c0_18 = arith.constant 0 : index
    %c0_19 = arith.constant 0 : index
    %56 = vector.load %arg5[%c0_18, %c0_19] : memref<1x1xf32, #tpu.memory_space<vmem>>, vector<1x1xf32>
    %57 = vector.shape_cast %55 : vector<1x256xf32> to vector<1x1x256xf32>
    %cst_20 = arith.constant dense<0.000000e+00> : vector<1xf32>
    %58 = vector.multi_reduction <add>, %57, %cst_20 [1, 2] : vector<1x1x256xf32> to vector<1xf32>
    %59 = vector.shape_cast %58 : vector<1xf32> to vector<1x1x1xf32>
    %60 = vector.extract %59[0, 0, 0] : f32 from vector<1x1x1xf32>
    %61 = vector.broadcast %60 : f32 to vector<1x1xf32>
    %cst_21 = arith.constant 0.001953125 : f32
    %62 = vector.broadcast %cst_21 : f32 to vector<1x1xf32>
    %63 = arith.mulf %61, %62 : vector<1x1xf32>
    %64 = arith.addf %56, %63 : vector<1x1xf32>
    %c0_22 = arith.constant 0 : index
    %c0_23 = arith.constant 0 : index
    %65 = vector.load %arg5[%c0_22, %c0_23] : memref<1x1xf32, #tpu.memory_space<vmem>>, vector<1x1xf32>
    tpu.vector_store %arg5[%c0_22, %c0_23], %64 {strides = array<i32>} : memref<1x1xf32, #tpu.memory_space<vmem>>, vector<1x1xf32>,
    return
  }
  func.func @transform_0(%arg0: i32, %arg1: i32) -> (i32, i32, i32) {
    %c0_i32 = arith.constant 0 : i32
    %c0_i32_0 = arith.constant 0 : i32
    return %arg0, %c0_i32, %arg1 : i32, i32, i32
  }
  func.func @transform_1(%arg0: i32, %arg1: i32) -> (i32, i32, i32) {
    %c0_i32 = arith.constant 0 : i32
    %c0_i32_0 = arith.constant 0 : i32
    return %arg0, %c0_i32, %arg1 : i32, i32, i32
  }
  func.func @transform_2(%arg0: i32, %arg1: i32) -> (i32, i32, i32) {
    %c0_i32 = arith.constant 0 : i32
    %c0_i32_0 = arith.constant 0 : i32
    return %arg0, %c0_i32, %arg1 : i32, i32, i32
  }
  func.func @transform_3(%arg0: i32, %arg1: i32) -> (i32, i32) {
    %c0_i32 = arith.constant 0 : i32
    %c0_i32_0 = arith.constant 0 : i32
    %c0_i32_1 = arith.constant 0 : i32
    return %c0_i32, %c0_i32_0 : i32, i32
  }
}

</mosaic_0001>

<bundles_post_ra>
// kernel: pcas_forward.20
= control target key start
LH: loop header
LB: loop body
LE: loop exit
PB: predicated region body
PF: predicated region fallthrough
CT: control target
= control target key end

     0   :  { %s571_s12 = smov 0   ;;  %s573_s13 = smov 0   ;;  %s662_s0 = inlined_call_operand.vmem [shape: bf16[2,32,16], index: 0, kind: input, shape index: {}]   ;;  %s663_s1 = inlined_call_operand.vmem [shape: bf16[64,32], index: 1, kind: input, shape index: {}]   ;;  %s664_s2 = inlined_call_operand.vmem [shape: f32[64,1], index: 2, kind: input, shape index: {}]   ;;  %s665_s3 = inlined_call_operand.vmem [shape: bf16[2,64,16], index: 3, kind: output, shape index: {}]  }
   0x1   :  { %s575_s14 = smov 0  }
   0x2 LB: > { %s25_s15 = sadd.s32 1, %s544_s13  ;;  %p449_p0 = scmp.ge.s32.totalorder %s548_s14, 1  ;;  %s548_s14 = sphi %s575_s14, %s13_s14   ;;  %s544_s13 = sphi %s573_s13, %s667_s13   ;;  %s540_s12 = sphi %s571_s12, %s666_s12  }
   0x3   : > { %p27_p1 = scmp.ge.s32.totalorder %s25_s15, 2  ;;  %p156_p2 = scmp.lt.s32.totalorder %s548_s14, 3 }
   0x5   : > { %s669_s15 = smov (%p27_p1, %s25_s15), 0  ;;  %p157_p3 = pnand %p449_p0, %p156_p2 }
   0x6   : > { %p186_p4 = scmp.lt.s32.totalorder (!%p157_p3), %s540_s12, 1 }
   0x7   : > { %160 = sbr.rel (%p157_p3) target bundleno = 173 (0xad), region = 32 }
   0xc   : > { %v217_v0 = vld [vmem:[%s664_s2 + $0x10] sm:$0xff]  ;;  %v215_v1 = vld [vmem:[%s664_s2] sm:$0xff]  ;;  %v550_v2 = vmov 0   ;;  %s671_s12 = smov (!%p186_p4, %s540_s12), 1  ;;  %v218_v5 = vld [vmem:[%s664_s2 + $0x18] sm:$0xff]  ;;  %vm295_vm0 = vcmask 261120  }
   0xd   : > { %524 = vset.pattern.permute.xlu1 %v550_v2  ;;  %523 = vset.pattern.permute.xlu0 %v550_v2  ;;  %v219_v3 = vld [vmem:[%s664_s2 + $0x20] sm:$0xff]  ;;  %s484_s22 = sshll.u32 %s671_s12, 4  ;;  %v216_v6 = vld [vmem:[%s664_s2 + $0x8] sm:$0xff]  ;;  %v490_v11 = vld [vmem:[%s663_s1 + $0x10] sm:$0xff]  ;;  %s485_s21 = sshll.u32 %s671_s12, 5  ;;  %vm353_vm1 = vcmask 125952  }
   0xe   : > { %235 = vperm.xlu1 %524, %v217_v0   ;;  %225 = vperm.xlu0 %523, %v215_v1   ;;  %s193_s25 = scalar_lea.vmem %s662_s0, %s484_s22  ;;  %v488_v8 = vld [vmem:[%s663_s1] sm:$0xff]  ;;  %v489_v9 = vld [vmem:[%s663_s1 + $0x8] sm:$0xff]  ;;  %v491_v12 = vld [vmem:[%s663_s1 + $0x18] sm:$0xff]  ;;  %s635_s24 = scalar_lea.vmem %s665_s3, %s485_s21 }
   0xf   : > { %525 = vset.pattern.permute.xlu2 %v550_v2  ;;  %v487_v4 = vld [vmem:[%s193_s25 + $0x8] sm:$0xff]  ;;  %v486_v7 = vld [vmem:[%s193_s25] sm:$0xff]  ;;  %v222_v13 = vld [vmem:[%s664_s2 + $0x38] sm:$0xff] }
  0x10   : > { %245 = vperm.xlu2 %525, %v219_v3   ;;  %314 = vmatpush.bf16.msra.mxu0 %v487_v4  ;;  %v220_v10 = vld [vmem:[%s664_s2 + $0x28] sm:$0xff]  ;;  %v221_v14 = vld [vmem:[%s664_s2 + $0x30] sm:$0xff] }
  0x11   : > { %492 = vmatpush.bf16.msra.mxu1 %v487_v4  ;;  %493 = vmatpush.bf16.msra.mxu2 %v487_v4 }
  0x12   : > { %494 = vmatpush.bf16.msra.mxu3 %v487_v4 }
  0x14   : > { %315 = vmatpush.bf16.msra.mxu0 %v486_v7 }
  0x15   : > { %495 = vmatpush.bf16.msra.mxu1 %v486_v7  ;;  %496 = vmatpush.bf16.msra.mxu2 %v486_v7 }
  0x16   : > { %240 = vperm.xlu1 %524, %v218_v5   ;;  %230 = vperm.xlu0 %523, %v216_v6  }
  0x17   : > { %497 = vmatpush.bf16.msra.mxu3 %v486_v7  ;;  %478 = vmatmul.msk.bf16.vlgmr.msra.gmra.mxu0 %vm295_vm0, %v488_v8 }
  0x18   : > { %250 = vperm.xlu2 %525, %v220_v10   ;;  %479 = vmatmul.msk.bf16.vlgmr.msra.gmra.mxu1 %vm295_vm0, %v489_v9 }
  0x19   : > { %480 = vmatmul.msk.bf16.vlgmr.msra.gmra.mxu2 %vm295_vm0, %v490_v11 }
  0x1a   : > { %481 = vmatmul.msk.bf16.vlgmr.msra.gmra.mxu3 %vm295_vm0, %v491_v12 }
  0x1e   : > { %260 = vperm.xlu1 %524, %v222_v13   ;;  %255 = vperm.xlu0 %523, %v221_v14  }
  0x6a   : > { %v246_v25 = vpop.permute.xlu2 %245 }
  0x72   : > { %v251_v46 = vpop.permute.xlu2 %250 }
  0x80   : > { %v226_v15 = vpop.permute.xlu0 %225  ;;  %v236_v16 = vpop.permute.xlu1 %235 }
  0x88   : > { %v231_v17 = vpop.permute.xlu0 %230  ;;  %v241_v24 = vpop.permute.xlu1 %240 }
  0x90   : > { %v256_v28 = vpop.permute.xlu0 %255  ;;  %v261_v45 = vpop.permute.xlu1 %260 }
  0x94   : > { %v317_v18 = vpop.f32.mrf.mxu0 }
  0x95   : > { %v322_v19 = vpop.f32.mrf.mxu1  ;;  %v318_v20 = vadd.f32 %v317_v18, %v226_v15 }
  0x96   : > { %v323_v21 = vadd.f32 %v322_v19, %v236_v16 }
  0x97   : > { %v337_v22 = vmax.f32 %v318_v20, 0.0 }
  0x98   : > { %v339_v23 = vmax.f32 %v323_v21, 0.0 }
  0x99   : > { %v345_v26 = vpack.c.bf16 %v337_v22, %v337_v22 }
  0x9a   : > { %v347_v27 = vpack.c.bf16 %v339_v23, %v339_v23 }
  0x9b   : > { %354 = vst.msk [vmem:[%s635_s24] sm:$0xf] %vm353_vm1, %v345_v26 }
  0x9c   : > { %v327_v29 = vpop.f32.mrf.mxu2  ;;  %356 = vst.msk [vmem:[%s635_s24 + $0x8] sm:$0xf] %vm353_vm1, %v347_v27  ;;  %v319_v33 = vpop.f32.mrf.mxu0 }
  0x9d   : > { %v332_v30 = vpop.f32.mrf.mxu3  ;;  %v328_v31 = vadd.f32 %v327_v29, %v246_v25  ;;  %v324_v34 = vpop.f32.mrf.mxu1  ;;  %v320_v35 = vadd.f32 %v319_v33, %v231_v17 }
  0x9e   : > { %v333_v32 = vadd.f32 %v332_v30, %v256_v28  ;;  %v325_v36 = vadd.f32 %v324_v34, %v241_v24 }
  0x9f   : > { %v341_v37 = vmax.f32 %v328_v31, 0.0  ;;  %v338_v39 = vmax.f32 %v320_v35, 0.0 }
  0xa0   : > { %v343_v38 = vmax.f32 %v333_v32, 0.0  ;;  %v340_v40 = vmax.f32 %v325_v36, 0.0 }
  0xa1   : > { %v349_v41 = vpack.c.bf16 %v341_v37, %v341_v37  ;;  %v346_v43 = vpack.c.bf16 %v338_v39, %v338_v39 }
  0xa2   : > { %v351_v42 = vpack.c.bf16 %v343_v38, %v343_v38  ;;  %v348_v44 = vpack.c.bf16 %v340_v40, %v340_v40 }
  0xa3   : > { %358 = vst.msk [vmem:[%s635_s24 + $0x10] sm:$0xf] %vm353_vm1, %v349_v41 }
  0xa4   : > { %360 = vst.msk [vmem:[%s635_s24 + $0x18] sm:$0xf] %vm353_vm1, %v351_v42  ;;  %v329_v47 = vpop.f32.mrf.mxu2 }
  0xa5   : > { %v334_v48 = vpop.f32.mrf.mxu3  ;;  %355 = vst.msk [vmem:[%s635_s24 + $0x4] sm:$0xf] %vm353_vm1, %v346_v43  ;;  %v330_v49 = vadd.f32 %v329_v47, %v251_v46 }
  0xa6   : > { %v335_v50 = vadd.f32 %v334_v48, %v261_v45  ;;  %357 = vst.msk [vmem:[%s635_s24 + $0xc] sm:$0xf] %vm353_vm1, %v348_v44 }
  0xa7   : > { %v342_v51 = vmax.f32 %v330_v49, 0.0 }
  0xa8   : > { %v344_v52 = vmax.f32 %v335_v50, 0.0 }
  0xa9   : > { %v350_v53 = vpack.c.bf16 %v342_v51, %v342_v51 }
  0xaa   : > { %v352_v54 = vpack.c.bf16 %v344_v52, %v344_v52 }
  0xab   : > { %359 = vst.msk [vmem:[%s635_s24 + $0x14] sm:$0xf] %vm353_vm1, %v350_v53 }
  0xac   : > { %361 = vst.msk [vmem:[%s635_s24 + $0x1c] sm:$0xf] %vm353_vm1, %v352_v54 }
  0xad PF: > { %s13_s14 = sadd.s32 1, %s548_s14   ;;  %s666_s12 = smov %s544_s13 }
  0xae   : > { %p10_p5 = scmp.ge.s32.totalorder %s13_s14, 4   ;;  %s667_s13 = smov %s669_s15 }
  0xb0   :  { %12 = sbr.rel (!%p10_p5) target bundleno = 2 (0x2), region = 62 }

// kernel: pcas_forward.19
= control target key start
LH: loop header
LB: loop body
LE: loop exit
PB: predicated region body
PF: predicated region fallthrough
CT: control target
= control target key end

     0   :  { %s537_s12 = smov 0   ;;  %s539_s13 = smov 0   ;;  %s596_s0 = inlined_call_operand.vmem [shape: f32[2,3,64], index: 0, kind: input, shape index: {}]   ;;  %s597_s1 = inlined_call_operand.vmem [shape: bf16[32,3], index: 1, kind: input, shape index: {}]   ;;  %s598_s2 = inlined_call_operand.vmem [shape: f32[32,1], index: 2, kind: input, shape index: {}]   ;;  %s599_s3 = inlined_call_operand.vmem [shape: bf16[2,32,64], index: 3, kind: output, shape index: {}]  }
   0x1   :  { %s541_s14 = smov 0  }
   0x2 LB: > { %s25_s15 = sadd.s32 1, %s508_s13  ;;  %p412_p0 = scmp.ge.s32.totalorder %s512_s14, 1  ;;  %s512_s14 = sphi %s541_s14, %s13_s14   ;;  %s508_s13 = sphi %s539_s13, %s601_s13   ;;  %s504_s12 = sphi %s537_s12, %s600_s12  }
   0x3   : > { %p27_p1 = scmp.ge.s32.totalorder %s25_s15, 2  ;;  %p155_p2 = scmp.lt.s32.totalorder %s512_s14, 3 }
   0x5   : > { %s603_s15 = smov (%p27_p1, %s25_s15), 0  ;;  %p156_p3 = pnand %p412_p0, %p155_p2 }
   0x6   : > { %p184_p4 = scmp.lt.s32.totalorder (!%p156_p3), %s504_s12, 1 }
   0x7   : > { %159 = sbr.rel (%p156_p3) target bundleno = 163 (0xa3), region = 32 }
   0xc   : > { %v420_v0 = vld [vmem:[%s597_s1] sm:$0xff]   ;;  %v514_v1 = vmov 1   ;;  %v515_v2 = vmov 0   ;;  %v427_v5 = vld [vmem:[%s597_s1 + $0x8] sm:$0xff]   ;;  %v516_v6 = vmov 2   ;;  %v206_v13 = vld [vmem:[%s598_s2 + $0x10] sm:$0xff] }
   0xd   : > { %466 = vset.pattern.permute.xlu1 %v514_v1  ;;  %455 = vset.pattern.permute.xlu0 %v515_v2  ;;  %v421_v3 = vunpack.c.l.bf16 %v420_v0  ;;  %v422_v4 = vunpack.c.h.bf16 %v420_v0  ;;  %v425_v8 = vunpack.c.l.bf16 %v427_v5  ;;  %v426_v9 = vunpack.c.h.bf16 %v427_v5  ;;  %v204_v11 = vld [vmem:[%s598_s2] sm:$0xff]  ;;  %v205_v12 = vld [vmem:[%s598_s2 + $0x8] sm:$0xff]  ;;  %v207_v14 = vld [vmem:[%s598_s2 + $0x18] sm:$0xff]  ;;  %s605_s12 = smov (!%p184_p4, %s504_s12), 1 }
   0xe   : > { %477 = vset.pattern.permute.xlu2 %v516_v6  ;;  %s413_s28 = sshll.u32 %s605_s12, 2  ;;  %s418_s5 = sshll.u32 %s605_s12, 4  ;;  %vm323_vm0 = vcmask 519168  }
   0xf   : > { %v467_v7 = vpack.i.bf16 %v422_v4, %v421_v3  ;;  %v472_v10 = vpack.i.bf16 %v426_v9, %v425_v8  ;;  %s190_s4 = scalar_lea.vmem %s596_s0, %s413_s28  ;;  %s198_s8 = scalar_lea.vmem %s599_s3, %s418_s5 }
  0x10   : > { %v199_v16 = vld [vmem:[%s190_s4] sm:$0x7] }
  0x11   : > { %468 = vperm.xlu1 %466, %v467_v7   ;;  %457 = vperm.xlu0 %455, %v467_v7   ;;  %v257_v20 = vperm.slane %v199_v16, 1  ;;  %v232_v22 = vperm.slane %v199_v16, 0  ;;  %v282_v27 = vperm.slane %v199_v16, 2 }
  0x12   : > { %479 = vperm.xlu2 %477, %v467_v7  }
  0x19   : > { %473 = vperm.xlu1 %466, %v472_v10   ;;  %462 = vperm.xlu0 %455, %v472_v10  }
  0x1a   : > { %484 = vperm.xlu2 %477, %v472_v10  }
  0x21   : > { %488 = vset.pattern.permute.xlu1 %v515_v2  ;;  %293 = vperm.xlu0 %455, %v204_v11  }
  0x22   : > { %298 = vperm.xlu1 %488, %v205_v12   ;;  %489 = vset.pattern.permute.xlu2 %v515_v2 }
  0x23   : > { %303 = vperm.xlu2 %489, %v206_v13  }
  0x29   : > { %308 = vperm.xlu0 %455, %v207_v14  }
  0x6c   : > { %v480_v15 = vpop.permute.xlu2 %479 }
  0x6d   : > { %v481_v26 = vunpack.i.l.bf16 %v480_v15  ;;  %v482_v30 = vunpack.i.h.bf16 %v480_v15 }
  0x6f   : > { %v283_v38 = vmul.f32 %v481_v26, %v282_v27  ;;  %v284_v44 = vmul.f32 %v482_v30, %v282_v27 }
  0x74   : > { %v485_v25 = vpop.permute.xlu2 %484 }
  0x75   : > { %v486_v35 = vunpack.i.l.bf16 %v485_v25  ;;  %v487_v55 = vunpack.i.h.bf16 %v485_v25 }
  0x77   : > { %v285_v46 = vmul.f32 %v486_v35, %v282_v27  ;;  %v286_v0 = vmul.f32 %v487_v55, %v282_v27 }
  0x7d   : > { %v304_v48 = vpop.permute.xlu2 %303 }
  0x83   : > { %v469_v17 = vpop.permute.xlu1 %468  ;;  %v458_v18 = vpop.permute.xlu0 %457 }
  0x84   : > { %v470_v19 = vunpack.i.l.bf16 %v469_v17  ;;  %v459_v21 = vunpack.i.l.bf16 %v458_v18  ;;  %v471_v23 = vunpack.i.h.bf16 %v469_v17  ;;  %v460_v24 = vunpack.i.h.bf16 %v458_v18 }
  0x86   : > { %v258_v28 = vmul.f32 %v470_v19, %v257_v20  ;;  %v233_v29 = vmul.f32 %v459_v21, %v232_v22  ;;  %v259_v31 = vmul.f32 %v471_v23, %v257_v20  ;;  %v234_v32 = vmul.f32 %v460_v24, %v232_v22 }
  0x88   : > { %v262_v39 = vadd.f32 %v258_v28, %v233_v29  ;;  %v263_v45 = vadd.f32 %v259_v31, %v234_v32 }
  0x8a   : > { %v287_v52 = vadd.f32 %v283_v38, %v262_v39  ;;  %v288_v54 = vadd.f32 %v284_v44, %v263_v45 }
  0x8b   : > { %v474_v33 = vpop.permute.xlu1 %473  ;;  %v463_v34 = vpop.permute.xlu0 %462 }
  0x8c   : > { %v475_v36 = vunpack.i.l.bf16 %v474_v33  ;;  %v464_v37 = vunpack.i.l.bf16 %v463_v34  ;;  %v476_v40 = vunpack.i.h.bf16 %v474_v33  ;;  %v465_v42 = vunpack.i.h.bf16 %v463_v34 }
  0x8e   : > { %v260_v41 = vmul.f32 %v475_v36, %v257_v20  ;;  %v235_v43 = vmul.f32 %v464_v37, %v232_v22  ;;  %v261_v49 = vmul.f32 %v476_v40, %v257_v20  ;;  %v236_v50 = vmul.f32 %v465_v42, %v232_v22 }
  0x90   : > { %v264_v47 = vadd.f32 %v260_v41, %v235_v43  ;;  %v265_v62 = vadd.f32 %v261_v49, %v236_v50 }
  0x92   : > { %v289_v51 = vadd.f32 %v285_v46, %v264_v47  ;;  %v290_v4 = vadd.f32 %v286_v0, %v265_v62 }
  0x93   : > { %v294_v53 = vpop.permute.xlu0 %293 }
  0x94   : > { %v313_v56 = vadd.f32 %v304_v48, %v289_v51  ;;  %v311_v57 = vadd.f32 %v294_v53, %v287_v52  ;;  %v299_v58 = vpop.permute.xlu1 %298 }
  0x95   : > { %v312_v59 = vadd.f32 %v299_v58, %v288_v54 }
  0x96   : > { %v317_v60 = vmax.f32 %v313_v56, 0.0  ;;  %v315_v61 = vmax.f32 %v311_v57, 0.0 }
  0x97   : > { %v316_v63 = vmax.f32 %v312_v59, 0.0 }
  0x98   : > { %v321_v1 = vpack.c.bf16 %v317_v60, %v317_v60  ;;  %v319_v2 = vpack.c.bf16 %v315_v61, %v315_v61 }
  0x99   : > { %v320_v3 = vpack.c.bf16 %v316_v63, %v316_v63 }
  0x9a   : > { %326 = vst.msk [vmem:[%s198_s8 + $0x8] sm:$0xf] %vm323_vm0, %v321_v1 }
  0x9b   : > { %324 = vst.msk [vmem:[%s198_s8] sm:$0xf] %vm323_vm0, %v319_v2  ;;  %v309_v5 = vpop.permute.xlu0 %308 }
  0x9c   : > { %325 = vst.msk [vmem:[%s198_s8 + $0x4] sm:$0xf] %vm323_vm0, %v320_v3  ;;  %v314_v6 = vadd.f32 %v309_v5, %v290_v4 }
  0x9e   : > { %v318_v7 = vmax.f32 %v314_v6, 0.0 }
  0xa0   : > { %v322_v8 = vpack.c.bf16 %v318_v7, %v318_v7 }
  0xa2   : > { %327 = vst.msk [vmem:[%s198_s8 + $0xc] sm:$0xf] %vm323_vm0, %v322_v8 }
  0xa3 PF: > { %s13_s14 = sadd.s32 1, %s512_s14   ;;  %s600_s12 = smov %s508_s13 }
  0xa4   : > { %p10_p5 = scmp.ge.s32.totalorder %s13_s14, 4   ;;  %s601_s13 = smov %s603_s15 }
  0xa6   :  { %12 = sbr.rel (!%p10_p5) target bundleno = 2 (0x2), region = 62 }

// kernel: pcas_forward.25
= control target key start
LH: loop header
LB: loop body
LE: loop exit
PB: predicated region body
PF: predicated region fallthrough
CT: control target
= control target key end

     0   :  { %s641_s12 = smov 0   ;;  %s643_s13 = smov 0   ;;  %s711_s0 = inlined_call_operand.vmem [shape: bf16[2,32,64], index: 0, kind: input, shape index: {}]   ;;  %s712_s1 = inlined_call_operand.vmem [shape: bf16[2,32,64], index: 1, kind: input, shape index: {}]   ;;  %s713_s2 = inlined_call_operand.vmem [shape: f32[2,1,64], index: 2, kind: input, shape index: {}]   ;;  %s714_s3 = inlined_call_operand.vmem [shape: f32[2,1,64], index: 3, kind: output, shape index: {}]  }
   0x1   :  { %s645_s14 = smov 0  }
   0x2 LB: > { %s25_s15 = sadd.s32 1, %s615_s13  ;;  %p525_p0 = scmp.ge.s32.totalorder %s619_s14, 1  ;;  %s619_s14 = sphi %s645_s14, %s13_s14   ;;  %s615_s13 = sphi %s643_s13, %s716_s13   ;;  %s611_s12 = sphi %s641_s12, %s715_s12  }
   0x3   : > { %p27_p1 = scmp.ge.s32.totalorder %s25_s15, 2  ;;  %p174_p2 = scmp.lt.s32.totalorder %s619_s14, 3 }
   0x5   : > { %s718_s15 = smov (%p27_p1, %s25_s15), 0  ;;  %p175_p3 = pnand %p525_p0, %p174_p2 }
   0x6   : > { %p210_p4 = scmp.lt.s32.totalorder (!%p175_p3), %s611_s12, 1 }
   0x7   : > { %178 = sbr.rel (%p175_p3) target bundleno = 456 (0x1c8), region = 32 }
   0xc   : > { %s720_s12 = smov (!%p210_p4, %s611_s12), 1  ;;  %vm257_vm0 = vcmask 523264   ;;  %vm354_vm3 = vcmask 261120   ;;  %vm427_vm6 = vcmask 516096  }
   0xd   : > { %s544_s16 = sshll.u32 %s720_s12, 4  ;;  %s225_s19 = scalar_lea.vmem %s713_s2, %s720_s12 }
   0xe   : > { %s222_s22 = scalar_lea.vmem %s712_s1, %s544_s16  ;;  %v588_v0 = vld [vmem:[%s225_s19] ss:$0 sm:$0xff]  ;;  %s680_s25 = scalar_lea.vmem %s711_s0, %s544_s16 }
   0xf   : > { %v549_v1 = vld [vmem:[%s222_s22] sm:$0xff]   ;;  %v556_v2 = vld [vmem:[%s222_s22 + $0x8] sm:$0xff]   ;;  %s231_s28 = scalar_lea.vmem %s714_s3, %s720_s12 }
  0x10   : > { %v550_v3 = vunpack.c.l.bf16 %v549_v1  ;;  %v551_v4 = vunpack.c.h.bf16 %v549_v1  ;;  %v554_v5 = vunpack.c.l.bf16 %v556_v2  ;;  %v555_v6 = vunpack.c.h.bf16 %v556_v2  ;;  %v547_v36 = vld [vmem:[%s680_s25 + $0x8] sm:$0xff]  ;;  %v546_v47 = vld [vmem:[%s680_s25] sm:$0xff] }
  0x11   : > { %373 = vmatpush.bf16.msra.mxu0 %v547_v36  ;;  %557 = vmatpush.bf16.msra.mxu1 %v547_v36  ;;  %v233_v52 = vld [vmem:[%s680_s25] sm:$0xff]   ;;  %v235_v55 = vld [vmem:[%s680_s25 + $0x8] sm:$0xff]  }
  0x12   : > { %v249_v7 = vmul.f32 %v588_v0, %v550_v3  ;;  %v250_v8 = vmul.f32 %v588_v0, %v551_v4  ;;  %v251_v9 = vmul.f32 %v588_v0, %v554_v5  ;;  %v252_v10 = vmul.f32 %v588_v0, %v555_v6  ;;  %558 = vmatpush.bf16.msra.mxu2 %v547_v36 }
  0x13   : > { %559 = vmatpush.bf16.msra.mxu3 %v547_v36  ;;  %v291_v53 = vunpack.c.l.bf16 %v233_v52  ;;  %v292_v54 = vunpack.c.h.bf16 %v233_v52  ;;  %v293_v56 = vunpack.c.l.bf16 %v235_v55  ;;  %v294_v59 = vunpack.c.h.bf16 %v235_v55 }
  0x14   : > { %v253_v11 = vmul.f32 %v249_v7, %v249_v7  ;;  %v254_v12 = vmul.f32 %v250_v8, %v250_v8  ;;  %v255_v13 = vmul.f32 %v251_v9, %v251_v9  ;;  %v256_v14 = vmul.f32 %v252_v10, %v252_v10 }
  0x15   : > { %374 = vmatpush.bf16.msra.mxu0 %v546_v47  ;;  %560 = vmatpush.bf16.msra.mxu1 %v546_v47  ;;  %v295_v57 = vmul.f32 %v291_v53, %v291_v53  ;;  %v296_v58 = vmul.f32 %v292_v54, %v292_v54  ;;  %v297_v60 = vmul.f32 %v293_v56, %v293_v56 }
  0x16   : > { %v258_v15 = vsel %vm257_vm0, %v253_v11, 0.0  ;;  %v259_v16 = vsel %vm257_vm0, %v254_v12, 0.0  ;;  %v261_v17 = vsel %vm257_vm0, %v255_v13, 0.0  ;;  %v263_v19 = vsel %vm257_vm0, %v256_v14, 0.0  ;;  %561 = vmatpush.bf16.msra.mxu2 %v546_v47 }
  0x17   : > { %v260_v18 = vadd.f32 %v259_v16, %v258_v15  ;;  %562 = vmatpush.bf16.msra.mxu3 %v546_v47  ;;  %v299_v61 = vsel %vm257_vm0, %v295_v57, 0.0  ;;  %v300_v62 = vsel %vm257_vm0, %v296_v58, 0.0  ;;  %v298_v0 = vmul.f32 %v294_v59, %v294_v59 }
  0x18   : > { %v301_v63 = vadd.f32 %v300_v62, %v299_v61  ;;  %v302_v1 = vsel %vm257_vm0, %v297_v60, 0.0 }
  0x19   : > { %v262_v20 = vadd.f32 %v261_v17, %v260_v18  ;;  %v304_v3 = vsel %vm257_vm0, %v298_v0, 0.0 }
  0x1a   : > { %v303_v2 = vadd.f32 %v302_v1, %v301_v63 }
  0x1b   : > { %v264_v21 = vadd.f32 %v263_v19, %v262_v20 }
  0x1c   : > { %v305_v4 = vadd.f32 %v304_v3, %v303_v2 }
  0x1d   : > { %v265_v22 = vrot.slane %v264_v21, 4 }
  0x1e   : > { %v306_v5 = vrot.slane %v305_v4, 4 }
  0x1f   : > { %v266_v23 = vadd.f32 %v265_v22, %v264_v21 }
  0x20   : > { %v307_v6 = vadd.f32 %v306_v5, %v305_v4 }
  0x21   : > { %v267_v24 = vrot.slane %v266_v23, 2 }
  0x23   : > { %v268_v25 = vadd.f32 %v267_v24, %v266_v23 }
  0x25   : > { %v269_v26 = vrot.slane %v268_v25, 1 }
  0x27   : > { %v270_v27 = vadd.f32 %v269_v26, %v268_v25 }
  0x29   : > { %589 = vrsqrt.f32 %v270_v27  ;;  %vm278_vm1 = vcmp.eq.f32.partialorder %v270_v27, inf  ;;  %v281_v34 = vand.u32 2147483648, %v270_v27  ;;  %vm280_vm2 = vcmp.eq.f32.partialorder %v270_v27, 0.0 }
  0x2f   : > { %v590_v28 = vpop.eup %589 }
  0x30   : > { %v272_v29 = vmul.f32 %v590_v28, %v270_v27 }
  0x32   : > { %v273_v30 = vmul.f32 %v590_v28, %v272_v29 }
  0x34   : > { %v274_v31 = vmul.f32 0.5, %v273_v30 }
  0x36   : > { %v275_v32 = vsub.f32 1.5, %v274_v31 }
  0x38   : > { %v276_v33 = vmul.f32 %v590_v28, %v275_v32 }
  0x3a   : > { %v277_v35 = vmul.f32 %v276_v33, %v270_v27 }
  0x3c   : > { %v279_v37 = vsel %vm278_vm1, %v270_v27, %v277_v35 }
  0x3d   : > { %v282_v38 = vsel %vm280_vm2, %v281_v34, %v279_v37 }
  0x3e   : > { %v283_v39 = vadd.f32 1e-05, %v282_v38 }
  0x40   : > { %591 = vrcp.f32 %v283_v39 }
  0x46   : > { %v592_v40 = vpop.eup %591 }
  0x47   : > { %v285_v41 = vmul.f32 %v592_v40, %v249_v7  ;;  %v286_v42 = vmul.f32 %v592_v40, %v250_v8  ;;  %v287_v43 = vmul.f32 %v592_v40, %v251_v9  ;;  %v288_v44 = vmul.f32 %v592_v40, %v252_v10 }
  0x48   : > { %v308_v7 = vrot.slane %v307_v6, 2 }
  0x49   : > { %v289_v45 = vpack.c.bf16 %v286_v42, %v285_v41  ;;  %v290_v46 = vpack.c.bf16 %v288_v44, %v287_v43 }
  0x4a   : > { %v309_v8 = vadd.f32 %v308_v7, %v307_v6 }
  0x4b   : > { %326 = vxpose.xlu0.c.b16.start [1/2] (short) (narrow) %v289_v45, 64 }
  0x4c   : > { %v310_v9 = vrot.slane %v309_v8, 1 }
  0x4e   : > { %v311_v10 = vadd.f32 %v310_v9, %v309_v8 }
  0x50   : > { %593 = vrsqrt.f32 %v311_v10  ;;  %vm319_vm4 = vcmp.eq.f32.partialorder %v311_v10, inf  ;;  %v322_v37 = vand.u32 2147483648, %v311_v10  ;;  %vm321_vm5 = vcmp.eq.f32.partialorder %v311_v10, 0.0 }
  0x56   : > { %v594_v11 = vpop.eup %593 }
  0x57   : > { %v313_v13 = vmul.f32 %v594_v11, %v311_v10 }
  0x59   : > { %v314_v14 = vmul.f32 %v594_v11, %v313_v13 }
  0x5b   : > { %327 = vxpose.xlu0.c.b16.end [2/2] (short) (narrow) %v290_v46, 64  ;;  %v315_v17 = vmul.f32 0.5, %v314_v14 }
  0x5d   : > { %v316_v21 = vsub.f32 1.5, %v315_v17 }
  0x5f   : > { %v317_v26 = vmul.f32 %v594_v11, %v316_v21 }
  0x61   : > { %v318_v32 = vmul.f32 %v317_v26, %v311_v10 }
  0x63   : > { %v320_v40 = vsel %vm319_vm4, %v311_v10, %v318_v32 }
  0x64   : > { %v323_v44 = vsel %vm321_vm5, %v322_v37, %v320_v40 }
  0xf7   : > { %v334_v48 = vpop.trf.xlu0 }
  0xf8   : > { %538 = vmatmul.msk.bf16.vlgmr.msra.gmra.mxu0 %vm354_vm3, %v334_v48  ;;  %v324_v48 = vadd.f32 1e-05, %v323_v44 }
  0xfa   : > { %595 = vrcp.f32 %v324_v48 }
 0x100   : > { %v596_v56 = vpop.eup %595 }
 0x101   : > { %v425_v59 = vmul.f32 0.015625, %v596_v56 }
 0x107   : > { %v335_v49 = vpop.trf.xlu0 }
 0x108   : > { %539 = vmatmul.msk.bf16.vlgmr.msra.gmra.mxu1 %vm354_vm3, %v335_v49 }
 0x117   : > { %v336_v50 = vpop.trf.xlu0 }
 0x118   : > { %540 = vmatmul.msk.bf16.vlgmr.msra.gmra.mxu2 %vm354_vm3, %v336_v50 }
 0x127   : > { %v337_v51 = vpop.trf.xlu0 }
 0x128   : > { %541 = vmatmul.msk.bf16.vlgmr.msra.gmra.mxu3 %vm354_vm3, %v337_v51 }
 0x175   : > { %v376_v12 = vpop.f32.mrf.mxu0 }
 0x176   : > { %v396_v19 = vmax.f32 %v376_v12, 0.0 }
 0x178   : > { %v404_v22 = vsel %vm257_vm0, %v396_v19, 0.0 }
 0x17d   : > { %v378_v16 = vpop.f32.mrf.mxu0 }
 0x17e   : > { %v397_v20 = vmax.f32 %v378_v16, 0.0 }
 0x180   : > { %v405_v24 = vsel %vm257_vm0, %v397_v20, 0.0 }
 0x181   : > { %v406_v27 = vadd.f32 %v405_v24, %v404_v22 }
 0x185   : > { %v381_v15 = vpop.f32.mrf.mxu1 }
 0x186   : > { %v398_v23 = vmax.f32 %v381_v15, 0.0 }
 0x188   : > { %v407_v28 = vsel %vm257_vm0, %v398_v23, 0.0 }
 0x189   : > { %v408_v33 = vadd.f32 %v407_v28, %v406_v27 }
 0x18d   : > { %v383_v25 = vpop.f32.mrf.mxu1 }
 0x18e   : > { %v399_v29 = vmax.f32 %v383_v25, 0.0 }
 0x190   : > { %v409_v35 = vsel %vm257_vm0, %v399_v29, 0.0 }
 0x191   : > { %v410_v41 = vadd.f32 %v409_v35, %v408_v33 }
 0x19b   : > { %v386_v18 = vpop.f32.mrf.mxu2 }
 0x19c   : > { %v400_v31 = vmax.f32 %v386_v18, 0.0 }
 0x19e   : > { %v411_v38 = vsel %vm257_vm0, %v400_v31, 0.0 }
 0x19f   : > { %v412_v43 = vadd.f32 %v411_v38, %v410_v41 }
 0x1a3   : > { %v388_v30 = vpop.f32.mrf.mxu2 }
 0x1a4   : > { %v401_v36 = vmax.f32 %v388_v30, 0.0 }
 0x1a6   : > { %v413_v42 = vsel %vm257_vm0, %v401_v36, 0.0 }
 0x1a7   : > { %v414_v46 = vadd.f32 %v413_v42, %v412_v43 }
 0x1ab   : > { %v391_v34 = vpop.f32.mrf.mxu3 }
 0x1ac   : > { %v402_v39 = vmax.f32 %v391_v34, 0.0 }
 0x1ae   : > { %v415_v45 = vsel %vm257_vm0, %v402_v39, 0.0 }
 0x1af   : > { %v416_v50 = vadd.f32 %v415_v45, %v414_v46 }
 0x1b3   : > { %v393_v47 = vpop.f32.mrf.mxu3 }
 0x1b4   : > { %v403_v49 = vmax.f32 %v393_v47, 0.0 }
 0x1b6   : > { %v417_v51 = vsel %vm257_vm0, %v403_v49, 0.0 }
 0x1b7   : > { %v418_v52 = vadd.f32 %v417_v51, %v416_v50 }
 0x1b9   : > { %v419_v53 = vrot.slane %v418_v52, 4 }
 0x1bb   : > { %v420_v54 = vadd.f32 %v419_v53, %v418_v52 }
 0x1bd   : > { %v421_v55 = vrot.slane %v420_v54, 2 }
 0x1bf   : > { %v422_v57 = vadd.f32 %v421_v55, %v420_v54 }
 0x1c1   : > { %v423_v58 = vrot.slane %v422_v57, 1 }
 0x1c3   : > { %v424_v60 = vadd.f32 %v423_v58, %v422_v57 }
 0x1c5   : > { %v426_v61 = vmul.f32 %v425_v59, %v424_v60 }
 0x1c7   : > { %428 = vst.msk [vmem:[%s231_s28] sm:$0x1] %vm427_vm6, %v426_v61 }
 0x1c8 PF: > { %s13_s14 = sadd.s32 1, %s619_s14   ;;  %s715_s12 = smov %s615_s13 }
 0x1c9   : > { %p10_p5 = scmp.ge.s32.totalorder %s13_s14, 4   ;;  %s716_s13 = smov %s718_s15 }
 0x1cb   :  { %12 = sbr.rel (!%p10_p5) target bundleno = 2 (0x2), region = 68 }

// kernel: pcas_forward.21
= control target key start
LH: loop header
LB: loop body
LE: loop exit
PB: predicated region body
PF: predicated region fallthrough
CT: control target
= control target key end

     0   :  { %s603_s12 = smov 0   ;;  %s605_s13 = smov 0   ;;  %s697_s0 = inlined_call_operand.vmem [shape: bf16[2,64,4], index: 0, kind: input, shape index: {}]   ;;  %s698_s1 = inlined_call_operand.vmem [shape: bf16[64,64], index: 1, kind: input, shape index: {}]   ;;  %s699_s2 = inlined_call_operand.vmem [shape: f32[64,1], index: 2, kind: input, shape index: {}]   ;;  %s700_s3 = inlined_call_operand.vmem [shape: bf16[2,64,4], index: 3, kind: output, shape index: {}]  }
   0x1   :  { %s607_s14 = smov 0  }
   0x2 LB: > { %s25_s15 = sadd.s32 1, %s576_s13  ;;  %p465_p0 = scmp.ge.s32.totalorder %s580_s14, 1  ;;  %s580_s14 = sphi %s607_s14, %s13_s14   ;;  %s576_s13 = sphi %s605_s13, %s702_s13   ;;  %s572_s12 = sphi %s603_s12, %s701_s12  }
   0x3   : > { %p27_p1 = scmp.ge.s32.totalorder %s25_s15, 2  ;;  %p156_p2 = scmp.lt.s32.totalorder %s580_s14, 3 }
   0x5   : > { %s704_s15 = smov (%p27_p1, %s25_s15), 0  ;;  %p157_p3 = pnand %p465_p0, %p156_p2 }
   0x6   : > { %p186_p4 = scmp.lt.s32.totalorder (!%p157_p3), %s572_s12, 1 }
   0x7   : > { %160 = sbr.rel (%p157_p3) target bundleno = 181 (0xb5), region = 32 }
   0xc   : > { %v221_v0 = vld [vmem:[%s699_s2 + $0x10] sm:$0xff]  ;;  %v219_v1 = vld [vmem:[%s699_s2] sm:$0xff]  ;;  %v582_v2 = vmov 0   ;;  %s706_s12 = smov (!%p186_p4, %s572_s12), 1  ;;  %v222_v5 = vld [vmem:[%s699_s2 + $0x18] sm:$0xff]  ;;  %vm311_vm0 = vcmask 523264  }
   0xd   : > { %556 = vset.pattern.permute.xlu1 %v582_v2  ;;  %555 = vset.pattern.permute.xlu0 %v582_v2  ;;  %v223_v3 = vld [vmem:[%s699_s2 + $0x20] sm:$0xff]  ;;  %s508_s22 = sshll.u32 %s706_s12, 5  ;;  %v220_v6 = vld [vmem:[%s699_s2 + $0x8] sm:$0xff]  ;;  %v226_v10 = vld [vmem:[%s699_s2 + $0x38] sm:$0xff]  ;;  %vm369_vm1 = vcmask 27648  }
   0xe   : > { %239 = vperm.xlu1 %556, %v221_v0   ;;  %229 = vperm.xlu0 %555, %v219_v1   ;;  %s193_s25 = scalar_lea.vmem %s697_s0, %s508_s22  ;;  %v224_v8 = vld [vmem:[%s699_s2 + $0x28] sm:$0xff]  ;;  %v225_v11 = vld [vmem:[%s699_s2 + $0x30] sm:$0xff]  ;;  %v514_v13 = vld [vmem:[%s698_s1] sm:$0xff]  ;;  %s670_s24 = scalar_lea.vmem %s700_s3, %s508_s22 }
   0xf   : > { %557 = vset.pattern.permute.xlu2 %v582_v2  ;;  %v513_v4 = vld [vmem:[%s193_s25 + $0x18] sm:$0xff]  ;;  %v512_v7 = vld [vmem:[%s193_s25 + $0x10] sm:$0xff]  ;;  %v511_v9 = vld [vmem:[%s193_s25 + $0x8] sm:$0xff] }
  0x10   : > { %249 = vperm.xlu2 %557, %v223_v3   ;;  %328 = vmatpush.bf16.msra.mxu0 %v513_v4  ;;  %v510_v12 = vld [vmem:[%s193_s25] sm:$0xff]  ;;  %v515_v14 = vld [vmem:[%s698_s1 + $0x8] sm:$0xff]  ;;  %v516_v15 = vld [vmem:[%s698_s1 + $0x10] sm:$0xff] }
  0x11   : > { %518 = vmatpush.bf16.msra.mxu1 %v513_v4  ;;  %519 = vmatpush.bf16.msra.mxu2 %v513_v4  ;;  %v517_v16 = vld [vmem:[%s698_s1 + $0x18] sm:$0xff] }
  0x12   : > { %520 = vmatpush.bf16.msra.mxu3 %v513_v4 }
  0x14   : > { %329 = vmatpush.bf16.msra.mxu0 %v512_v7 }
  0x15   : > { %521 = vmatpush.bf16.msra.mxu1 %v512_v7  ;;  %522 = vmatpush.bf16.msra.mxu2 %v512_v7 }
  0x16   : > { %244 = vperm.xlu1 %556, %v222_v5   ;;  %234 = vperm.xlu0 %555, %v220_v6  }
  0x17   : > { %523 = vmatpush.bf16.msra.mxu3 %v512_v7 }
  0x18   : > { %254 = vperm.xlu2 %557, %v224_v8   ;;  %330 = vmatpush.bf16.msra.mxu0 %v511_v9 }
  0x19   : > { %524 = vmatpush.bf16.msra.mxu1 %v511_v9  ;;  %525 = vmatpush.bf16.msra.mxu2 %v511_v9 }
  0x1b   : > { %526 = vmatpush.bf16.msra.mxu3 %v511_v9 }
  0x1c   : > { %331 = vmatpush.bf16.msra.mxu0 %v510_v12 }
  0x1d   : > { %527 = vmatpush.bf16.msra.mxu1 %v510_v12  ;;  %528 = vmatpush.bf16.msra.mxu2 %v510_v12 }
  0x1e   : > { %264 = vperm.xlu1 %556, %v226_v10   ;;  %259 = vperm.xlu0 %555, %v225_v11  }
  0x1f   : > { %529 = vmatpush.bf16.msra.mxu3 %v510_v12  ;;  %502 = vmatmul.msk.bf16.vlgmr.msra.gmra.mxu0 %vm311_vm0, %v514_v13 }
  0x20   : > { %503 = vmatmul.msk.bf16.vlgmr.msra.gmra.mxu1 %vm311_vm0, %v515_v14  ;;  %504 = vmatmul.msk.bf16.vlgmr.msra.gmra.mxu2 %vm311_vm0, %v516_v15 }
  0x22   : > { %505 = vmatmul.msk.bf16.vlgmr.msra.gmra.mxu3 %vm311_vm0, %v517_v16 }
  0x6a   : > { %v250_v27 = vpop.permute.xlu2 %249 }
  0x72   : > { %v255_v48 = vpop.permute.xlu2 %254 }
  0x80   : > { %v230_v17 = vpop.permute.xlu0 %229  ;;  %v240_v18 = vpop.permute.xlu1 %239 }
  0x88   : > { %v235_v19 = vpop.permute.xlu0 %234  ;;  %v245_v26 = vpop.permute.xlu1 %244 }
  0x90   : > { %v260_v30 = vpop.permute.xlu0 %259  ;;  %v265_v47 = vpop.permute.xlu1 %264 }
  0x9c   : > { %v333_v20 = vpop.f32.mrf.mxu0 }
  0x9d   : > { %v338_v21 = vpop.f32.mrf.mxu1  ;;  %v334_v22 = vadd.f32 %v333_v20, %v230_v17 }
  0x9e   : > { %v339_v23 = vadd.f32 %v338_v21, %v240_v18 }
  0x9f   : > { %v353_v24 = vmax.f32 %v334_v22, 0.0 }
  0xa0   : > { %v355_v25 = vmax.f32 %v339_v23, 0.0 }
  0xa1   : > { %v361_v28 = vpack.c.bf16 %v353_v24, %v353_v24 }
  0xa2   : > { %v363_v29 = vpack.c.bf16 %v355_v25, %v355_v25 }
  0xa3   : > { %370 = vst.msk [vmem:[%s670_s24] sm:$0xf] %vm369_vm1, %v361_v28  ;;  %v343_v31 = vpop.f32.mrf.mxu2 }
  0xa4   : > { %372 = vst.msk [vmem:[%s670_s24 + $0x8] sm:$0xf] %vm369_vm1, %v363_v29  ;;  %v344_v33 = vadd.f32 %v343_v31, %v250_v27  ;;  %v335_v35 = vpop.f32.mrf.mxu0 }
  0xa5   : > { %v348_v32 = vpop.f32.mrf.mxu3  ;;  %v340_v36 = vpop.f32.mrf.mxu1  ;;  %v336_v37 = vadd.f32 %v335_v35, %v235_v19 }
  0xa6   : > { %v349_v34 = vadd.f32 %v348_v32, %v260_v30  ;;  %v341_v38 = vadd.f32 %v340_v36, %v245_v26  ;;  %v357_v39 = vmax.f32 %v344_v33, 0.0 }
  0xa7   : > { %v354_v41 = vmax.f32 %v336_v37, 0.0 }
  0xa8   : > { %v359_v40 = vmax.f32 %v349_v34, 0.0  ;;  %v356_v42 = vmax.f32 %v341_v38, 0.0  ;;  %v365_v43 = vpack.c.bf16 %v357_v39, %v357_v39 }
  0xa9   : > { %v362_v45 = vpack.c.bf16 %v354_v41, %v354_v41 }
  0xaa   : > { %v367_v44 = vpack.c.bf16 %v359_v40, %v359_v40  ;;  %v364_v46 = vpack.c.bf16 %v356_v42, %v356_v42  ;;  %374 = vst.msk [vmem:[%s670_s24 + $0x10] sm:$0xf] %vm369_vm1, %v365_v43 }
  0xab   : > { %v345_v49 = vpop.f32.mrf.mxu2  ;;  %371 = vst.msk [vmem:[%s670_s24 + $0x4] sm:$0xf] %vm369_vm1, %v362_v45 }
  0xac   : > { %376 = vst.msk [vmem:[%s670_s24 + $0x18] sm:$0xf] %vm369_vm1, %v367_v44  ;;  %v346_v51 = vadd.f32 %v345_v49, %v255_v48 }
  0xad   : > { %v350_v50 = vpop.f32.mrf.mxu3  ;;  %373 = vst.msk [vmem:[%s670_s24 + $0xc] sm:$0xf] %vm369_vm1, %v364_v46 }
  0xae   : > { %v351_v52 = vadd.f32 %v350_v50, %v265_v47  ;;  %v358_v53 = vmax.f32 %v346_v51, 0.0 }
  0xb0   : > { %v360_v54 = vmax.f32 %v351_v52, 0.0  ;;  %v366_v55 = vpack.c.bf16 %v358_v53, %v358_v53 }
  0xb2   : > { %v368_v56 = vpack.c.bf16 %v360_v54, %v360_v54  ;;  %375 = vst.msk [vmem:[%s670_s24 + $0x14] sm:$0xf] %vm369_vm1, %v366_v55 }
  0xb4   : > { %377 = vst.msk [vmem:[%s670_s24 + $0x1c] sm:$0xf] %vm369_vm1, %v368_v56 }
  0xb5 PF: > { %s13_s14 = sadd.s32 1, %s580_s14   ;;  %s701_s12 = smov %s576_s13 }
  0xb6   : > { %p10_p5 = scmp.ge.s32.totalorder %s13_s14, 4   ;;  %s702_s13 = smov %s704_s15 }
  0xb8   :  { %12 = sbr.rel (!%p10_p5) target bundleno = 2 (0x2), region = 62 }

// kernel: pcas_forward.26
= control target key start
LH: loop header
LB: loop body
LE: loop exit
PB: predicated region body
PF: predicated region fallthrough
CT: control target
= control target key end

     0   :  { %s672_s12 = smov 0   ;;  %s674_s13 = smov 0   ;;  %s748_s0 = inlined_call_operand.vmem [shape: bf16[2,64,16], index: 0, kind: input, shape index: {}]   ;;  %s749_s1 = inlined_call_operand.vmem [shape: bf16[2,64,16], index: 1, kind: input, shape index: {}]   ;;  %s750_s2 = inlined_call_operand.vmem [shape: f32[2,1,16], index: 2, kind: input, shape index: {}]   ;;  %s751_s3 = inlined_call_operand.vmem [shape: f32[2,1,16], index: 3, kind: output, shape index: {}]  }
   0x1   :  { %s676_s14 = smov 0  }
   0x2 LB: > { %s25_s15 = sadd.s32 1, %s646_s13  ;;  %p545_p0 = scmp.ge.s32.totalorder %s650_s14, 1  ;;  %s650_s14 = sphi %s676_s14, %s13_s14   ;;  %s646_s13 = sphi %s674_s13, %s753_s13   ;;  %s642_s12 = sphi %s672_s12, %s752_s12  }
   0x3   : > { %p27_p1 = scmp.ge.s32.totalorder %s25_s15, 2  ;;  %p174_p2 = scmp.lt.s32.totalorder %s650_s14, 3 }
   0x5   : > { %s755_s15 = smov (%p27_p1, %s25_s15), 0  ;;  %p175_p3 = pnand %p545_p0, %p174_p2 }
   0x6   : > { %p210_p4 = scmp.lt.s32.totalorder (!%p175_p3), %s642_s12, 1 }
   0x7   : > { %178 = sbr.rel (%p175_p3) target bundleno = 410 (0x19a), region = 32 }
   0xc   : > { %s757_s12 = smov (!%p210_p4, %s642_s12), 1  ;;  %vm277_vm0 = vcmask 130048   ;;  %vm416_vm3 = vcmask 523264   ;;  %vm447_vm6 = vcmask 122880  }
   0xd   : > { %s569_s16 = sshll.u32 %s757_s12, 5  ;;  %s225_s19 = scalar_lea.vmem %s750_s2, %s757_s12 }
   0xe   : > { %s222_s22 = scalar_lea.vmem %s749_s1, %s569_s16  ;;  %v619_v0 = vld [vmem:[%s225_s19] ss:$0 sm:$0xff]  ;;  %s715_s25 = scalar_lea.vmem %s748_s0, %s569_s16 }
   0xf   : > { %v576_v1 = vld [vmem:[%s222_s22] sm:$0xff]   ;;  %v591_v2 = vld [vmem:[%s222_s22 + $0x8] sm:$0xff]   ;;  %v592_v3 = vld [vmem:[%s222_s22 + $0x10] sm:$0xff]   ;;  %s231_s28 = scalar_lea.vmem %s751_s3, %s757_s12 }
  0x10   : > { %v577_v4 = vunpack.c.l.bf16 %v576_v1  ;;  %v578_v5 = vunpack.c.h.bf16 %v576_v1  ;;  %v581_v6 = vunpack.c.l.bf16 %v591_v2  ;;  %v582_v7 = vunpack.c.h.bf16 %v591_v2  ;;  %v593_v8 = vld [vmem:[%s222_s22 + $0x18] sm:$0xff]  }
  0x11   : > { %v585_v9 = vunpack.c.l.bf16 %v592_v3  ;;  %v586_v10 = vunpack.c.h.bf16 %v592_v3  ;;  %v589_v11 = vunpack.c.l.bf16 %v593_v8  ;;  %v590_v16 = vunpack.c.h.bf16 %v593_v8 }
  0x12   : > { %v261_v12 = vmul.f32 %v619_v0, %v577_v4  ;;  %v262_v13 = vmul.f32 %v619_v0, %v578_v5  ;;  %v263_v14 = vmul.f32 %v619_v0, %v581_v6  ;;  %v264_v15 = vmul.f32 %v619_v0, %v582_v7 }
  0x13   : > { %v265_v17 = vmul.f32 %v619_v0, %v585_v9  ;;  %v266_v18 = vmul.f32 %v619_v0, %v586_v10  ;;  %v267_v23 = vmul.f32 %v619_v0, %v589_v11  ;;  %v268_v29 = vmul.f32 %v619_v0, %v590_v16  ;;  %v574_v10 = vld [vmem:[%s715_s25 + $0x18] sm:$0xff]  ;;  %v573_v11 = vld [vmem:[%s715_s25 + $0x10] sm:$0xff] }
  0x14   : > { %v269_v19 = vmul.f32 %v261_v12, %v261_v12  ;;  %v270_v20 = vmul.f32 %v262_v13, %v262_v13  ;;  %v271_v21 = vmul.f32 %v263_v14, %v263_v14  ;;  %v272_v22 = vmul.f32 %v264_v15, %v264_v15  ;;  %424 = vmatpush.bf16.msra.mxu0 %v574_v10 }
  0x15   : > { %v273_v24 = vmul.f32 %v265_v17, %v265_v17  ;;  %v274_v30 = vmul.f32 %v266_v18, %v266_v18  ;;  %v275_v33 = vmul.f32 %v267_v23, %v267_v23  ;;  %v276_v36 = vmul.f32 %v268_v29, %v268_v29 }
  0x16   : > { %v278_v25 = vsel %vm277_vm0, %v269_v19, 0.0  ;;  %v279_v26 = vsel %vm277_vm0, %v270_v20, 0.0  ;;  %v281_v27 = vsel %vm277_vm0, %v271_v21, 0.0  ;;  %v283_v31 = vsel %vm277_vm0, %v272_v22, 0.0 }
  0x17   : > { %v280_v28 = vadd.f32 %v279_v26, %v278_v25  ;;  %v285_v34 = vsel %vm277_vm0, %v273_v24, 0.0  ;;  %v287_v37 = vsel %vm277_vm0, %v274_v30, 0.0  ;;  %v289_v39 = vsel %vm277_vm0, %v275_v33, 0.0  ;;  %v237_v26 = vld [vmem:[%s715_s25 + $0x10] sm:$0xff]  }
  0x18   : > { %v291_v41 = vsel %vm277_vm0, %v276_v36, 0.0  ;;  %425 = vmatpush.bf16.msra.mxu0 %v573_v11 }
  0x19   : > { %v282_v32 = vadd.f32 %v281_v27, %v280_v28  ;;  %v329_v28 = vunpack.c.l.bf16 %v237_v26 }
  0x1b   : > { %v284_v35 = vadd.f32 %v283_v31, %v282_v32  ;;  %v330_v32 = vunpack.c.h.bf16 %v237_v26  ;;  %v337_v33 = vmul.f32 %v329_v28, %v329_v28 }
  0x1d   : > { %v286_v38 = vadd.f32 %v285_v34, %v284_v35  ;;  %v239_v35 = vld [vmem:[%s715_s25 + $0x18] sm:$0xff]  }
  0x1f   : > { %v288_v40 = vadd.f32 %v287_v37, %v286_v38  ;;  %v331_v37 = vunpack.c.l.bf16 %v239_v35  ;;  %v338_v38 = vmul.f32 %v330_v32, %v330_v32 }
  0x21   : > { %v290_v42 = vadd.f32 %v289_v39, %v288_v40  ;;  %v348_v39 = vsel %vm277_vm0, %v337_v33, 0.0 }
  0x23   : > { %v292_v43 = vadd.f32 %v291_v41, %v290_v42  ;;  %v332_v41 = vunpack.c.h.bf16 %v239_v35  ;;  %v339_v42 = vmul.f32 %v331_v37, %v331_v37 }
  0x25   : > { %v293_v44 = vrot.slane %v292_v43, 4 }
  0x27   : > { %v294_v45 = vadd.f32 %v293_v44, %v292_v43  ;;  %v350_v43 = vsel %vm277_vm0, %v338_v38, 0.0 }
  0x29   : > { %v295_v46 = vrot.slane %v294_v45, 2 }
  0x2b   : > { %v296_v47 = vadd.f32 %v295_v46, %v294_v45  ;;  %v340_v45 = vmul.f32 %v332_v41, %v332_v41  ;;  %v352_v46 = vsel %vm277_vm0, %v339_v42, 0.0 }
  0x2d   : > { %v297_v48 = vrot.slane %v296_v47, 1 }
  0x2f   : > { %v298_v49 = vadd.f32 %v297_v48, %v296_v47  ;;  %v354_v48 = vsel %vm277_vm0, %v340_v45, 0.0 }
  0x31   : > { %620 = vrsqrt.f32 %v298_v49  ;;  %vm306_vm1 = vcmp.eq.f32.partialorder %v298_v49, inf  ;;  %v309_v56 = vand.u32 2147483648, %v298_v49  ;;  %vm308_vm2 = vcmp.eq.f32.partialorder %v298_v49, 0.0 }
  0x37   : > { %v621_v50 = vpop.eup %620 }
  0x38   : > { %v300_v51 = vmul.f32 %v621_v50, %v298_v49 }
  0x3a   : > { %v301_v52 = vmul.f32 %v621_v50, %v300_v51 }
  0x3c   : > { %v302_v53 = vmul.f32 0.5, %v301_v52 }
  0x3e   : > { %v303_v54 = vsub.f32 1.5, %v302_v53 }
  0x40   : > { %v304_v55 = vmul.f32 %v621_v50, %v303_v54 }
  0x42   : > { %v305_v57 = vmul.f32 %v304_v55, %v298_v49 }
  0x44   : > { %v307_v58 = vsel %vm306_vm1, %v298_v49, %v305_v57 }
  0x45   : > { %v310_v59 = vsel %vm308_vm2, %v309_v56, %v307_v58 }
  0x46   : > { %v311_v60 = vadd.f32 1e-05, %v310_v59 }
  0x48   : > { %622 = vrcp.f32 %v311_v60 }
  0x4e   : > { %v623_v61 = vpop.eup %622 }
  0x4f   : > { %v313_v62 = vmul.f32 %v623_v61, %v261_v12  ;;  %v314_v63 = vmul.f32 %v623_v61, %v262_v13  ;;  %v315_v0 = vmul.f32 %v623_v61, %v263_v14  ;;  %v316_v1 = vmul.f32 %v623_v61, %v264_v15  ;;  %v572_v12 = vld [vmem:[%s715_s25 + $0x8] sm:$0xff]  ;;  %v571_v13 = vld [vmem:[%s715_s25] sm:$0xff] }
  0x50   : > { %v317_v2 = vmul.f32 %v623_v61, %v265_v17  ;;  %v318_v3 = vmul.f32 %v623_v61, %v266_v18  ;;  %v319_v7 = vmul.f32 %v623_v61, %v267_v23  ;;  %v320_v8 = vmul.f32 %v623_v61, %v268_v29  ;;  %426 = vmatpush.bf16.msra.mxu0 %v572_v12  ;;  %v233_v15 = vld [vmem:[%s715_s25] sm:$0xff]   ;;  %v235_v18 = vld [vmem:[%s715_s25 + $0x8] sm:$0xff]  }
  0x51   : > { %v321_v4 = vpack.c.bf16 %v314_v63, %v313_v62  ;;  %v322_v5 = vpack.c.bf16 %v316_v1, %v315_v0  ;;  %v325_v16 = vunpack.c.l.bf16 %v233_v15  ;;  %v326_v17 = vunpack.c.h.bf16 %v233_v15 }
  0x52   : > { %v323_v6 = vpack.c.bf16 %v318_v3, %v317_v2  ;;  %v324_v9 = vpack.c.bf16 %v320_v8, %v319_v7  ;;  %v327_v19 = vunpack.c.l.bf16 %v235_v18  ;;  %v328_v22 = vunpack.c.h.bf16 %v235_v18 }
  0x53   : > { %376 = vxpose.xlu0.c.b16.start [1/4] (short) (narrow) %v321_v4, 16  ;;  %v333_v20 = vmul.f32 %v325_v16, %v325_v16  ;;  %v334_v21 = vmul.f32 %v326_v17, %v326_v17 }
  0x54   : > { %427 = vmatpush.bf16.msra.mxu0 %v571_v13  ;;  %v335_v23 = vmul.f32 %v327_v19, %v327_v19  ;;  %v336_v29 = vmul.f32 %v328_v22, %v328_v22 }
  0x55   : > { %v341_v24 = vsel %vm277_vm0, %v333_v20, 0.0  ;;  %v342_v25 = vsel %vm277_vm0, %v334_v21, 0.0 }
  0x56   : > { %v343_v27 = vadd.f32 %v342_v25, %v341_v24  ;;  %v344_v30 = vsel %vm277_vm0, %v335_v23, 0.0  ;;  %v346_v34 = vsel %vm277_vm0, %v336_v29, 0.0 }
  0x58   : > { %v345_v31 = vadd.f32 %v344_v30, %v343_v27 }
  0x5a   : > { %v347_v36 = vadd.f32 %v346_v34, %v345_v31 }
  0x5c   : > { %v349_v40 = vadd.f32 %v348_v39, %v347_v36 }
  0x5e   : > { %v351_v44 = vadd.f32 %v350_v43, %v349_v40 }
  0x60   : > { %v353_v47 = vadd.f32 %v352_v46, %v351_v44 }
  0x62   : > { %v355_v49 = vadd.f32 %v354_v48, %v353_v47 }
  0x63   : > { %377 = vxpose.xlu0.c.b16.cont [2/4] (short) (narrow) %v322_v5, 16 }
  0x64   : > { %v356_v50 = vrot.slane %v355_v49, 4 }
  0x66   : > { %v357_v51 = vadd.f32 %v356_v50, %v355_v49 }
  0x68   : > { %v358_v52 = vrot.slane %v357_v51, 2 }
  0x6a   : > { %v359_v53 = vadd.f32 %v358_v52, %v357_v51 }
  0x6c   : > { %v360_v54 = vrot.slane %v359_v53, 1 }
  0x6e   : > { %v361_v55 = vadd.f32 %v360_v54, %v359_v53 }
  0x70   : > { %624 = vrsqrt.f32 %v361_v55  ;;  %vm369_vm4 = vcmp.eq.f32.partialorder %v361_v55, inf  ;;  %v372_v0 = vand.u32 2147483648, %v361_v55  ;;  %vm371_vm5 = vcmp.eq.f32.partialorder %v361_v55, 0.0 }
  0x73   : > { %378 = vxpose.xlu0.c.b16.cont [3/4] (short) (narrow) %v323_v6, 16 }
  0x76   : > { %v625_v56 = vpop.eup %624 }
  0x77   : > { %v363_v57 = vmul.f32 %v625_v56, %v361_v55 }
  0x79   : > { %v364_v58 = vmul.f32 %v625_v56, %v363_v57 }
  0x7b   : > { %v365_v59 = vmul.f32 0.5, %v364_v58 }
  0x7d   : > { %v366_v60 = vsub.f32 1.5, %v365_v59 }
  0x7f   : > { %v367_v61 = vmul.f32 %v625_v56, %v366_v60 }
  0x81   : > { %v368_v62 = vmul.f32 %v367_v61, %v361_v55 }
  0x83   : > { %379 = vxpose.xlu0.c.b16.end [4/4] (short) (narrow) %v324_v9, 16  ;;  %v370_v1 = vsel %vm369_vm4, %v361_v55, %v368_v62 }
  0x84   : > { %v373_v2 = vsel %vm371_vm5, %v372_v0, %v370_v1 }
  0x85   : > { %v374_v5 = vadd.f32 1e-05, %v373_v2 }
  0x87   : > { %626 = vrcp.f32 %v374_v5 }
  0x8d   : > { %v627_v13 = vpop.eup %626 }
  0x8e   : > { %v445_v16 = vmul.f32 0.0625, %v627_v13 }
  0xff   : > { %v384_v14 = vpop.trf.xlu0 }
 0x100   : > { %566 = vmatmul.msk.bf16.vlgmr.msra.gmra.mxu0 %vm416_vm3, %v384_v14 }
 0x17d   : > { %v429_v63 = vpop.f32.mrf.mxu0 }
 0x17e   : > { %v434_v3 = vmax.f32 %v429_v63, 0.0 }
 0x180   : > { %v436_v7 = vsel %vm277_vm0, %v434_v3, 0.0 }
 0x185   : > { %v431_v4 = vpop.f32.mrf.mxu0 }
 0x186   : > { %v435_v6 = vmax.f32 %v431_v4, 0.0 }
 0x188   : > { %v437_v8 = vsel %vm277_vm0, %v435_v6, 0.0 }
 0x189   : > { %v438_v9 = vadd.f32 %v437_v8, %v436_v7 }
 0x18b   : > { %v439_v10 = vrot.slane %v438_v9, 4 }
 0x18d   : > { %v440_v11 = vadd.f32 %v439_v10, %v438_v9 }
 0x18f   : > { %v441_v12 = vrot.slane %v440_v11, 2 }
 0x191   : > { %v442_v14 = vadd.f32 %v441_v12, %v440_v11 }
 0x193   : > { %v443_v15 = vrot.slane %v442_v14, 1 }
 0x195   : > { %v444_v17 = vadd.f32 %v443_v15, %v442_v14 }
 0x197   : > { %v446_v18 = vmul.f32 %v445_v16, %v444_v17 }
 0x199   : > { %448 = vst.msk [vmem:[%s231_s28] sm:$0x1] %vm447_vm6, %v446_v18 }
 0x19a PF: > { %s13_s14 = sadd.s32 1, %s650_s14   ;;  %s752_s12 = smov %s646_s13 }
 0x19b   : > { %p10_p5 = scmp.ge.s32.totalorder %s13_s14, 4   ;;  %s753_s13 = smov %s755_s15 }
 0x19d   :  { %12 = sbr.rel (!%p10_p5) target bundleno = 2 (0x2), region = 68 }

// kernel: pcas_forward.27
= control target key start
LH: loop header
LB: loop body
LE: loop exit
PB: predicated region body
PF: predicated region fallthrough
CT: control target
= control target key end

     0   :  { %s669_s12 = smov 0   ;;  %s671_s13 = smov 0   ;;  %s743_s0 = inlined_call_operand.vmem [shape: bf16[2,64,4], index: 0, kind: input, shape index: {}]   ;;  %s744_s1 = inlined_call_operand.vmem [shape: bf16[2,64,4], index: 1, kind: input, shape index: {}]   ;;  %s745_s2 = inlined_call_operand.vmem [shape: f32[2,1,4], index: 2, kind: input, shape index: {}]   ;;  %s746_s3 = inlined_call_operand.vmem [shape: f32[2,1,4], index: 3, kind: output, shape index: {}]  }
   0x1   :  { %s673_s14 = smov 0  }
   0x2 LB: > { %s25_s15 = sadd.s32 1, %s643_s13  ;;  %p542_p0 = scmp.ge.s32.totalorder %s647_s14, 1  ;;  %s647_s14 = sphi %s673_s14, %s13_s14   ;;  %s643_s13 = sphi %s671_s13, %s748_s13   ;;  %s639_s12 = sphi %s669_s12, %s747_s12  }
   0x3   : > { %p27_p1 = scmp.ge.s32.totalorder %s25_s15, 2  ;;  %p174_p2 = scmp.lt.s32.totalorder %s647_s14, 3 }
   0x5   : > { %s750_s15 = smov (%p27_p1, %s25_s15), 0  ;;  %p175_p3 = pnand %p542_p0, %p174_p2 }
   0x6   : > { %p210_p4 = scmp.lt.s32.totalorder (!%p175_p3), %s639_s12, 1 }
   0x7   : > { %178 = sbr.rel (%p175_p3) target bundleno = 400 (0x190), region = 32 }
   0xc   : > { %s752_s12 = smov (!%p210_p4, %s639_s12), 1  ;;  %vm277_vm0 = vcmask 31744   ;;  %vm416_vm3 = vcmask 523264   ;;  %vm434_vm6 = vcmask 27648   ;;  %vm444_vm7 = vcmask 24576  }
   0xd   : > { %s566_s16 = sshll.u32 %s752_s12, 5  ;;  %s225_s19 = scalar_lea.vmem %s745_s2, %s752_s12 }
   0xe   : > { %s222_s22 = scalar_lea.vmem %s744_s1, %s566_s16  ;;  %v616_v0 = vld [vmem:[%s225_s19] ss:$0 sm:$0xff]  ;;  %s712_s25 = scalar_lea.vmem %s743_s0, %s566_s16 }
   0xf   : > { %v573_v1 = vld [vmem:[%s222_s22] sm:$0xff]   ;;  %v588_v2 = vld [vmem:[%s222_s22 + $0x8] sm:$0xff]   ;;  %v589_v3 = vld [vmem:[%s222_s22 + $0x10] sm:$0xff]   ;;  %s231_s28 = scalar_lea.vmem %s746_s3, %s752_s12 }
  0x10   : > { %v574_v4 = vunpack.c.l.bf16 %v573_v1  ;;  %v575_v5 = vunpack.c.h.bf16 %v573_v1  ;;  %v578_v6 = vunpack.c.l.bf16 %v588_v2  ;;  %v579_v7 = vunpack.c.h.bf16 %v588_v2  ;;  %v590_v8 = vld [vmem:[%s222_s22 + $0x18] sm:$0xff]  }
  0x11   : > { %v582_v9 = vunpack.c.l.bf16 %v589_v3  ;;  %v583_v10 = vunpack.c.h.bf16 %v589_v3  ;;  %v586_v11 = vunpack.c.l.bf16 %v590_v8  ;;  %v587_v16 = vunpack.c.h.bf16 %v590_v8 }
  0x12   : > { %v261_v12 = vmul.f32 %v616_v0, %v574_v4  ;;  %v262_v13 = vmul.f32 %v616_v0, %v575_v5  ;;  %v263_v14 = vmul.f32 %v616_v0, %v578_v6  ;;  %v264_v15 = vmul.f32 %v616_v0, %v579_v7 }
  0x13   : > { %v265_v17 = vmul.f32 %v616_v0, %v582_v9  ;;  %v266_v18 = vmul.f32 %v616_v0, %v583_v10  ;;  %v267_v23 = vmul.f32 %v616_v0, %v586_v11  ;;  %v268_v29 = vmul.f32 %v616_v0, %v587_v16  ;;  %v571_v10 = vld [vmem:[%s712_s25 + $0x18] sm:$0xff]  ;;  %v570_v11 = vld [vmem:[%s712_s25 + $0x10] sm:$0xff] }
  0x14   : > { %v269_v19 = vmul.f32 %v261_v12, %v261_v12  ;;  %v270_v20 = vmul.f32 %v262_v13, %v262_v13  ;;  %v271_v21 = vmul.f32 %v263_v14, %v263_v14  ;;  %v272_v22 = vmul.f32 %v264_v15, %v264_v15  ;;  %424 = vmatpush.bf16.msra.mxu0 %v571_v10 }
  0x15   : > { %v273_v24 = vmul.f32 %v265_v17, %v265_v17  ;;  %v274_v30 = vmul.f32 %v266_v18, %v266_v18  ;;  %v275_v33 = vmul.f32 %v267_v23, %v267_v23  ;;  %v276_v36 = vmul.f32 %v268_v29, %v268_v29 }
  0x16   : > { %v278_v25 = vsel %vm277_vm0, %v269_v19, 0.0  ;;  %v279_v26 = vsel %vm277_vm0, %v270_v20, 0.0  ;;  %v281_v27 = vsel %vm277_vm0, %v271_v21, 0.0  ;;  %v283_v31 = vsel %vm277_vm0, %v272_v22, 0.0 }
  0x17   : > { %v280_v28 = vadd.f32 %v279_v26, %v278_v25  ;;  %v285_v34 = vsel %vm277_vm0, %v273_v24, 0.0  ;;  %v287_v37 = vsel %vm277_vm0, %v274_v30, 0.0  ;;  %v289_v39 = vsel %vm277_vm0, %v275_v33, 0.0  ;;  %v237_v26 = vld [vmem:[%s712_s25 + $0x10] sm:$0xff]  }
  0x18   : > { %v291_v41 = vsel %vm277_vm0, %v276_v36, 0.0  ;;  %425 = vmatpush.bf16.msra.mxu0 %v570_v11 }
  0x19   : > { %v282_v32 = vadd.f32 %v281_v27, %v280_v28  ;;  %v329_v28 = vunpack.c.l.bf16 %v237_v26 }
  0x1b   : > { %v284_v35 = vadd.f32 %v283_v31, %v282_v32  ;;  %v330_v32 = vunpack.c.h.bf16 %v237_v26  ;;  %v337_v33 = vmul.f32 %v329_v28, %v329_v28 }
  0x1d   : > { %v286_v38 = vadd.f32 %v285_v34, %v284_v35  ;;  %v239_v35 = vld [vmem:[%s712_s25 + $0x18] sm:$0xff]  }
  0x1f   : > { %v288_v40 = vadd.f32 %v287_v37, %v286_v38  ;;  %v331_v37 = vunpack.c.l.bf16 %v239_v35  ;;  %v338_v38 = vmul.f32 %v330_v32, %v330_v32 }
  0x21   : > { %v290_v42 = vadd.f32 %v289_v39, %v288_v40  ;;  %v348_v39 = vsel %vm277_vm0, %v337_v33, 0.0 }
  0x23   : > { %v292_v43 = vadd.f32 %v291_v41, %v290_v42  ;;  %v332_v41 = vunpack.c.h.bf16 %v239_v35  ;;  %v339_v42 = vmul.f32 %v331_v37, %v331_v37 }
  0x25   : > { %v293_v44 = vrot.slane %v292_v43, 4 }
  0x27   : > { %v294_v45 = vadd.f32 %v293_v44, %v292_v43  ;;  %v350_v43 = vsel %vm277_vm0, %v338_v38, 0.0 }
  0x29   : > { %v295_v46 = vrot.slane %v294_v45, 2 }
  0x2b   : > { %v296_v47 = vadd.f32 %v295_v46, %v294_v45  ;;  %v340_v45 = vmul.f32 %v332_v41, %v332_v41  ;;  %v352_v46 = vsel %vm277_vm0, %v339_v42, 0.0 }
  0x2d   : > { %v297_v48 = vrot.slane %v296_v47, 1 }
  0x2f   : > { %v298_v49 = vadd.f32 %v297_v48, %v296_v47  ;;  %v354_v48 = vsel %vm277_vm0, %v340_v45, 0.0 }
  0x31   : > { %617 = vrsqrt.f32 %v298_v49  ;;  %vm306_vm1 = vcmp.eq.f32.partialorder %v298_v49, inf  ;;  %v309_v56 = vand.u32 2147483648, %v298_v49  ;;  %vm308_vm2 = vcmp.eq.f32.partialorder %v298_v49, 0.0 }
  0x37   : > { %v618_v50 = vpop.eup %617 }
  0x38   : > { %v300_v51 = vmul.f32 %v618_v50, %v298_v49 }
  0x3a   : > { %v301_v52 = vmul.f32 %v618_v50, %v300_v51 }
  0x3c   : > { %v302_v53 = vmul.f32 0.5, %v301_v52 }
  0x3e   : > { %v303_v54 = vsub.f32 1.5, %v302_v53 }
  0x40   : > { %v304_v55 = vmul.f32 %v618_v50, %v303_v54 }
  0x42   : > { %v305_v57 = vmul.f32 %v304_v55, %v298_v49 }
  0x44   : > { %v307_v58 = vsel %vm306_vm1, %v298_v49, %v305_v57 }
  0x45   : > { %v310_v59 = vsel %vm308_vm2, %v309_v56, %v307_v58 }
  0x46   : > { %v311_v60 = vadd.f32 1e-05, %v310_v59 }
  0x48   : > { %619 = vrcp.f32 %v311_v60 }
  0x4e   : > { %v620_v61 = vpop.eup %619 }
  0x4f   : > { %v313_v62 = vmul.f32 %v620_v61, %v261_v12  ;;  %v314_v63 = vmul.f32 %v620_v61, %v262_v13  ;;  %v315_v0 = vmul.f32 %v620_v61, %v263_v14  ;;  %v316_v1 = vmul.f32 %v620_v61, %v264_v15  ;;  %v569_v12 = vld [vmem:[%s712_s25 + $0x8] sm:$0xff]  ;;  %v568_v13 = vld [vmem:[%s712_s25] sm:$0xff] }
  0x50   : > { %v317_v2 = vmul.f32 %v620_v61, %v265_v17  ;;  %v318_v3 = vmul.f32 %v620_v61, %v266_v18  ;;  %v319_v7 = vmul.f32 %v620_v61, %v267_v23  ;;  %v320_v8 = vmul.f32 %v620_v61, %v268_v29  ;;  %426 = vmatpush.bf16.msra.mxu0 %v569_v12  ;;  %v233_v15 = vld [vmem:[%s712_s25] sm:$0xff]   ;;  %v235_v18 = vld [vmem:[%s712_s25 + $0x8] sm:$0xff]  }
  0x51   : > { %v321_v4 = vpack.c.bf16 %v314_v63, %v313_v62  ;;  %v322_v5 = vpack.c.bf16 %v316_v1, %v315_v0  ;;  %v325_v16 = vunpack.c.l.bf16 %v233_v15  ;;  %v326_v17 = vunpack.c.h.bf16 %v233_v15 }
  0x52   : > { %v323_v6 = vpack.c.bf16 %v318_v3, %v317_v2  ;;  %v324_v9 = vpack.c.bf16 %v320_v8, %v319_v7  ;;  %v327_v19 = vunpack.c.l.bf16 %v235_v18  ;;  %v328_v22 = vunpack.c.h.bf16 %v235_v18 }
  0x53   : > { %376 = vxpose.xlu0.c.b16.start [1/4] (short) (narrow) %v321_v4, 16  ;;  %v333_v20 = vmul.f32 %v325_v16, %v325_v16  ;;  %v334_v21 = vmul.f32 %v326_v17, %v326_v17 }
  0x54   : > { %427 = vmatpush.bf16.msra.mxu0 %v568_v13  ;;  %v335_v23 = vmul.f32 %v327_v19, %v327_v19  ;;  %v336_v29 = vmul.f32 %v328_v22, %v328_v22 }
  0x55   : > { %v341_v24 = vsel %vm277_vm0, %v333_v20, 0.0  ;;  %v342_v25 = vsel %vm277_vm0, %v334_v21, 0.0 }
  0x56   : > { %v343_v27 = vadd.f32 %v342_v25, %v341_v24  ;;  %v344_v30 = vsel %vm277_vm0, %v335_v23, 0.0  ;;  %v346_v34 = vsel %vm277_vm0, %v336_v29, 0.0 }
  0x58   : > { %v345_v31 = vadd.f32 %v344_v30, %v343_v27 }
  0x5a   : > { %v347_v36 = vadd.f32 %v346_v34, %v345_v31 }
  0x5c   : > { %v349_v40 = vadd.f32 %v348_v39, %v347_v36 }
  0x5e   : > { %v351_v44 = vadd.f32 %v350_v43, %v349_v40 }
  0x60   : > { %v353_v47 = vadd.f32 %v352_v46, %v351_v44 }
  0x62   : > { %v355_v49 = vadd.f32 %v354_v48, %v353_v47 }
  0x63   : > { %377 = vxpose.xlu0.c.b16.cont [2/4] (short) (narrow) %v322_v5, 16 }
  0x64   : > { %v356_v50 = vrot.slane %v355_v49, 4 }
  0x66   : > { %v357_v51 = vadd.f32 %v356_v50, %v355_v49 }
  0x68   : > { %v358_v52 = vrot.slane %v357_v51, 2 }
  0x6a   : > { %v359_v53 = vadd.f32 %v358_v52, %v357_v51 }
  0x6c   : > { %v360_v54 = vrot.slane %v359_v53, 1 }
  0x6e   : > { %v361_v55 = vadd.f32 %v360_v54, %v359_v53 }
  0x70   : > { %621 = vrsqrt.f32 %v361_v55  ;;  %vm369_vm4 = vcmp.eq.f32.partialorder %v361_v55, inf  ;;  %v372_v63 = vand.u32 2147483648, %v361_v55  ;;  %vm371_vm5 = vcmp.eq.f32.partialorder %v361_v55, 0.0 }
  0x73   : > { %378 = vxpose.xlu0.c.b16.cont [3/4] (short) (narrow) %v323_v6, 16 }
  0x76   : > { %v622_v56 = vpop.eup %621 }
  0x77   : > { %v363_v57 = vmul.f32 %v622_v56, %v361_v55 }
  0x79   : > { %v364_v58 = vmul.f32 %v622_v56, %v363_v57 }
  0x7b   : > { %v365_v59 = vmul.f32 0.5, %v364_v58 }
  0x7d   : > { %v366_v60 = vsub.f32 1.5, %v365_v59 }
  0x7f   : > { %v367_v61 = vmul.f32 %v622_v56, %v366_v60 }
  0x81   : > { %v368_v62 = vmul.f32 %v367_v61, %v361_v55 }
  0x83   : > { %379 = vxpose.xlu0.c.b16.end [4/4] (short) (narrow) %v324_v9, 16  ;;  %v370_v0 = vsel %vm369_vm4, %v361_v55, %v368_v62 }
  0x84   : > { %v373_v1 = vsel %vm371_vm5, %v372_v63, %v370_v0 }
  0x85   : > { %v374_v2 = vadd.f32 1e-05, %v373_v1 }
  0x87   : > { %623 = vrcp.f32 %v374_v2 }
  0x8d   : > { %v624_v10 = vpop.eup %623 }
  0x8e   : > { %v442_v13 = vmul.f32 0.25, %v624_v10 }
  0xff   : > { %v384_v14 = vpop.trf.xlu0 }
 0x100   : > { %563 = vmatmul.msk.bf16.vlgmr.msra.gmra.mxu0 %vm416_vm3, %v384_v14 }
 0x17d   : > { %v429_v3 = vpop.f32.mrf.mxu0 }
 0x17e   : > { %v433_v4 = vmax.f32 %v429_v3, 0.0 }
 0x180   : > { %v435_v5 = vsel %vm434_vm6, %v433_v4, 0.0 }
 0x181   : > { %v436_v6 = vrot.slane %v435_v5, 4 }
 0x183   : > { %v437_v7 = vadd.f32 %v436_v6, %v435_v5 }
 0x185   : > { %v438_v8 = vrot.slane %v437_v7, 2  ;;  %v431_v9 = vpop.f32.mrf.mxu0 }
 0x187   : > { %v439_v11 = vadd.f32 %v438_v8, %v437_v7 }
 0x189   : > { %v440_v12 = vrot.slane %v439_v11, 1 }
 0x18b   : > { %v441_v14 = vadd.f32 %v440_v12, %v439_v11 }
 0x18d   : > { %v443_v15 = vmul.f32 %v442_v13, %v441_v14 }
 0x18f   : > { %445 = vst.msk [vmem:[%s231_s28] sm:$0x1] %vm444_vm7, %v443_v15 }
 0x190 PF: > { %s13_s14 = sadd.s32 1, %s647_s14   ;;  %s747_s12 = smov %s643_s13 }
 0x191   : > { %p10_p5 = scmp.ge.s32.totalorder %s13_s14, 4   ;;  %s748_s13 = smov %s750_s15 }
 0x193   :  { %12 = sbr.rel (!%p10_p5) target bundleno = 2 (0x2), region = 68 }

// kernel: pcas_forward.28
= control target key start
LH: loop header
LB: loop body
LE: loop exit
PB: predicated region body
PF: predicated region fallthrough
CT: control target
= control target key end

     0   :  { %s648_s18 = smov 0   ;;  %s650_s19 = smov 0   ;;  %s707_s0 = inlined_call_operand.vmem [shape: f32[2,3,64], index: 0, kind: input, shape index: {}]   ;;  %s708_s1 = inlined_call_operand.vmem [shape: f32[16,3], index: 1, kind: input, shape index: {}]   ;;  %s709_s2 = inlined_call_operand.vmem [shape: f32[16,1], index: 2, kind: input, shape index: {}]   ;;  %s710_s3 = inlined_call_operand.vmem [shape: f32[2,16], index: 3, kind: input, shape index: {}]   ;;  %s711_s4 = inlined_call_operand.vmem [shape: f32[2,1], index: 4, kind: input, shape index: {}]   ;;  %s712_s5 = inlined_call_operand.vmem [shape: f32[2,2,64], index: 5, kind: output, shape index: {}]  }
   0x1   :  { %s652_s20 = smov 0  }
   0x2 LB: > { %s27_s21 = sadd.s32 1, %s596_s19  ;;  %p512_p0 = scmp.ge.s32.totalorder %s600_s20, 1  ;;  %s600_s20 = sphi %s652_s20, %s15_s20   ;;  %s596_s19 = sphi %s650_s19, %s714_s19   ;;  %s592_s18 = sphi %s648_s18, %s713_s18  }
   0x3   : > { %p29_p1 = scmp.ge.s32.totalorder %s27_s21, 2  ;;  %p205_p2 = scmp.lt.s32.totalorder %s600_s20, 3 }
   0x5   : > { %s716_s21 = smov (%p29_p1, %s27_s21), 0  ;;  %p206_p3 = pnand %p512_p0, %p205_p2 }
   0x6   : > { %p237_p4 = scmp.lt.s32.totalorder (!%p206_p3), %s592_s18, 1 }
   0x7   : > { %209 = sbr.rel (%p206_p3) target bundleno = 212 (0xd4), region = 40 }
   0xc   : > { %v252_v0 = vld [vmem:[%s708_s1] sm:$0xff]  ;;  %v602_v1 = vmov 2   ;;  %v603_v2 = vmov 1   ;;  %v604_v3 = vmov 0   ;;  %v253_v4 = vld [vmem:[%s708_s1 + $0x8] sm:$0xff]  ;;  %v605_v8 = vmov 3  }
   0xd   : > { %559 = vset.pattern.permute.xlu2 %v602_v1  ;;  %558 = vset.pattern.permute.xlu1 %v603_v2  ;;  %v295_v5 = vld [vmem:[%s709_s2] sm:$0xff]  ;;  %v296_v7 = vld [vmem:[%s709_s2 + $0x8] sm:$0xff]  ;;  %v606_v9 = vmov 6   ;;  %v607_v10 = vmov 5   ;;  %v608_v11 = vmov 4   ;;  %v609_v12 = vmov 11  }
   0xe   : > { %557 = vset.pattern.permute.xlu0 %v604_v3  ;;  %283 = vperm.xlu2 %559, %v252_v0   ;;  %v311_v6 = vld [vmem:[%s710_s3] sm:$0x3]  ;;  %v610_v13 = vmov 8   ;;  %v611_v14 = vmov 7   ;;  %v612_v16 = vmov 10   ;;  %v613_v17 = vmov 9  }
   0xf   : > { %270 = vperm.xlu1 %558, %v252_v0   ;;  %256 = vperm.xlu0 %557, %v252_v0   ;;  %v425_v15 = vld [vmem:[%s711_s4] sm:$0x3]  ;;  %v614_v18 = vmov 13   ;;  %v615_v19 = vmov 12   ;;  %v616_v20 = vmov 15   ;;  %v617_v21 = vmov 14  }
  0x10   : > { %s718_s18 = smov (!%p237_p4, %s592_s18), 1  ;;  %vm432_vm0 = vcmask 517120  }
  0x11   : > { %s513_s9 = sshll.u32 %s718_s18, 2  ;;  %s514_s13 = sshll.u32 %s718_s18, 1 }
  0x12   : > { %s243_s12 = scalar_lea.vmem %s707_s0, %s513_s9  ;;  %s250_s16 = scalar_lea.vmem %s712_s5, %s514_s13 }
  0x13   : > { %v251_v25 = vld [vmem:[%s243_s12] sm:$0x7] }
  0x14   : > { %v277_v27 = vperm.slane %v251_v25, 1  ;;  %v264_v28 = vperm.slane %v251_v25, 0  ;;  %v290_v31 = vperm.slane %v251_v25, 2 }
  0x16   : > { %287 = vperm.xlu2 %559, %v253_v4  }
  0x17   : > { %274 = vperm.xlu1 %558, %v253_v4   ;;  %261 = vperm.xlu0 %557, %v253_v4  }
  0x1e   : > { %561 = vset.pattern.permute.xlu2 %v604_v3 }
  0x1f   : > { %560 = vset.pattern.permute.xlu1 %v604_v3  ;;  %299 = vperm.xlu0 %557, %v295_v5  }
  0x20   : > { %314 = vperm.xlu2 %561, %v311_v6   ;;  %304 = vperm.xlu1 %560, %v296_v7  }
  0x27   : > { %562 = vset.pattern.permute.xlu0 %v603_v2 }
  0x28   : > { %564 = vset.pattern.permute.xlu2 %v605_v8  ;;  %563 = vset.pattern.permute.xlu1 %v602_v1 }
  0x29   : > { %321 = vperm.xlu0 %562, %v311_v6   ;;  %335 = vperm.xlu2 %564, %v311_v6  }
  0x2a   : > { %328 = vperm.xlu1 %563, %v311_v6  }
  0x31   : > { %567 = vset.pattern.permute.xlu0 %v606_v9  ;;  %566 = vset.pattern.permute.xlu2 %v607_v10 }
  0x32   : > { %565 = vset.pattern.permute.xlu1 %v608_v11  ;;  %356 = vperm.xlu0 %567, %v311_v6  }
  0x33   : > { %349 = vperm.xlu2 %566, %v311_v6   ;;  %342 = vperm.xlu1 %565, %v311_v6  }
  0x3a   : > { %572 = vset.pattern.permute.xlu0 %v609_v12 }
  0x3b   : > { %569 = vset.pattern.permute.xlu2 %v610_v13  ;;  %568 = vset.pattern.permute.xlu1 %v611_v14 }
  0x3c   : > { %391 = vperm.xlu0 %572, %v311_v6   ;;  %370 = vperm.xlu2 %569, %v311_v6  }
  0x3d   : > { %363 = vperm.xlu1 %568, %v311_v6  }
  0x44   : > { %571 = vset.pattern.permute.xlu2 %v612_v16  ;;  %577 = vset.pattern.permute.xlu0 %v604_v3 }
  0x45   : > { %570 = vset.pattern.permute.xlu1 %v613_v17  ;;  %384 = vperm.xlu2 %571, %v311_v6  }
  0x46   : > { %377 = vperm.xlu1 %570, %v311_v6   ;;  %428 = vperm.xlu0 %577, %v425_v15  }
  0x4d   : > { %574 = vset.pattern.permute.xlu2 %v614_v18 }
  0x4e   : > { %573 = vset.pattern.permute.xlu1 %v615_v19  ;;  %405 = vperm.xlu2 %574, %v311_v6  }
  0x4f   : > { %398 = vperm.xlu1 %573, %v311_v6  }
  0x56   : > { %576 = vset.pattern.permute.xlu2 %v616_v20 }
  0x57   : > { %575 = vset.pattern.permute.xlu1 %v617_v21  ;;  %419 = vperm.xlu2 %576, %v311_v6  }
  0x58   : > { %412 = vperm.xlu1 %575, %v311_v6  }
  0x68   : > { %v284_v22 = vpop.permute.xlu2 %283 }
  0x69   : > { %v291_v35 = vmul.f32 %v290_v31, %v284_v22 }
  0x70   : > { %v288_v26 = vpop.permute.xlu2 %287 }
  0x71   : > { %v292_v60 = vmul.f32 %v290_v31, %v288_v26 }
  0x7a   : > { %v315_v34 = vpop.permute.xlu2 %314 }
  0x81   : > { %v271_v23 = vpop.permute.xlu1 %270  ;;  %v257_v24 = vpop.permute.xlu0 %256 }
  0x82   : > { %v278_v32 = vmul.f32 %v277_v27, %v271_v23  ;;  %v265_v33 = vmul.f32 %v264_v28, %v257_v24 }
  0x83   : > { %v336_v41 = vpop.permute.xlu2 %335 }
  0x84   : > { %v280_v36 = vadd.f32 %v278_v32, %v265_v33 }
  0x86   : > { %v293_v39 = vadd.f32 %v291_v35, %v280_v36 }
  0x89   : > { %v275_v29 = vpop.permute.xlu1 %274  ;;  %v262_v30 = vpop.permute.xlu0 %261 }
  0x8a   : > { %v279_v51 = vmul.f32 %v277_v27, %v275_v29  ;;  %v266_v52 = vmul.f32 %v264_v28, %v262_v30 }
  0x8c   : > { %v281_v57 = vadd.f32 %v279_v51, %v266_v52 }
  0x8d   : > { %v350_v50 = vpop.permute.xlu2 %349 }
  0x8e   : > { %v294_v63 = vadd.f32 %v292_v60, %v281_v57 }
  0x91   : > { %v300_v37 = vpop.permute.xlu0 %299 }
  0x92   : > { %v305_v38 = vpop.permute.xlu1 %304  ;;  %v307_v40 = vadd.f32 %v300_v37, %v293_v39 }
  0x93   : > { %v308_v3 = vadd.f32 %v305_v38, %v294_v63 }
  0x94   : > { %v309_v42 = vmax.f32 %v307_v40, 0.0 }
  0x95   : > { %v310_v8 = vmax.f32 %v308_v3, 0.0 }
  0x96   : > { %v317_v45 = vperm.slane %v309_v42, 0  ;;  %v324_v46 = vperm.slane %v309_v42, 1  ;;  %v331_v49 = vperm.slane %v309_v42, 2  ;;  %v338_v56 = vperm.slane %v309_v42, 3  ;;  %v371_v2 = vpop.permute.xlu2 %370 }
  0x97   : > { %v345_v59 = vperm.slane %v309_v42, 4  ;;  %v352_v1 = vperm.slane %v309_v42, 5  ;;  %v359_v9 = vperm.slane %v309_v42, 6  ;;  %v366_v11 = vperm.slane %v309_v42, 7 }
  0x98   : > { %v318_v48 = vmul.f32 %v317_v45, %v315_v34  ;;  %v339_v61 = vmul.f32 %v338_v56, %v336_v41  ;;  %v373_v14 = vperm.slane %v310_v8, 0  ;;  %v380_v18 = vperm.slane %v310_v8, 1 }
  0x99   : > { %v353_v5 = vmul.f32 %v352_v1, %v350_v50  ;;  %v387_v23 = vperm.slane %v310_v8, 2  ;;  %v394_v28 = vperm.slane %v310_v8, 3  ;;  %v401_v31 = vperm.slane %v310_v8, 4 }
  0x9a   : > { %v374_v20 = vmul.f32 %v373_v14, %v371_v2  ;;  %v408_v35 = vperm.slane %v310_v8, 5  ;;  %v415_v38 = vperm.slane %v310_v8, 6  ;;  %v422_v41 = vperm.slane %v310_v8, 7 }
  0x9b   : > { %v322_v43 = vpop.permute.xlu0 %321 }
  0x9c   : > { %v329_v44 = vpop.permute.xlu1 %328  ;;  %v325_v47 = vmul.f32 %v324_v46, %v322_v43 }
  0x9d   : > { %v332_v54 = vmul.f32 %v331_v49, %v329_v44 }
  0x9e   : > { %v326_v53 = vadd.f32 %v325_v47, %v318_v48 }
  0x9f   : > { %v385_v16 = vpop.permute.xlu2 %384 }
  0xa0   : > { %v333_v58 = vadd.f32 %v332_v54, %v326_v53  ;;  %v388_v25 = vmul.f32 %v387_v23, %v385_v16 }
  0xa2   : > { %v340_v0 = vadd.f32 %v339_v61, %v333_v58 }
  0xa4   : > { %v357_v7 = vpop.permute.xlu0 %356 }
  0xa5   : > { %v343_v55 = vpop.permute.xlu1 %342  ;;  %v360_v12 = vmul.f32 %v359_v9, %v357_v7 }
  0xa6   : > { %v346_v62 = vmul.f32 %v345_v59, %v343_v55 }
  0xa8   : > { %v347_v4 = vadd.f32 %v346_v62, %v340_v0  ;;  %v406_v26 = vpop.permute.xlu2 %405 }
  0xa9   : > { %v409_v37 = vmul.f32 %v408_v35, %v406_v26 }
  0xaa   : > { %v354_v10 = vadd.f32 %v353_v5, %v347_v4 }
  0xac   : > { %v361_v15 = vadd.f32 %v360_v12, %v354_v10 }
  0xae   : > { %v392_v27 = vpop.permute.xlu0 %391 }
  0xaf   : > { %v364_v6 = vpop.permute.xlu1 %363  ;;  %v395_v32 = vmul.f32 %v394_v28, %v392_v27 }
  0xb0   : > { %v367_v13 = vmul.f32 %v366_v11, %v364_v6 }
  0xb1   : > { %v420_v39 = vpop.permute.xlu2 %419 }
  0xb2   : > { %v368_v17 = vadd.f32 %v367_v13, %v361_v15  ;;  %v423_v44 = vmul.f32 %v422_v41, %v420_v39 }
  0xb4   : > { %v375_v22 = vadd.f32 %v374_v20, %v368_v17 }
  0xb8   : > { %v378_v19 = vpop.permute.xlu1 %377  ;;  %v429_v46 = vpop.permute.xlu0 %428 }
  0xb9   : > { %v381_v21 = vmul.f32 %v380_v18, %v378_v19 }
  0xbb   : > { %v382_v24 = vadd.f32 %v381_v21, %v375_v22 }
  0xbd   : > { %v389_v29 = vadd.f32 %v388_v25, %v382_v24 }
  0xbf   : > { %v396_v34 = vadd.f32 %v395_v32, %v389_v29 }
  0xc1   : > { %v399_v30 = vpop.permute.xlu1 %398 }
  0xc2   : > { %v402_v33 = vmul.f32 %v401_v31, %v399_v30 }
  0xc4   : > { %v403_v36 = vadd.f32 %v402_v33, %v396_v34 }
  0xc6   : > { %v410_v42 = vadd.f32 %v409_v37, %v403_v36 }
  0xca   : > { %v413_v40 = vpop.permute.xlu1 %412 }
  0xcb   : > { %v416_v43 = vmul.f32 %v415_v38, %v413_v40 }
  0xcd   : > { %v417_v45 = vadd.f32 %v416_v43, %v410_v42 }
  0xcf   : > { %v424_v47 = vadd.f32 %v423_v44, %v417_v45 }
  0xd1   : > { %v431_v48 = vadd.f32 %v429_v46, %v424_v47 }
  0xd3   : > { %433 = vst.msk [vmem:[%s250_s16] sm:$0x3] %vm432_vm0, %v431_v48 }
  0xd4 PF: > { %s15_s20 = sadd.s32 1, %s600_s20   ;;  %s713_s18 = smov %s596_s19 }
  0xd5   : > { %p12_p5 = scmp.ge.s32.totalorder %s15_s20, 4   ;;  %s714_s19 = smov %s716_s21 }
  0xd7   :  { %14 = sbr.rel (!%p12_p5) target bundleno = 2 (0x2), region = 70 }

// kernel: pcas_forward.29
= control target key start
LH: loop header
LB: loop body
LE: loop exit
PB: predicated region body
PF: predicated region fallthrough
CT: control target
= control target key end

     0   :  { %s619_s15 = smov 0   ;;  %s621_s16 = smov 0   ;;  %s666_s0 = inlined_call_operand.vmem [shape: f32[2,3,256], index: 0, kind: input, shape index: {}]   ;;  %s667_s1 = inlined_call_operand.vmem [shape: f32[2,3,256], index: 1, kind: input, shape index: {}]   ;;  %s668_s2 = inlined_call_operand.vmem [shape: f32[2,1,256], index: 2, kind: input, shape index: {}]   ;;  %s669_s3 = inlined_call_operand.vmem [shape: f32[2,1,256], index: 3, kind: input, shape index: {}]   ;;  %s670_s4 = inlined_call_operand.vmem [shape: f32[2,3,256], index: 4, kind: output, shape index: {}]  }
   0x1   :  { %s623_s17 = smov 0  }
   0x2 LB: > { %s26_s18 = sadd.s32 1, %s588_s16  ;;  %p532_p0 = scmp.ge.s32.totalorder %s592_s17, 1  ;;  %s592_s17 = sphi %s623_s17, %s14_s17   ;;  %s588_s16 = sphi %s621_s16, %s672_s16   ;;  %s584_s15 = sphi %s619_s15, %s671_s15  }
   0x3   : > { %p28_p1 = scmp.ge.s32.totalorder %s26_s18, 2  ;;  %p232_p2 = scmp.lt.s32.totalorder %s592_s17, 3 }
   0x5   : > { %s674_s18 = smov (%p28_p1, %s26_s18), 0  ;;  %p233_p3 = pnand %p532_p0, %p232_p2 }
   0x6   : > { %p292_p4 = scmp.lt.s32.totalorder (!%p233_p3), %s584_s15, 1 }
   0x7   : > { %236 = sbr.rel (%p233_p3) target bundleno = 50 (0x32), region = 36 }
   0xc   : > { %s676_s15 = smov (!%p292_p4, %s584_s15), 1  ;;  %vm389_vm4 = vcmask 1043456  }
   0xd   : > { %s637_s19 = sshll.u32 %s676_s15, 3  ;;  %s537_s26 = sshll.u32 %s676_s15, 1 }
   0xe   : > { %s309_s22 = scalar_lea.vmem %s667_s1, %s637_s19  ;;  %s299_s25 = scalar_lea.vmem %s666_s0, %s637_s19 }
   0xf   : > { %v340_v0 = vld [vmem:[%s309_s22] sm:$0x77]  ;;  %s318_s29 = scalar_lea.vmem %s668_s2, %s537_s26  ;;  %s327_s6 = scalar_lea.vmem %s669_s3, %s537_s26 }
  0x10   : > { %349 = vst [vmem:[#allocation1] ss:$2 sm:$0xff] %v340_v0  ;;  %v339_v1 = vld [vmem:[%s299_s25] sm:$0x77]  ;;  %s337_s9 = scalar_lea.vmem %s670_s4, %s637_s19 }
  0x11   : > { %v341_v4 = vld [vmem:[%s318_s29] sm:$0x3] }
  0x12   : > { %v344_v5 = vperm.slane %v341_v4, 0  ;;  %v345_v6 = vperm.slane %v341_v4, 1  ;;  %v342_v9 = vld [vmem:[%s327_s6] sm:$0x3] }
  0x13   : > { %v369_v12 = vperm.slane %v342_v9, 0  ;;  %v370_v13 = vperm.slane %v342_v9, 1 }
  0x17   : > { %v350_v2 = vld.sshfl [vmem:[#allocation1] sm:$0xff pattern:$0x75316420]  ;;  %v351_v3 = vld.sshfl [vmem:[#allocation1 + $0x8] sm:$0xff pattern:$0x75316420] }
  0x18   : > { %359 = vst [vmem:[#allocation1] ss:$2 sm:$0xff] %v339_v1  ;;  %v354_v10 = vmul.f32 %v350_v2, %v344_v5  ;;  %v355_v11 = vmul.f32 %v351_v3, %v345_v6 }
  0x1a   : > { %vm356_vm0 = vcmp.ne.f32.partialorder %v354_v10, 0.0  ;;  %vm357_vm1 = vcmp.ne.f32.partialorder %v355_v11, 0.0 }
  0x1f   : > { %v360_v7 = vld.sshfl [vmem:[#allocation1] sm:$0xff pattern:$0x75316420]  ;;  %v361_v8 = vld.sshfl [vmem:[#allocation1 + $0x8] sm:$0xff pattern:$0x75316420] }
  0x20   : > { %373 = vst [vmem:[#allocation1] ss:$2 sm:$0xff] %v339_v1  ;;  %v364_v14 = vsel %vm356_vm0, 0.0, %v360_v7  ;;  %v365_v15 = vsel %vm357_vm1, 0.0, %v361_v8 }
  0x21   : > { %v366_v20 = vadd.f32 %v364_v14, %v354_v10  ;;  %v367_v21 = vadd.f32 %v365_v15, %v355_v11 }
  0x27   : > { %v374_v16 = vld.sshfl [vmem:[#allocation1] sm:$0xff pattern:$0x75316420]  ;;  %v375_v17 = vld.sshfl [vmem:[#allocation1 + $0x8] sm:$0xff pattern:$0x75316420] }
  0x28   : > { %v378_v18 = vmul.f32 %v374_v16, %v369_v12  ;;  %v379_v19 = vmul.f32 %v375_v17, %v370_v13 }
  0x2a   : > { %vm380_vm2 = vcmp.ne.f32.partialorder %v378_v18, 0.0  ;;  %vm381_vm3 = vcmp.ne.f32.partialorder %v379_v19, 0.0 }
  0x2b   : > { %v382_v22 = vsel %vm380_vm2, 0.0, %v366_v20  ;;  %v383_v23 = vsel %vm381_vm3, 0.0, %v367_v21 }
  0x2c   : > { %v385_v24 = vadd.f32 %v383_v23, %v379_v19  ;;  %v384_v25 = vadd.f32 %v382_v22, %v378_v18 }
  0x2e   : > { %v388_v26 = vrot.slane %v385_v24, 4 }
  0x30   : > { %v390_v27 = vsel %vm389_vm4, %v384_v25, %v388_v26 }
  0x31   : > { %392 = vst [vmem:[%s337_s9] sm:$0x77] %v390_v27 }
  0x32 PF: > { %s14_s17 = sadd.s32 1, %s592_s17   ;;  %s671_s15 = smov %s588_s16 }
  0x33   : > { %p11_p5 = scmp.ge.s32.totalorder %s14_s17, 4   ;;  %s672_s16 = smov %s674_s18 }
  0x35   :  { %13 = sbr.rel (!%p11_p5) target bundleno = 2 (0x2), region = 75 }

// kernel: pcas_forward.37
= control target key start
LH: loop header
LB: loop body
LE: loop exit
PB: predicated region body
PF: predicated region fallthrough
CT: control target
= control target key end

     0   :  { %8 = vsyncpa [#allocation3], 0  ;;  %s597_s12 = smov 0   ;;  %s599_s13 = smov 0   ;;  %s649_s0 = inlined_call_operand.vmem [shape: f32[2,2,256], index: 0, kind: input, shape index: {}]   ;;  %s650_s1 = inlined_call_operand.vmem [shape: f32[2,2,256], index: 1, kind: input, shape index: {}]   ;;  %s651_s2 = inlined_call_operand.vmem [shape: f32[2,1,256], index: 2, kind: input, shape index: {}]   ;;  %s652_s3 = inlined_call_operand.hbm [shape: f32[1,1], index: 3, kind: output, shape index: {}]  }
   0x1   :  { %s601_s14 = smov 0  }
   0x2 LB: > { %s460_s15 = sadd.s32 4294967295, %s573_s14   ;;  %s26_s16 = sadd.s32 1, %s569_s13  ;;  %s573_s14 = sphi %s601_s14, %s14_s14   ;;  %s569_s13 = sphi %s599_s13, %s654_s13   ;;  %s565_s12 = sphi %s597_s12, %s653_s12  }
   0x3   : > { %p28_p0 = scmp.ge.s32.totalorder %s26_s16, 2  ;;  %p463_p1 = scmp.ge.s32.totalorder %s573_s14, 1 }
   0x4   : > { %p185_p2 = scmp.lt.s32.totalorder %s573_s14, 3 }
   0x5   : > { %s656_s16 = smov (%p28_p0, %s26_s16), 0 }
   0x6   : > { %p186_p3 = pnand %p463_p1, %p185_p2 }
   0x7   : > { %p226_p4 = scmp.lt.s32.totalorder (!%p186_p3), %s565_s12, 1  ;;  %p254_p5 = scmp.eq.s32.totalorder (!%p186_p3), %s565_s12, 0 }
   0x8   : > { %189 = sbr.rel (%p186_p3) target bundleno = 260 (0x104), region = 32 }
   0xd   : > { %s658_s12 = smov (!%p226_p4, %s565_s12), 1  ;;  %259 = sbr.rel (!%p254_p5) target bundleno = 18 (0x12), region = 36  ;;  %vm260_vm0 = vcmask (%p254_p5), 0   ;;  %v575_v0 = vmov (%p254_p5), 0.0  }
   0xe   : > { %s474_s17 = sshll.u32 %s658_s12, 2  ;;  %s468_s18 = sshll.u32 %s658_s12, 1  ;;  %261 = vst.msk [vmem:[#allocation2] sm:$0x1] (%p254_p5), %vm260_vm0, %v575_v0 }
   0xf   : > { %s233_s21 = scalar_lea.vmem %s649_s0, %s474_s17  ;;  %s243_s24 = scalar_lea.vmem %s650_s1, %s474_s17 }
  0x10   : > { %s252_s27 = scalar_lea.vmem %s651_s2, %s468_s18 }
  0x12 PF: > { %v262_v1 = vld [vmem:[%s233_s21] sm:$0xf]  ;;  %vm277_vm1 = vcmask 1040384   ;;  %vm279_vm2 = vcmask 1042434   ;;  %vm281_vm3 = vcmask 1041408   ;;  %s576_s29 = smov [#allocation2]  }
  0x13   : > { %v263_v2 = vld [vmem:[%s243_s24] sm:$0xf]  ;;  %v267_v3 = vrot.slane %v262_v1, 7  ;;  %s370_s30 = sshll.u32 %s576_s29, 4  ;;  %s372_s6 = sshll.u32 %s652_s3, 4  ;;  %vm362_vm5 = vcmask 0   ;;  %s371_s30 = int_to_ptr.vmem [resolvable:$true] %s370_s30  ;;  %s373_s6 = int_to_ptr.hbm [resolvable:$true] %s372_s6 }
  0x14   : > { %v300_v4 = vrot.slane %v263_v2, 7  ;;  %v264_v9 = vld [vmem:[%s252_s27] sm:$0x3]  ;;  %p483_p6 = scmp.eq.s32.totalorder %s460_s15, 1 }
  0x15   : > { %v268_v5 = vrot.slane %v267_v3, 2  ;;  %v272_v6 = vsub.f32 %v262_v1, %v267_v3  ;;  %vm265_vm4 = vcmp.gt.f32.partialorder %v264_v9, 0.5  ;;  %v346_v59 = vld [vmem:[#allocation2] sm:$0x1] }
  0x16   : > { %v301_v7 = vrot.slane %v300_v4, 2  ;;  %v305_v16 = vsub.f32 %v263_v2, %v300_v4 }
  0x17   : > { %v270_v8 = vsub.f32 %v262_v1, %v268_v5  ;;  %285 = vst [vmem:[#allocation1] sm:$0xff] %v272_v6 }
  0x18   : > { %v303_v13 = vsub.f32 %v263_v2, %v301_v7 }
  0x19   : > { %v274_v10 = vrot.slane %v270_v8, 1  ;;  %v275_v11 = vrot.slane %v270_v8, 2  ;;  %v276_v12 = vrot.slane %v270_v8, 3 }
  0x1a   : > { %v307_v18 = vrot.slane %v303_v13, 1  ;;  %v308_v19 = vrot.slane %v303_v13, 2  ;;  %v309_v20 = vrot.slane %v303_v13, 3 }
  0x1b   : > { %v278_v14 = vsel %vm277_vm1, %v270_v8, %v274_v10  ;;  %v280_v15 = vsel %vm279_vm2, %v275_v11, %v276_v12 }
  0x1c   : > { %v282_v17 = vsel %vm281_vm3, %v278_v14, %v280_v15  ;;  %v310_v24 = vsel %vm277_vm1, %v303_v13, %v307_v18  ;;  %v311_v25 = vsel %vm279_vm2, %v308_v19, %v309_v20 }
  0x1d   : > { %v312_v28 = vsel %vm281_vm3, %v310_v24, %v311_v25 }
  0x1e   : > { %v287_v21 = vld [vmem:[#allocation1 + $0x1] ss:$2 sm:$0xff] }
  0x1f   : > { %v289_v22 = vsel %vm265_vm4, %v282_v17, %v287_v21  ;;  %315 = vst [vmem:[#allocation1] sm:$0xff] %v305_v16 }
  0x20   : > { %v291_v23 = vand.u32 2147483647, %v289_v22  ;;  %v290_v39 = vmax.f32 %v289_v22, 0.0 }
  0x22   : > { %v292_v26 = vsub.f32 0.0, %v291_v23 }
  0x24   : > { %v293_v27 = vmul.f32 1.442695, %v292_v26 }
  0x26   : > { %511 = vpow2.f32 %v293_v27  ;;  %v317_v29 = vld [vmem:[#allocation1 + $0x1] ss:$2 sm:$0xff] }
  0x27   : > { %v319_v30 = vsel %vm265_vm4, %v312_v28, %v317_v29 }
  0x28   : > { %v321_v31 = vand.u32 2147483647, %v319_v30  ;;  %v320_v41 = vmax.f32 %v319_v30, 0.0 }
  0x2a   : > { %v322_v32 = vsub.f32 0.0, %v321_v31 }
  0x2c   : > { %v512_v33 = vpop.eup %511  ;;  %v323_v34 = vmul.f32 1.442695, %v322_v32 }
  0x2d   : > { %v295_v35 = vadd.f32 1.0, %v512_v33 }
  0x2e   : > { %513 = vpow2.f32 %v323_v34 }
  0x2f   : > { %515 = vlog2.f32 %v295_v35 }
  0x34   : > { %v514_v36 = vpop.eup %513 }
  0x35   : > { %v325_v37 = vadd.f32 1.0, %v514_v36  ;;  %v516_v38 = vpop.eup %515 }
  0x36   : > { %v297_v40 = vmul.f32 0.6931472, %v516_v38 }
  0x37   : > { %517 = vlog2.f32 %v325_v37 }
  0x38   : > { %v298_v43 = vadd.f32 %v297_v40, %v290_v39 }
  0x3d   : > { %v518_v42 = vpop.eup %517 }
  0x3e   : > { %v327_v44 = vmul.f32 0.6931472, %v518_v42 }
  0x40   : > { %v328_v45 = vadd.f32 %v327_v44, %v320_v41 }
  0x42   : > { %v329_v46 = vadd.f32 %v328_v45, %v298_v43 }
  0x44   : > { %v340_v47 = vperm.slane %v329_v46, 0  ;;  %v341_v48 = vperm.slane %v329_v46, 1 }
  0x46   : > { %v347_v49 = vsel %vm277_vm1, %v340_v47, 0.0  ;;  %v348_v50 = vsel %vm277_vm1, %v341_v48, 0.0 }
  0x47   : > { %v349_v51 = vadd.f32 %v348_v50, %v347_v49 }
  0x49   : > { %350 = vadd.xlane.f32.xlu0 %v349_v51 }
  0xbc   : > { %v351_v52 = vpop.xlane.xlu0 %350 }
  0xbd   : > { %v352_v53 = vrot.slane %v351_v52, 4 }
  0xbf   : > { %v353_v54 = vadd.f32 %v352_v53, %v351_v52 }
  0xc1   : > { %v354_v55 = vrot.slane %v353_v54, 2 }
  0xc3   : > { %v355_v56 = vadd.f32 %v354_v55, %v353_v54 }
  0xc5   : > { %v356_v57 = vrot.slane %v355_v56, 1 }
  0xc7   : > { %v357_v58 = vadd.f32 %v356_v57, %v355_v56 }
  0xc9   : > { %477 = vpush %v357_v58 }
  0xfa   : > { %s478_s28 = spop %477 }
  0xfb   : > { %v359_v60 = vstv %s478_s28 }
  0xfc   : > { %v360_v61 = vmul.f32 0.001953125, %v359_v60 }
  0xfe   : > { %v361_v62 = vadd.f32 %v360_v61, %v346_v59 }
 0x100   : > { %363 = vst.msk [vmem:[#allocation2] sm:$0x1] %vm362_vm5, %v361_v62 }
 0x101   : > { %480 = dma.vmem_to_hbm [thread:$0]  (%p483_p6), %s371_s30, 16, %s373_s6, [#allocation3]  }
 0x102   : > { %560 = dma.done.wait (%p483_p6), [#allocation3], 16  }
 0x103   : > { %562 = vsyncadd (%p483_p6), [#allocation3], 4294967280 }
 0x104 PF: > { %s14_s14 = sadd.s32 1, %s573_s14   ;;  %s653_s12 = smov %s569_s13 }
 0x105   : > { %p11_p7 = scmp.ge.s32.totalorder %s14_s14, 4   ;;  %s654_s13 = smov %s656_s16 }
 0x107   :  { %13 = sbr.rel (!%p11_p7) target bundleno = 2 (0x2), region = 71 }
 0x10c   :  { %386 = vsyncpa [#allocation3], 1 }
 0x10d   :  { %388 = vsyncpa [#allocation3 + $0x1], 1 }

</bundles_post_ra>
